<compile_context>
chip_gen: v5e
topology: v5e:2x2
jax: 0.10.0
libtpu: 0.0.40
codegen_flags: <defaults>
</compile_context>

<pallas_src>
import functools

import jax
import jax.numpy as jnp
from jax import lax
from jax.experimental import pallas as pl
from jax.experimental.pallas import tpu as pltpu


def _round_up(n, m):
    return ((n + m - 1) // m) * m


def _pad_gate_cols(w, H, Hp):
    """(..., 4*H) -> (..., 4*Hp): each gate block zero-padded to Hp lanes."""
    if Hp == H:
        return w
    parts = []
    for g in range(4):
        blk = w[..., g * H:(g + 1) * H]
        pad_width = [(0, 0)] * (w.ndim - 1) + [(0, Hp - H)]
        parts.append(jnp.pad(blk, pad_width))
    return jnp.concatenate(parts, axis=-1)


# ------------------------- fused conv + LSTM kernel ------------------------- #
def _fused_cnn_lstm_kernel(x_ref, cw_ref, cb_ref, wih_ref, whh_ref, bl_ref,
                           o_ref, xp_ref, gx_ref, *, T, Bp, Hp, pad):
    # x_ref : (T*Bp, Cin)  time-major rows, row = t*Bp + b (batch zero-padded)
    # cw_ref: (K, Cin, Cout)   cb_ref: (1, Cout)
    # wih_ref: (Cout, 4*Hp)    whh_ref: (Hp, 4*Hp)   bl_ref: (1, 4*Hp)
    # o_ref : (Bp, Hp) = h_T
    # xp_ref: VMEM ((T+2*pad)*Bp, Cin) scratch (zero halo for the conv)
    # gx_ref: VMEM (T*Bp, 4*Hp) scratch (precomputed input-projection gates)
    K = cw_ref.shape[0]
    Cout = cw_ref.shape[2]
    TB = T * Bp

    # ---- conv halo built in VMEM (no HBM pad op) ----
    xp_ref[...] = jnp.zeros_like(xp_ref)
    xp_ref[pl.ds(pad * Bp, TB), :] = x_ref[...]

    # ---- Conv1d(k=K, s=1, p=pad) + bias + ReLU: all (t, b) rows in one matmul
    #      per tap (M = T*Bp rows on the MXU instead of T tiny dots) ----
    acc = jnp.zeros((TB, Cout), jnp.float32)
    for k in range(K):                       # static unroll over kernel taps
        acc += jnp.dot(xp_ref[pl.ds(k * Bp, TB), :], cw_ref[k],
                       preferred_element_type=jnp.float32)
    feat = jnp.maximum(acc + cb_ref[...], 0.0)          # (T*Bp, Cout)

    # ---- hoisted input projection for all timesteps, LSTM bias folded in ----
    gx_ref[...] = (jnp.dot(feat, wih_ref[...],
                           preferred_element_type=jnp.float32)
                   + bl_ref[...])                       # (T*Bp, 4*Hp)

    # ---- recurrence: h/c in registers, only h @ W_hh on the serial path ----
    w_hh = whh_ref[...]                                 # loop-invariant load
    def step(t, carry):
        h, c = carry
        row = pl.multiple_of(t * Bp, Bp)                # aligned sublane slice
        gates = gx_ref[pl.ds(row, Bp), :] + jnp.dot(
            h, w_hh, preferred_element_type=jnp.float32)
        i = jax.nn.sigmoid(gates[:, 0 * Hp:1 * Hp])     # lane-dense slices
        f = jax.nn.sigmoid(gates[:, 1 * Hp:2 * Hp])
        g = jnp.tanh(gates[:, 2 * Hp:3 * Hp])
        o = jax.nn.sigmoid(gates[:, 3 * Hp:4 * Hp])
        c = f * c + i * g
        h = o * jnp.tanh(c)
        return h, c

    h0 = jnp.zeros((Bp, Hp), jnp.float32)
    c0 = jnp.zeros((Bp, Hp), jnp.float32)
    h, _ = lax.fori_loop(0, T, step, (h0, c0), unroll=True)
    o_ref[...] = h.astype(o_ref.dtype)                  # unmasked (Bp, Hp) store


# ------------------------------ full module --------------------------------- #
@jax.jit
def cnn_lstm_encoder(x, conv_w, conv_b, w_ih, w_hh, b_lstm):
    B, T, Cin = x.shape
    K, _, Cout = conv_w.shape
    H = w_hh.shape[0]
    pad = K // 2
    Bp = _round_up(B, 8)          # full sublane group
    Hp = _round_up(H, 128)        # lane-dense gate width
    G = 4 * Hp

    # single relayout of the input: time-major, batch padded, rows = (t, b)
    x_tm = jnp.transpose(x, (1, 0, 2)).astype(jnp.float32)
    if Bp != B:
        x_tm = jnp.pad(x_tm, ((0, 0), (0, Bp - B), (0, 0)))
    x_flat = x_tm.reshape(T * Bp, Cin)

    # per-gate zero-padding so each gate occupies whole 128-lane groups
    w_ih_p = _pad_gate_cols(w_ih, H, Hp)                          # (Cout, G)
    w_hh_p = jnp.pad(_pad_gate_cols(w_hh, H, Hp),
                     ((0, Hp - H), (0, 0)))                       # (Hp, G)
    b_p = _pad_gate_cols(b_lstm, H, Hp)                           # (1, G)

    out = pl.pallas_call(
        functools.partial(_fused_cnn_lstm_kernel, T=T, Bp=Bp, Hp=Hp, pad=pad),
        out_shape=jax.ShapeDtypeStruct((Bp, Hp), jnp.float32),
        grid=(1,),
        in_specs=[
            pl.BlockSpec((T * Bp, Cin), lambda i: (0, 0)),
            pl.BlockSpec((K, Cin, Cout), lambda i: (0, 0, 0)),
            pl.BlockSpec((1, Cout), lambda i: (0, 0)),
            pl.BlockSpec((Cout, G), lambda i: (0, 0)),
            pl.BlockSpec((Hp, G), lambda i: (0, 0)),
            pl.BlockSpec((1, G), lambda i: (0, 0)),
        ],
        out_specs=pl.BlockSpec((Bp, Hp), lambda i: (0, 0)),
        scratch_shapes=[
            pltpu.VMEM(((T + 2 * pad) * Bp, Cin), jnp.float32),   # padded x
            pltpu.VMEM((T * Bp, G), jnp.float32),                 # gx = x@W_ih+b
        ],
        compiler_params=pltpu.CompilerParams(
            dimension_semantics=("arbitrary",),
            vmem_limit_bytes=32 * 1024 * 1024),
    )(x_flat, conv_w, conv_b, w_ih_p, w_hh_p, b_p)

    return out[:B, :H]


# ---------------------------- pure-JAX reference ----------------------------- #
def _ref(x, conv_w, conv_b, w_ih, w_hh, b_lstm):
    pad = conv_w.shape[0] // 2
    B, T, _ = x.shape
    K = conv_w.shape[0]
    x_pad = jnp.pad(x, ((0, 0), (pad, pad), (0, 0)))
    feat = sum(jnp.einsum('btc,cd->btd', x_pad[:, k:k + T, :], conv_w[k])
               for k in range(K)) + conv_b
    feat = jnp.maximum(feat, 0.0)
    H = w_hh.shape[0]

    def step(carry, x_t):
        h, c = carry
        gates = x_t @ w_ih + h @ w_hh + b_lstm
        i = jax.nn.sigmoid(gates[:, :H])
        f = jax.nn.sigmoid(gates[:, H:2 * H])
        g = jnp.tanh(gates[:, 2 * H:3 * H])
        o = jax.nn.sigmoid(gates[:, 3 * H:])
        c = f * c + i * g
        h = o * jnp.tanh(c)
        return (h, c), None

    init = (jnp.zeros((B, H), jnp.float32), jnp.zeros((B, H), jnp.float32))
    (h, _), _ = lax.scan(step, init, jnp.transpose(feat, (1, 0, 2)))
    return h


if __name__ == "__main__":
    # small shapes: batch=2, seq=16, input_dim=16, enc_channel=32, embd_size=32
    B, T, input_dim, enc_channel, embd_size = 2, 16, 16, 32, 32
    K = 5  # conv kernel width, padding = 2

    key = jax.random.PRNGKey(0)
    ks = jax.random.split(key, 6)

    x = jax.random.normal(ks[0], (B, T, input_dim), jnp.float32)

    # deterministic parameter init (matching PyTorch default scales)
    bc = 1.0 / (input_dim * K) ** 0.5
    conv_w = jax.random.uniform(ks[1], (K, input_dim, enc_channel),
                                jnp.float32, -bc, bc)
    conv_b = jax.random.uniform(ks[2], (1, enc_channel), jnp.float32, -bc, bc)

    bl = 1.0 / embd_size ** 0.5
    w_ih = jax.random.uniform(ks[3], (enc_channel, 4 * embd_size),
                              jnp.float32, -bl, bl)
    w_hh = jax.random.uniform(ks[4], (embd_size, 4 * embd_size),
                              jnp.float32, -bl, bl)
    b_lstm = jax.random.uniform(ks[5], (1, 4 * embd_size),
                                jnp.float32, -2 * bl, 2 * bl)  # b_ih + b_hh

    out = cnn_lstm_encoder(x, conv_w, conv_b, w_ih, w_hh, b_lstm)
    out = jax.block_until_ready(out)

    ref = _ref(x, conv_w, conv_b, w_ih, w_hh, b_lstm)
    assert out.shape == (B, embd_size)
    assert jnp.allclose(out, ref, atol=1e-4, rtol=1e-4)
    print("KERNEL_OK")
</pallas_src>

<mosaic_0001>
module attributes {stable_mosaic.version = 11 : i64} {
  func.func @_fused_cnn_lstm_kernel(%arg0: i32, %arg1: memref<128x16xf32, #tpu.memory_space<vmem>>, %arg2: memref<5x16x32xf32, #tpu.memory_space<vmem>>, %arg3: memref<1x32xf32, #tpu.memory_space<vmem>>, %arg4: memref<32x512xf32, #tpu.memory_space<vmem>>, %arg5: memref<128x512xf32, #tpu.memory_space<vmem>>, %arg6: memref<1x512xf32, #tpu.memory_space<vmem>>, %arg7: memref<8x128xf32, #tpu.memory_space<vmem>>, %arg8: memref<160x16xf32, #tpu.memory_space<vmem>>, %arg9: memref<128x512xf32, #tpu.memory_space<vmem>>) attributes {dimension_semantics = [#tpu.dimension_semantics<arbitrary>], iteration_bounds = array<i64: 1>, scalar_prefetch = 0 : i64, scratch_operands = 2 : i64, tpu.core_type = #tpu.core_type<tc>, window_params = [{pipeline_mode = #tpu.pipeline_mode<synchronous>, transform_indices = @transform_0, window_bounds = array<i64: 128, 16>}, {pipeline_mode = #tpu.pipeline_mode<synchronous>, transform_indices = @transform_1, window_bounds = array<i64: 5, 16, 32>}, {pipeline_mode = #tpu.pipeline_mode<synchronous>, transform_indices = @transform_2, window_bounds = array<i64: 1, 32>}, {pipeline_mode = #tpu.pipeline_mode<synchronous>, transform_indices = @transform_3, window_bounds = array<i64: 32, 512>}, {pipeline_mode = #tpu.pipeline_mode<synchronous>, transform_indices = @transform_4, window_bounds = array<i64: 128, 512>}, {pipeline_mode = #tpu.pipeline_mode<synchronous>, transform_indices = @transform_5, window_bounds = array<i64: 1, 512>}, {pipeline_mode = #tpu.pipeline_mode<synchronous>, transform_indices = @transform_6, window_bounds = array<i64: 8, 128>}]} {
    %cst = arith.constant 0.000000e+00 : f32
    %0 = vector.broadcast %cst : f32 to vector<160x16xf32>
    %c0 = arith.constant 0 : index
    %c0_0 = arith.constant 0 : index
    %1 = vector.load %arg8[%c0, %c0_0] : memref<160x16xf32, #tpu.memory_space<vmem>>, vector<160x16xf32>
    tpu.vector_store %arg8[%c0, %c0_0], %0 {strides = array<i32>} : memref<160x16xf32, #tpu.memory_space<vmem>>, vector<160x16xf32>,
    %c0_1 = arith.constant 0 : index
    %c0_2 = arith.constant 0 : index
    %2 = vector.load %arg1[%c0_1, %c0_2] : memref<128x16xf32, #tpu.memory_space<vmem>>, vector<128x16xf32>
    %c16 = arith.constant 16 : index
    %c0_3 = arith.constant 0 : index
    %3 = vector.load %arg8[%c16, %c0_3] : memref<160x16xf32, #tpu.memory_space<vmem>>, vector<128x16xf32>
    tpu.vector_store %arg8[%c16, %c0_3], %2 {strides = array<i32>} : memref<160x16xf32, #tpu.memory_space<vmem>>, vector<128x16xf32>,
    %cst_4 = arith.constant 0.000000e+00 : f32
    %4 = vector.broadcast %cst_4 : f32 to vector<128x32xf32>
    %c0_5 = arith.constant 0 : index
    %c0_6 = arith.constant 0 : index
    %5 = vector.load %arg8[%c0_5, %c0_6] : memref<160x16xf32, #tpu.memory_space<vmem>>, vector<128x16xf32>
    %c0_7 = arith.constant 0 : index
    %c0_8 = arith.constant 0 : index
    %c0_9 = arith.constant 0 : index
    %6 = vector.load %arg2[%c0_7, %c0_8, %c0_9] : memref<5x16x32xf32, #tpu.memory_space<vmem>>, vector<1x16x32xf32>
    %7 = vector.shape_cast %6 : vector<1x16x32xf32> to vector<16x32xf32>
    %cst_10 = arith.constant dense<0.000000e+00> : vector<128x32xf32>
    %8 = tpu.matmul %5, %7, %cst_10 {dimension_numbers = #tpu.dot_dimension_numbers<[1], [0], [0], [1], [0, 0, 1, 1], [], []>} : vector<128x16xf32>, vector<16x32xf32>, vector<128x32xf32> -> vector<128x32xf32>
    %9 = arith.addf %4, %8 : vector<128x32xf32>
    %c8 = arith.constant 8 : index
    %c0_11 = arith.constant 0 : index
    %10 = vector.load %arg8[%c8, %c0_11] : memref<160x16xf32, #tpu.memory_space<vmem>>, vector<128x16xf32>
    %c1 = arith.constant 1 : index
    %c0_12 = arith.constant 0 : index
    %c0_13 = arith.constant 0 : index
    %11 = vector.load %arg2[%c1, %c0_12, %c0_13] : memref<5x16x32xf32, #tpu.memory_space<vmem>>, vector<1x16x32xf32>
    %12 = vector.shape_cast %11 : vector<1x16x32xf32> to vector<16x32xf32>
    %cst_14 = arith.constant dense<0.000000e+00> : vector<128x32xf32>
    %13 = tpu.matmul %10, %12, %cst_14 {dimension_numbers = #tpu.dot_dimension_numbers<[1], [0], [0], [1], [0, 0, 1, 1], [], []>} : vector<128x16xf32>, vector<16x32xf32>, vector<128x32xf32> -> vector<128x32xf32>
    %14 = arith.addf %9, %13 : vector<128x32xf32>
    %c16_15 = arith.constant 16 : index
    %c0_16 = arith.constant 0 : index
    %15 = vector.load %arg8[%c16_15, %c0_16] : memref<160x16xf32, #tpu.memory_space<vmem>>, vector<128x16xf32>
    %c2 = arith.constant 2 : index
    %c0_17 = arith.constant 0 : index
    %c0_18 = arith.constant 0 : index
    %16 = vector.load %arg2[%c2, %c0_17, %c0_18] : memref<5x16x32xf32, #tpu.memory_space<vmem>>, vector<1x16x32xf32>
    %17 = vector.shape_cast %16 : vector<1x16x32xf32> to vector<16x32xf32>
    %cst_19 = arith.constant dense<0.000000e+00> : vector<128x32xf32>
    %18 = tpu.matmul %15, %17, %cst_19 {dimension_numbers = #tpu.dot_dimension_numbers<[1], [0], [0], [1], [0, 0, 1, 1], [], []>} : vector<128x16xf32>, vector<16x32xf32>, vector<128x32xf32> -> vector<128x32xf32>
    %19 = arith.addf %14, %18 : vector<128x32xf32>
    %c24 = arith.constant 24 : index
    %c0_20 = arith.constant 0 : index
    %20 = vector.load %arg8[%c24, %c0_20] : memref<160x16xf32, #tpu.memory_space<vmem>>, vector<128x16xf32>
    %c3 = arith.constant 3 : index
    %c0_21 = arith.constant 0 : index
    %c0_22 = arith.constant 0 : index
    %21 = vector.load %arg2[%c3, %c0_21, %c0_22] : memref<5x16x32xf32, #tpu.memory_space<vmem>>, vector<1x16x32xf32>
    %22 = vector.shape_cast %21 : vector<1x16x32xf32> to vector<16x32xf32>
    %cst_23 = arith.constant dense<0.000000e+00> : vector<128x32xf32>
    %23 = tpu.matmul %20, %22, %cst_23 {dimension_numbers = #tpu.dot_dimension_numbers<[1], [0], [0], [1], [0, 0, 1, 1], [], []>} : vector<128x16xf32>, vector<16x32xf32>, vector<128x32xf32> -> vector<128x32xf32>
    %24 = arith.addf %19, %23 : vector<128x32xf32>
    %c32 = arith.constant 32 : index
    %c0_24 = arith.constant 0 : index
    %25 = vector.load %arg8[%c32, %c0_24] : memref<160x16xf32, #tpu.memory_space<vmem>>, vector<128x16xf32>
    %c4 = arith.constant 4 : index
    %c0_25 = arith.constant 0 : index
    %c0_26 = arith.constant 0 : index
    %26 = vector.load %arg2[%c4, %c0_25, %c0_26] : memref<5x16x32xf32, #tpu.memory_space<vmem>>, vector<1x16x32xf32>
    %27 = vector.shape_cast %26 : vector<1x16x32xf32> to vector<16x32xf32>
    %cst_27 = arith.constant dense<0.000000e+00> : vector<128x32xf32>
    %28 = tpu.matmul %25, %27, %cst_27 {dimension_numbers = #tpu.dot_dimension_numbers<[1], [0], [0], [1], [0, 0, 1, 1], [], []>} : vector<128x16xf32>, vector<16x32xf32>, vector<128x32xf32> -> vector<128x32xf32>
    %29 = arith.addf %24, %28 : vector<128x32xf32>
    %c0_28 = arith.constant 0 : index
    %c0_29 = arith.constant 0 : index
    %30 = vector.load %arg3[%c0_28, %c0_29] : memref<1x32xf32, #tpu.memory_space<vmem>>, vector<1x32xf32>
    %31 = vector.broadcast %30 : vector<1x32xf32> to vector<128x32xf32>
    %32 = arith.addf %29, %31 : vector<128x32xf32>
    %cst_30 = arith.constant 0.000000e+00 : f32
    %33 = vector.broadcast %cst_30 : f32 to vector<128x32xf32>
    %34 = arith.maximumf %32, %33 : vector<128x32xf32>
    %c0_31 = arith.constant 0 : index
    %c0_32 = arith.constant 0 : index
    %35 = vector.load %arg4[%c0_31, %c0_32] : memref<32x512xf32, #tpu.memory_space<vmem>>, vector<32x512xf32>
    %cst_33 = arith.constant dense<0.000000e+00> : vector<128x512xf32>
    %36 = tpu.matmul %34, %35, %cst_33 {dimension_numbers = #tpu.dot_dimension_numbers<[1], [0], [0], [1], [0, 0, 1, 1], [], []>} : vector<128x32xf32>, vector<32x512xf32>, vector<128x512xf32> -> vector<128x512xf32>
    %c0_34 = arith.constant 0 : index
    %c0_35 = arith.constant 0 : index
    %37 = vector.load %arg6[%c0_34, %c0_35] : memref<1x512xf32, #tpu.memory_space<vmem>>, vector<1x512xf32>
    %38 = vector.broadcast %37 : vector<1x512xf32> to vector<128x512xf32>
    %39 = arith.addf %36, %38 : vector<128x512xf32>
    %c0_36 = arith.constant 0 : index
    %c0_37 = arith.constant 0 : index
    %40 = vector.load %arg9[%c0_36, %c0_37] : memref<128x512xf32, #tpu.memory_space<vmem>>, vector<128x512xf32>
    tpu.vector_store %arg9[%c0_36, %c0_37], %39 {strides = array<i32>} : memref<128x512xf32, #tpu.memory_space<vmem>>, vector<128x512xf32>,
    %c0_38 = arith.constant 0 : index
    %c0_39 = arith.constant 0 : index
    %41 = vector.load %arg5[%c0_38, %c0_39] : memref<128x512xf32, #tpu.memory_space<vmem>>, vector<128x512xf32>
    %cst_40 = arith.constant 0.000000e+00 : f32
    %42 = vector.broadcast %cst_40 : f32 to vector<8x128xf32>
    %cst_41 = arith.constant 0.000000e+00 : f32
    %43 = vector.broadcast %cst_41 : f32 to vector<8x128xf32>
    %c0_i32 = arith.constant 0 : i32
    %c8_i32 = arith.constant 8 : i32
    %44 = arith.muli %c0_i32, %c8_i32 : i32
    %45 = tpu.assume_multiple %44, 8 : i32
    %46 = arith.index_cast %45 : i32 to index
    %c0_42 = arith.constant 0 : index
    %47 = vector.load %arg9[%46, %c0_42] : memref<128x512xf32, #tpu.memory_space<vmem>>, vector<8x512xf32>
    %cst_43 = arith.constant dense<0.000000e+00> : vector<8x512xf32>
    %48 = tpu.matmul %42, %41, %cst_43 {dimension_numbers = #tpu.dot_dimension_numbers<[1], [0], [0], [1], [0, 0, 1, 1], [], []>} : vector<8x128xf32>, vector<128x512xf32>, vector<8x512xf32> -> vector<8x512xf32>
    %49 = arith.addf %47, %48 : vector<8x512xf32>
    %50 = vector.extract_strided_slice %49 {offsets = [0, 0], sizes = [8, 128], strides = [1, 1]} : vector<8x512xf32> to vector<8x128xf32>
    %51 = arith.negf %50 : vector<8x128xf32>
    %52 = math.exp %51 : vector<8x128xf32>
    %cst_44 = arith.constant 1.000000e+00 : f32
    %53 = vector.broadcast %cst_44 : f32 to vector<8x128xf32>
    %54 = arith.addf %53, %52 : vector<8x128xf32>
    %55 = arith.divf %53, %54 : vector<8x128xf32>
    %56 = vector.extract_strided_slice %49 {offsets = [0, 128], sizes = [8, 128], strides = [1, 1]} : vector<8x512xf32> to vector<8x128xf32>
    %57 = arith.negf %56 : vector<8x128xf32>
    %58 = math.exp %57 : vector<8x128xf32>
    %cst_45 = arith.constant 1.000000e+00 : f32
    %59 = vector.broadcast %cst_45 : f32 to vector<8x128xf32>
    %60 = arith.addf %59, %58 : vector<8x128xf32>
    %61 = arith.divf %59, %60 : vector<8x128xf32>
    %62 = vector.extract_strided_slice %49 {offsets = [0, 256], sizes = [8, 128], strides = [1, 1]} : vector<8x512xf32> to vector<8x128xf32>
    %63 = math.tanh %62 : vector<8x128xf32>
    %64 = vector.extract_strided_slice %49 {offsets = [0, 384], sizes = [8, 128], strides = [1, 1]} : vector<8x512xf32> to vector<8x128xf32>
    %65 = arith.negf %64 : vector<8x128xf32>
    %66 = math.exp %65 : vector<8x128xf32>
    %cst_46 = arith.constant 1.000000e+00 : f32
    %67 = vector.broadcast %cst_46 : f32 to vector<8x128xf32>
    %68 = arith.addf %67, %66 : vector<8x128xf32>
    %69 = arith.divf %67, %68 : vector<8x128xf32>
    %70 = arith.mulf %61, %43 : vector<8x128xf32>
    %71 = arith.mulf %55, %63 : vector<8x128xf32>
    %72 = arith.addf %70, %71 : vector<8x128xf32>
    %73 = math.tanh %72 : vector<8x128xf32>
    %74 = arith.mulf %69, %73 : vector<8x128xf32>
    %c1_i32 = arith.constant 1 : i32
    %c8_i32_47 = arith.constant 8 : i32
    %75 = arith.muli %c1_i32, %c8_i32_47 : i32
    %76 = tpu.assume_multiple %75, 8 : i32
    %77 = arith.index_cast %76 : i32 to index
    %c0_48 = arith.constant 0 : index
    %78 = vector.load %arg9[%77, %c0_48] : memref<128x512xf32, #tpu.memory_space<vmem>>, vector<8x512xf32>
    %cst_49 = arith.constant dense<0.000000e+00> : vector<8x512xf32>
    %79 = tpu.matmul %74, %41, %cst_49 {dimension_numbers = #tpu.dot_dimension_numbers<[1], [0], [0], [1], [0, 0, 1, 1], [], []>} : vector<8x128xf32>, vector<128x512xf32>, vector<8x512xf32> -> vector<8x512xf32>
    %80 = arith.addf %78, %79 : vector<8x512xf32>
    %81 = vector.extract_strided_slice %80 {offsets = [0, 0], sizes = [8, 128], strides = [1, 1]} : vector<8x512xf32> to vector<8x128xf32>
    %82 = arith.negf %81 : vector<8x128xf32>
    %83 = math.exp %82 : vector<8x128xf32>
    %cst_50 = arith.constant 1.000000e+00 : f32
    %84 = vector.broadcast %cst_50 : f32 to vector<8x128xf32>
    %85 = arith.addf %84, %83 : vector<8x128xf32>
    %86 = arith.divf %84, %85 : vector<8x128xf32>
    %87 = vector.extract_strided_slice %80 {offsets = [0, 128], sizes = [8, 128], strides = [1, 1]} : vector<8x512xf32> to vector<8x128xf32>
    %88 = arith.negf %87 : vector<8x128xf32>
    %89 = math.exp %88 : vector<8x128xf32>
    %cst_51 = arith.constant 1.000000e+00 : f32
    %90 = vector.broadcast %cst_51 : f32 to vector<8x128xf32>
    %91 = arith.addf %90, %89 : vector<8x128xf32>
    %92 = arith.divf %90, %91 : vector<8x128xf32>
    %93 = vector.extract_strided_slice %80 {offsets = [0, 256], sizes = [8, 128], strides = [1, 1]} : vector<8x512xf32> to vector<8x128xf32>
    %94 = math.tanh %93 : vector<8x128xf32>
    %95 = vector.extract_strided_slice %80 {offsets = [0, 384], sizes = [8, 128], strides = [1, 1]} : vector<8x512xf32> to vector<8x128xf32>
    %96 = arith.negf %95 : vector<8x128xf32>
    %97 = math.exp %96 : vector<8x128xf32>
    %cst_52 = arith.constant 1.000000e+00 : f32
    %98 = vector.broadcast %cst_52 : f32 to vector<8x128xf32>
    %99 = arith.addf %98, %97 : vector<8x128xf32>
    %100 = arith.divf %98, %99 : vector<8x128xf32>
    %101 = arith.mulf %92, %72 : vector<8x128xf32>
    %102 = arith.mulf %86, %94 : vector<8x128xf32>
    %103 = arith.addf %101, %102 : vector<8x128xf32>
    %104 = math.tanh %103 : vector<8x128xf32>
    %105 = arith.mulf %100, %104 : vector<8x128xf32>
    %c2_i32 = arith.constant 2 : i32
    %c8_i32_53 = arith.constant 8 : i32
    %106 = arith.muli %c2_i32, %c8_i32_53 : i32
    %107 = tpu.assume_multiple %106, 8 : i32
    %108 = arith.index_cast %107 : i32 to index
    %c0_54 = arith.constant 0 : index
    %109 = vector.load %arg9[%108, %c0_54] : memref<128x512xf32, #tpu.memory_space<vmem>>, vector<8x512xf32>
    %cst_55 = arith.constant dense<0.000000e+00> : vector<8x512xf32>
    %110 = tpu.matmul %105, %41, %cst_55 {dimension_numbers = #tpu.dot_dimension_numbers<[1], [0], [0], [1], [0, 0, 1, 1], [], []>} : vector<8x128xf32>, vector<128x512xf32>, vector<8x512xf32> -> vector<8x512xf32>
    %111 = arith.addf %109, %110 : vector<8x512xf32>
    %112 = vector.extract_strided_slice %111 {offsets = [0, 0], sizes = [8, 128], strides = [1, 1]} : vector<8x512xf32> to vector<8x128xf32>
    %113 = arith.negf %112 : vector<8x128xf32>
    %114 = math.exp %113 : vector<8x128xf32>
    %cst_56 = arith.constant 1.000000e+00 : f32
    %115 = vector.broadcast %cst_56 : f32 to vector<8x128xf32>
    %116 = arith.addf %115, %114 : vector<8x128xf32>
    %117 = arith.divf %115, %116 : vector<8x128xf32>
    %118 = vector.extract_strided_slice %111 {offsets = [0, 128], sizes = [8, 128], strides = [1, 1]} : vector<8x512xf32> to vector<8x128xf32>
    %119 = arith.negf %118 : vector<8x128xf32>
    %120 = math.exp %119 : vector<8x128xf32>
    %cst_57 = arith.constant 1.000000e+00 : f32
    %121 = vector.broadcast %cst_57 : f32 to vector<8x128xf32>
    %122 = arith.addf %121, %120 : vector<8x128xf32>
    %123 = arith.divf %121, %122 : vector<8x128xf32>
    %124 = vector.extract_strided_slice %111 {offsets = [0, 256], sizes = [8, 128], strides = [1, 1]} : vector<8x512xf32> to vector<8x128xf32>
    %125 = math.tanh %124 : vector<8x128xf32>
    %126 = vector.extract_strided_slice %111 {offsets = [0, 384], sizes = [8, 128], strides = [1, 1]} : vector<8x512xf32> to vector<8x128xf32>
    %127 = arith.negf %126 : vector<8x128xf32>
    %128 = math.exp %127 : vector<8x128xf32>
    %cst_58 = arith.constant 1.000000e+00 : f32
    %129 = vector.broadcast %cst_58 : f32 to vector<8x128xf32>
    %130 = arith.addf %129, %128 : vector<8x128xf32>
    %131 = arith.divf %129, %130 : vector<8x128xf32>
    %132 = arith.mulf %123, %103 : vector<8x128xf32>
    %133 = arith.mulf %117, %125 : vector<8x128xf32>
    %134 = arith.addf %132, %133 : vector<8x128xf32>
    %135 = math.tanh %134 : vector<8x128xf32>
    %136 = arith.mulf %131, %135 : vector<8x128xf32>
    %c3_i32 = arith.constant 3 : i32
    %c8_i32_59 = arith.constant 8 : i32
    %137 = arith.muli %c3_i32, %c8_i32_59 : i32
    %138 = tpu.assume_multiple %137, 8 : i32
    %139 = arith.index_cast %138 : i32 to index
    %c0_60 = arith.constant 0 : index
    %140 = vector.load %arg9[%139, %c0_60] : memref<128x512xf32, #tpu.memory_space<vmem>>, vector<8x512xf32>
    %cst_61 = arith.constant dense<0.000000e+00> : vector<8x512xf32>
    %141 = tpu.matmul %136, %41, %cst_61 {dimension_numbers = #tpu.dot_dimension_numbers<[1], [0], [0], [1], [0, 0, 1, 1], [], []>} : vector<8x128xf32>, vector<128x512xf32>, vector<8x512xf32> -> vector<8x512xf32>
    %142 = arith.addf %140, %141 : vector<8x512xf32>
    %143 = vector.extract_strided_slice %142 {offsets = [0, 0], sizes = [8, 128], strides = [1, 1]} : vector<8x512xf32> to vector<8x128xf32>
    %144 = arith.negf %143 : vector<8x128xf32>
    %145 = math.exp %144 : vector<8x128xf32>
    %cst_62 = arith.constant 1.000000e+00 : f32
    %146 = vector.broadcast %cst_62 : f32 to vector<8x128xf32>
    %147 = arith.addf %146, %145 : vector<8x128xf32>
    %148 = arith.divf %146, %147 : vector<8x128xf32>
    %149 = vector.extract_strided_slice %142 {offsets = [0, 128], sizes = [8, 128], strides = [1, 1]} : vector<8x512xf32> to vector<8x128xf32>
    %150 = arith.negf %149 : vector<8x128xf32>
    %151 = math.exp %150 : vector<8x128xf32>
    %cst_63 = arith.constant 1.000000e+00 : f32
    %152 = vector.broadcast %cst_63 : f32 to vector<8x128xf32>
    %153 = arith.addf %152, %151 : vector<8x128xf32>
    %154 = arith.divf %152, %153 : vector<8x128xf32>
    %155 = vector.extract_strided_slice %142 {offsets = [0, 256], sizes = [8, 128], strides = [1, 1]} : vector<8x512xf32> to vector<8x128xf32>
    %156 = math.tanh %155 : vector<8x128xf32>
    %157 = vector.extract_strided_slice %142 {offsets = [0, 384], sizes = [8, 128], strides = [1, 1]} : vector<8x512xf32> to vector<8x128xf32>
    %158 = arith.negf %157 : vector<8x128xf32>
    %159 = math.exp %158 : vector<8x128xf32>
    %cst_64 = arith.constant 1.000000e+00 : f32
    %160 = vector.broadcast %cst_64 : f32 to vector<8x128xf32>
    %161 = arith.addf %160, %159 : vector<8x128xf32>
    %162 = arith.divf %160, %161 : vector<8x128xf32>
    %163 = arith.mulf %154, %134 : vector<8x128xf32>
    %164 = arith.mulf %148, %156 : vector<8x128xf32>
    %165 = arith.addf %163, %164 : vector<8x128xf32>
    %166 = math.tanh %165 : vector<8x128xf32>
    %167 = arith.mulf %162, %166 : vector<8x128xf32>
    %c4_i32 = arith.constant 4 : i32
    %c8_i32_65 = arith.constant 8 : i32
    %168 = arith.muli %c4_i32, %c8_i32_65 : i32
    %169 = tpu.assume_multiple %168, 8 : i32
    %170 = arith.index_cast %169 : i32 to index
    %c0_66 = arith.constant 0 : index
    %171 = vector.load %arg9[%170, %c0_66] : memref<128x512xf32, #tpu.memory_space<vmem>>, vector<8x512xf32>
    %cst_67 = arith.constant dense<0.000000e+00> : vector<8x512xf32>
    %172 = tpu.matmul %167, %41, %cst_67 {dimension_numbers = #tpu.dot_dimension_numbers<[1], [0], [0], [1], [0, 0, 1, 1], [], []>} : vector<8x128xf32>, vector<128x512xf32>, vector<8x512xf32> -> vector<8x512xf32>
    %173 = arith.addf %171, %172 : vector<8x512xf32>
    %174 = vector.extract_strided_slice %173 {offsets = [0, 0], sizes = [8, 128], strides = [1, 1]} : vector<8x512xf32> to vector<8x128xf32>
    %175 = arith.negf %174 : vector<8x128xf32>
    %176 = math.exp %175 : vector<8x128xf32>
    %cst_68 = arith.constant 1.000000e+00 : f32
    %177 = vector.broadcast %cst_68 : f32 to vector<8x128xf32>
    %178 = arith.addf %177, %176 : vector<8x128xf32>
    %179 = arith.divf %177, %178 : vector<8x128xf32>
    %180 = vector.extract_strided_slice %173 {offsets = [0, 128], sizes = [8, 128], strides = [1, 1]} : vector<8x512xf32> to vector<8x128xf32>
    %181 = arith.negf %180 : vector<8x128xf32>
    %182 = math.exp %181 : vector<8x128xf32>
    %cst_69 = arith.constant 1.000000e+00 : f32
    %183 = vector.broadcast %cst_69 : f32 to vector<8x128xf32>
    %184 = arith.addf %183, %182 : vector<8x128xf32>
    %185 = arith.divf %183, %184 : vector<8x128xf32>
    %186 = vector.extract_strided_slice %173 {offsets = [0, 256], sizes = [8, 128], strides = [1, 1]} : vector<8x512xf32> to vector<8x128xf32>
    %187 = math.tanh %186 : vector<8x128xf32>
    %188 = vector.extract_strided_slice %173 {offsets = [0, 384], sizes = [8, 128], strides = [1, 1]} : vector<8x512xf32> to vector<8x128xf32>
    %189 = arith.negf %188 : vector<8x128xf32>
    %190 = math.exp %189 : vector<8x128xf32>
    %cst_70 = arith.constant 1.000000e+00 : f32
    %191 = vector.broadcast %cst_70 : f32 to vector<8x128xf32>
    %192 = arith.addf %191, %190 : vector<8x128xf32>
    %193 = arith.divf %191, %192 : vector<8x128xf32>
    %194 = arith.mulf %185, %165 : vector<8x128xf32>
    %195 = arith.mulf %179, %187 : vector<8x128xf32>
    %196 = arith.addf %194, %195 : vector<8x128xf32>
    %197 = math.tanh %196 : vector<8x128xf32>
    %198 = arith.mulf %193, %197 : vector<8x128xf32>
    %c5_i32 = arith.constant 5 : i32
    %c8_i32_71 = arith.constant 8 : i32
    %199 = arith.muli %c5_i32, %c8_i32_71 : i32
    %200 = tpu.assume_multiple %199, 8 : i32
    %201 = arith.index_cast %200 : i32 to index
    %c0_72 = arith.constant 0 : index
    %202 = vector.load %arg9[%201, %c0_72] : memref<128x512xf32, #tpu.memory_space<vmem>>, vector<8x512xf32>
    %cst_73 = arith.constant dense<0.000000e+00> : vector<8x512xf32>
    %203 = tpu.matmul %198, %41, %cst_73 {dimension_numbers = #tpu.dot_dimension_numbers<[1], [0], [0], [1], [0, 0, 1, 1], [], []>} : vector<8x128xf32>, vector<128x512xf32>, vector<8x512xf32> -> vector<8x512xf32>
    %204 = arith.addf %202, %203 : vector<8x512xf32>
    %205 = vector.extract_strided_slice %204 {offsets = [0, 0], sizes = [8, 128], strides = [1, 1]} : vector<8x512xf32> to vector<8x128xf32>
    %206 = arith.negf %205 : vector<8x128xf32>
    %207 = math.exp %206 : vector<8x128xf32>
    %cst_74 = arith.constant 1.000000e+00 : f32
    %208 = vector.broadcast %cst_74 : f32 to vector<8x128xf32>
    %209 = arith.addf %208, %207 : vector<8x128xf32>
    %210 = arith.divf %208, %209 : vector<8x128xf32>
    %211 = vector.extract_strided_slice %204 {offsets = [0, 128], sizes = [8, 128], strides = [1, 1]} : vector<8x512xf32> to vector<8x128xf32>
    %212 = arith.negf %211 : vector<8x128xf32>
    %213 = math.exp %212 : vector<8x128xf32>
    %cst_75 = arith.constant 1.000000e+00 : f32
    %214 = vector.broadcast %cst_75 : f32 to vector<8x128xf32>
    %215 = arith.addf %214, %213 : vector<8x128xf32>
    %216 = arith.divf %214, %215 : vector<8x128xf32>
    %217 = vector.extract_strided_slice %204 {offsets = [0, 256], sizes = [8, 128], strides = [1, 1]} : vector<8x512xf32> to vector<8x128xf32>
    %218 = math.tanh %217 : vector<8x128xf32>
    %219 = vector.extract_strided_slice %204 {offsets = [0, 384], sizes = [8, 128], strides = [1, 1]} : vector<8x512xf32> to vector<8x128xf32>
    %220 = arith.negf %219 : vector<8x128xf32>
    %221 = math.exp %220 : vector<8x128xf32>
    %cst_76 = arith.constant 1.000000e+00 : f32
    %222 = vector.broadcast %cst_76 : f32 to vector<8x128xf32>
    %223 = arith.addf %222, %221 : vector<8x128xf32>
    %224 = arith.divf %222, %223 : vector<8x128xf32>
    %225 = arith.mulf %216, %196 : vector<8x128xf32>
    %226 = arith.mulf %210, %218 : vector<8x128xf32>
    %227 = arith.addf %225, %226 : vector<8x128xf32>
    %228 = math.tanh %227 : vector<8x128xf32>
    %229 = arith.mulf %224, %228 : vector<8x128xf32>
    %c6_i32 = arith.constant 6 : i32
    %c8_i32_77 = arith.constant 8 : i32
    %230 = arith.muli %c6_i32, %c8_i32_77 : i32
    %231 = tpu.assume_multiple %230, 8 : i32
    %232 = arith.index_cast %231 : i32 to index
    %c0_78 = arith.constant 0 : index
    %233 = vector.load %arg9[%232, %c0_78] : memref<128x512xf32, #tpu.memory_space<vmem>>, vector<8x512xf32>
    %cst_79 = arith.constant dense<0.000000e+00> : vector<8x512xf32>
    %234 = tpu.matmul %229, %41, %cst_79 {dimension_numbers = #tpu.dot_dimension_numbers<[1], [0], [0], [1], [0, 0, 1, 1], [], []>} : vector<8x128xf32>, vector<128x512xf32>, vector<8x512xf32> -> vector<8x512xf32>
    %235 = arith.addf %233, %234 : vector<8x512xf32>
    %236 = vector.extract_strided_slice %235 {offsets = [0, 0], sizes = [8, 128], strides = [1, 1]} : vector<8x512xf32> to vector<8x128xf32>
    %237 = arith.negf %236 : vector<8x128xf32>
    %238 = math.exp %237 : vector<8x128xf32>
    %cst_80 = arith.constant 1.000000e+00 : f32
    %239 = vector.broadcast %cst_80 : f32 to vector<8x128xf32>
    %240 = arith.addf %239, %238 : vector<8x128xf32>
    %241 = arith.divf %239, %240 : vector<8x128xf32>
    %242 = vector.extract_strided_slice %235 {offsets = [0, 128], sizes = [8, 128], strides = [1, 1]} : vector<8x512xf32> to vector<8x128xf32>
    %243 = arith.negf %242 : vector<8x128xf32>
    %244 = math.exp %243 : vector<8x128xf32>
    %cst_81 = arith.constant 1.000000e+00 : f32
    %245 = vector.broadcast %cst_81 : f32 to vector<8x128xf32>
    %246 = arith.addf %245, %244 : vector<8x128xf32>
    %247 = arith.divf %245, %246 : vector<8x128xf32>
    %248 = vector.extract_strided_slice %235 {offsets = [0, 256], sizes = [8, 128], strides = [1, 1]} : vector<8x512xf32> to vector<8x128xf32>
    %249 = math.tanh %248 : vector<8x128xf32>
    %250 = vector.extract_strided_slice %235 {offsets = [0, 384], sizes = [8, 128], strides = [1, 1]} : vector<8x512xf32> to vector<8x128xf32>
    %251 = arith.negf %250 : vector<8x128xf32>
    %252 = math.exp %251 : vector<8x128xf32>
    %cst_82 = arith.constant 1.000000e+00 : f32
    %253 = vector.broadcast %cst_82 : f32 to vector<8x128xf32>
    %254 = arith.addf %253, %252 : vector<8x128xf32>
    %255 = arith.divf %253, %254 : vector<8x128xf32>
    %256 = arith.mulf %247, %227 : vector<8x128xf32>
    %257 = arith.mulf %241, %249 : vector<8x128xf32>
    %258 = arith.addf %256, %257 : vector<8x128xf32>
    %259 = math.tanh %258 : vector<8x128xf32>
    %260 = arith.mulf %255, %259 : vector<8x128xf32>
    %c7_i32 = arith.constant 7 : i32
    %c8_i32_83 = arith.constant 8 : i32
    %261 = arith.muli %c7_i32, %c8_i32_83 : i32
    %262 = tpu.assume_multiple %261, 8 : i32
    %263 = arith.index_cast %262 : i32 to index
    %c0_84 = arith.constant 0 : index
    %264 = vector.load %arg9[%263, %c0_84] : memref<128x512xf32, #tpu.memory_space<vmem>>, vector<8x512xf32>
    %cst_85 = arith.constant dense<0.000000e+00> : vector<8x512xf32>
    %265 = tpu.matmul %260, %41, %cst_85 {dimension_numbers = #tpu.dot_dimension_numbers<[1], [0], [0], [1], [0, 0, 1, 1], [], []>} : vector<8x128xf32>, vector<128x512xf32>, vector<8x512xf32> -> vector<8x512xf32>
    %266 = arith.addf %264, %265 : vector<8x512xf32>
    %267 = vector.extract_strided_slice %266 {offsets = [0, 0], sizes = [8, 128], strides = [1, 1]} : vector<8x512xf32> to vector<8x128xf32>
    %268 = arith.negf %267 : vector<8x128xf32>
    %269 = math.exp %268 : vector<8x128xf32>
    %cst_86 = arith.constant 1.000000e+00 : f32
    %270 = vector.broadcast %cst_86 : f32 to vector<8x128xf32>
    %271 = arith.addf %270, %269 : vector<8x128xf32>
    %272 = arith.divf %270, %271 : vector<8x128xf32>
    %273 = vector.extract_strided_slice %266 {offsets = [0, 128], sizes = [8, 128], strides = [1, 1]} : vector<8x512xf32> to vector<8x128xf32>
    %274 = arith.negf %273 : vector<8x128xf32>
    %275 = math.exp %274 : vector<8x128xf32>
    %cst_87 = arith.constant 1.000000e+00 : f32
    %276 = vector.broadcast %cst_87 : f32 to vector<8x128xf32>
    %277 = arith.addf %276, %275 : vector<8x128xf32>
    %278 = arith.divf %276, %277 : vector<8x128xf32>
    %279 = vector.extract_strided_slice %266 {offsets = [0, 256], sizes = [8, 128], strides = [1, 1]} : vector<8x512xf32> to vector<8x128xf32>
    %280 = math.tanh %279 : vector<8x128xf32>
    %281 = vector.extract_strided_slice %266 {offsets = [0, 384], sizes = [8, 128], strides = [1, 1]} : vector<8x512xf32> to vector<8x128xf32>
    %282 = arith.negf %281 : vector<8x128xf32>
    %283 = math.exp %282 : vector<8x128xf32>
    %cst_88 = arith.constant 1.000000e+00 : f32
    %284 = vector.broadcast %cst_88 : f32 to vector<8x128xf32>
    %285 = arith.addf %284, %283 : vector<8x128xf32>
    %286 = arith.divf %284, %285 : vector<8x128xf32>
    %287 = arith.mulf %278, %258 : vector<8x128xf32>
    %288 = arith.mulf %272, %280 : vector<8x128xf32>
    %289 = arith.addf %287, %288 : vector<8x128xf32>
    %290 = math.tanh %289 : vector<8x128xf32>
    %291 = arith.mulf %286, %290 : vector<8x128xf32>
    %c8_i32_89 = arith.constant 8 : i32
    %c8_i32_90 = arith.constant 8 : i32
    %292 = arith.muli %c8_i32_89, %c8_i32_90 : i32
    %293 = tpu.assume_multiple %292, 8 : i32
    %294 = arith.index_cast %293 : i32 to index
    %c0_91 = arith.constant 0 : index
    %295 = vector.load %arg9[%294, %c0_91] : memref<128x512xf32, #tpu.memory_space<vmem>>, vector<8x512xf32>
    %cst_92 = arith.constant dense<0.000000e+00> : vector<8x512xf32>
    %296 = tpu.matmul %291, %41, %cst_92 {dimension_numbers = #tpu.dot_dimension_numbers<[1], [0], [0], [1], [0, 0, 1, 1], [], []>} : vector<8x128xf32>, vector<128x512xf32>, vector<8x512xf32> -> vector<8x512xf32>
    %297 = arith.addf %295, %296 : vector<8x512xf32>
    %298 = vector.extract_strided_slice %297 {offsets = [0, 0], sizes = [8, 128], strides = [1, 1]} : vector<8x512xf32> to vector<8x128xf32>
    %299 = arith.negf %298 : vector<8x128xf32>
    %300 = math.exp %299 : vector<8x128xf32>
    %cst_93 = arith.constant 1.000000e+00 : f32
    %301 = vector.broadcast %cst_93 : f32 to vector<8x128xf32>
    %302 = arith.addf %301, %300 : vector<8x128xf32>
    %303 = arith.divf %301, %302 : vector<8x128xf32>
    %304 = vector.extract_strided_slice %297 {offsets = [0, 128], sizes = [8, 128], strides = [1, 1]} : vector<8x512xf32> to vector<8x128xf32>
    %305 = arith.negf %304 : vector<8x128xf32>
    %306 = math.exp %305 : vector<8x128xf32>
    %cst_94 = arith.constant 1.000000e+00 : f32
    %307 = vector.broadcast %cst_94 : f32 to vector<8x128xf32>
    %308 = arith.addf %307, %306 : vector<8x128xf32>
    %309 = arith.divf %307, %308 : vector<8x128xf32>
    %310 = vector.extract_strided_slice %297 {offsets = [0, 256], sizes = [8, 128], strides = [1, 1]} : vector<8x512xf32> to vector<8x128xf32>
    %311 = math.tanh %310 : vector<8x128xf32>
    %312 = vector.extract_strided_slice %297 {offsets = [0, 384], sizes = [8, 128], strides = [1, 1]} : vector<8x512xf32> to vector<8x128xf32>
    %313 = arith.negf %312 : vector<8x128xf32>
    %314 = math.exp %313 : vector<8x128xf32>
    %cst_95 = arith.constant 1.000000e+00 : f32
    %315 = vector.broadcast %cst_95 : f32 to vector<8x128xf32>
    %316 = arith.addf %315, %314 : vector<8x128xf32>
    %317 = arith.divf %315, %316 : vector<8x128xf32>
    %318 = arith.mulf %309, %289 : vector<8x128xf32>
    %319 = arith.mulf %303, %311 : vector<8x128xf32>
    %320 = arith.addf %318, %319 : vector<8x128xf32>
    %321 = math.tanh %320 : vector<8x128xf32>
    %322 = arith.mulf %317, %321 : vector<8x128xf32>
    %c9_i32 = arith.constant 9 : i32
    %c8_i32_96 = arith.constant 8 : i32
    %323 = arith.muli %c9_i32, %c8_i32_96 : i32
    %324 = tpu.assume_multiple %323, 8 : i32
    %325 = arith.index_cast %324 : i32 to index
    %c0_97 = arith.constant 0 : index
    %326 = vector.load %arg9[%325, %c0_97] : memref<128x512xf32, #tpu.memory_space<vmem>>, vector<8x512xf32>
    %cst_98 = arith.constant dense<0.000000e+00> : vector<8x512xf32>
    %327 = tpu.matmul %322, %41, %cst_98 {dimension_numbers = #tpu.dot_dimension_numbers<[1], [0], [0], [1], [0, 0, 1, 1], [], []>} : vector<8x128xf32>, vector<128x512xf32>, vector<8x512xf32> -> vector<8x512xf32>
    %328 = arith.addf %326, %327 : vector<8x512xf32>
    %329 = vector.extract_strided_slice %328 {offsets = [0, 0], sizes = [8, 128], strides = [1, 1]} : vector<8x512xf32> to vector<8x128xf32>
    %330 = arith.negf %329 : vector<8x128xf32>
    %331 = math.exp %330 : vector<8x128xf32>
    %cst_99 = arith.constant 1.000000e+00 : f32
    %332 = vector.broadcast %cst_99 : f32 to vector<8x128xf32>
    %333 = arith.addf %332, %331 : vector<8x128xf32>
    %334 = arith.divf %332, %333 : vector<8x128xf32>
    %335 = vector.extract_strided_slice %328 {offsets = [0, 128], sizes = [8, 128], strides = [1, 1]} : vector<8x512xf32> to vector<8x128xf32>
    %336 = arith.negf %335 : vector<8x128xf32>
    %337 = math.exp %336 : vector<8x128xf32>
    %cst_100 = arith.constant 1.000000e+00 : f32
    %338 = vector.broadcast %cst_100 : f32 to vector<8x128xf32>
    %339 = arith.addf %338, %337 : vector<8x128xf32>
    %340 = arith.divf %338, %339 : vector<8x128xf32>
    %341 = vector.extract_strided_slice %328 {offsets = [0, 256], sizes = [8, 128], strides = [1, 1]} : vector<8x512xf32> to vector<8x128xf32>
    %342 = math.tanh %341 : vector<8x128xf32>
    %343 = vector.extract_strided_slice %328 {offsets = [0, 384], sizes = [8, 128], strides = [1, 1]} : vector<8x512xf32> to vector<8x128xf32>
    %344 = arith.negf %343 : vector<8x128xf32>
    %345 = math.exp %344 : vector<8x128xf32>
    %cst_101 = arith.constant 1.000000e+00 : f32
    %346 = vector.broadcast %cst_101 : f32 to vector<8x128xf32>
    %347 = arith.addf %346, %345 : vector<8x128xf32>
    %348 = arith.divf %346, %347 : vector<8x128xf32>
    %349 = arith.mulf %340, %320 : vector<8x128xf32>
    %350 = arith.mulf %334, %342 : vector<8x128xf32>
    %351 = arith.addf %349, %350 : vector<8x128xf32>
    %352 = math.tanh %351 : vector<8x128xf32>
    %353 = arith.mulf %348, %352 : vector<8x128xf32>
    %c10_i32 = arith.constant 10 : i32
    %c8_i32_102 = arith.constant 8 : i32
    %354 = arith.muli %c10_i32, %c8_i32_102 : i32
    %355 = tpu.assume_multiple %354, 8 : i32
    %356 = arith.index_cast %355 : i32 to index
    %c0_103 = arith.constant 0 : index
    %357 = vector.load %arg9[%356, %c0_103] : memref<128x512xf32, #tpu.memory_space<vmem>>, vector<8x512xf32>
    %cst_104 = arith.constant dense<0.000000e+00> : vector<8x512xf32>
    %358 = tpu.matmul %353, %41, %cst_104 {dimension_numbers = #tpu.dot_dimension_numbers<[1], [0], [0], [1], [0, 0, 1, 1], [], []>} : vector<8x128xf32>, vector<128x512xf32>, vector<8x512xf32> -> vector<8x512xf32>
    %359 = arith.addf %357, %358 : vector<8x512xf32>
    %360 = vector.extract_strided_slice %359 {offsets = [0, 0], sizes = [8, 128], strides = [1, 1]} : vector<8x512xf32> to vector<8x128xf32>
    %361 = arith.negf %360 : vector<8x128xf32>
    %362 = math.exp %361 : vector<8x128xf32>
    %cst_105 = arith.constant 1.000000e+00 : f32
    %363 = vector.broadcast %cst_105 : f32 to vector<8x128xf32>
    %364 = arith.addf %363, %362 : vector<8x128xf32>
    %365 = arith.divf %363, %364 : vector<8x128xf32>
    %366 = vector.extract_strided_slice %359 {offsets = [0, 128], sizes = [8, 128], strides = [1, 1]} : vector<8x512xf32> to vector<8x128xf32>
    %367 = arith.negf %366 : vector<8x128xf32>
    %368 = math.exp %367 : vector<8x128xf32>
    %cst_106 = arith.constant 1.000000e+00 : f32
    %369 = vector.broadcast %cst_106 : f32 to vector<8x128xf32>
    %370 = arith.addf %369, %368 : vector<8x128xf32>
    %371 = arith.divf %369, %370 : vector<8x128xf32>
    %372 = vector.extract_strided_slice %359 {offsets = [0, 256], sizes = [8, 128], strides = [1, 1]} : vector<8x512xf32> to vector<8x128xf32>
    %373 = math.tanh %372 : vector<8x128xf32>
    %374 = vector.extract_strided_slice %359 {offsets = [0, 384], sizes = [8, 128], strides = [1, 1]} : vector<8x512xf32> to vector<8x128xf32>
    %375 = arith.negf %374 : vector<8x128xf32>
    %376 = math.exp %375 : vector<8x128xf32>
    %cst_107 = arith.constant 1.000000e+00 : f32
    %377 = vector.broadcast %cst_107 : f32 to vector<8x128xf32>
    %378 = arith.addf %377, %376 : vector<8x128xf32>
    %379 = arith.divf %377, %378 : vector<8x128xf32>
    %380 = arith.mulf %371, %351 : vector<8x128xf32>
    %381 = arith.mulf %365, %373 : vector<8x128xf32>
    %382 = arith.addf %380, %381 : vector<8x128xf32>
    %383 = math.tanh %382 : vector<8x128xf32>
    %384 = arith.mulf %379, %383 : vector<8x128xf32>
    %c11_i32 = arith.constant 11 : i32
    %c8_i32_108 = arith.constant 8 : i32
    %385 = arith.muli %c11_i32, %c8_i32_108 : i32
    %386 = tpu.assume_multiple %385, 8 : i32
    %387 = arith.index_cast %386 : i32 to index
    %c0_109 = arith.constant 0 : index
    %388 = vector.load %arg9[%387, %c0_109] : memref<128x512xf32, #tpu.memory_space<vmem>>, vector<8x512xf32>
    %cst_110 = arith.constant dense<0.000000e+00> : vector<8x512xf32>
    %389 = tpu.matmul %384, %41, %cst_110 {dimension_numbers = #tpu.dot_dimension_numbers<[1], [0], [0], [1], [0, 0, 1, 1], [], []>} : vector<8x128xf32>, vector<128x512xf32>, vector<8x512xf32> -> vector<8x512xf32>
    %390 = arith.addf %388, %389 : vector<8x512xf32>
    %391 = vector.extract_strided_slice %390 {offsets = [0, 0], sizes = [8, 128], strides = [1, 1]} : vector<8x512xf32> to vector<8x128xf32>
    %392 = arith.negf %391 : vector<8x128xf32>
    %393 = math.exp %392 : vector<8x128xf32>
    %cst_111 = arith.constant 1.000000e+00 : f32
    %394 = vector.broadcast %cst_111 : f32 to vector<8x128xf32>
    %395 = arith.addf %394, %393 : vector<8x128xf32>
    %396 = arith.divf %394, %395 : vector<8x128xf32>
    %397 = vector.extract_strided_slice %390 {offsets = [0, 128], sizes = [8, 128], strides = [1, 1]} : vector<8x512xf32> to vector<8x128xf32>
    %398 = arith.negf %397 : vector<8x128xf32>
    %399 = math.exp %398 : vector<8x128xf32>
    %cst_112 = arith.constant 1.000000e+00 : f32
    %400 = vector.broadcast %cst_112 : f32 to vector<8x128xf32>
    %401 = arith.addf %400, %399 : vector<8x128xf32>
    %402 = arith.divf %400, %401 : vector<8x128xf32>
    %403 = vector.extract_strided_slice %390 {offsets = [0, 256], sizes = [8, 128], strides = [1, 1]} : vector<8x512xf32> to vector<8x128xf32>
    %404 = math.tanh %403 : vector<8x128xf32>
    %405 = vector.extract_strided_slice %390 {offsets = [0, 384], sizes = [8, 128], strides = [1, 1]} : vector<8x512xf32> to vector<8x128xf32>
    %406 = arith.negf %405 : vector<8x128xf32>
    %407 = math.exp %406 : vector<8x128xf32>
    %cst_113 = arith.constant 1.000000e+00 : f32
    %408 = vector.broadcast %cst_113 : f32 to vector<8x128xf32>
    %409 = arith.addf %408, %407 : vector<8x128xf32>
    %410 = arith.divf %408, %409 : vector<8x128xf32>
    %411 = arith.mulf %402, %382 : vector<8x128xf32>
    %412 = arith.mulf %396, %404 : vector<8x128xf32>
    %413 = arith.addf %411, %412 : vector<8x128xf32>
    %414 = math.tanh %413 : vector<8x128xf32>
    %415 = arith.mulf %410, %414 : vector<8x128xf32>
    %c12_i32 = arith.constant 12 : i32
    %c8_i32_114 = arith.constant 8 : i32
    %416 = arith.muli %c12_i32, %c8_i32_114 : i32
    %417 = tpu.assume_multiple %416, 8 : i32
    %418 = arith.index_cast %417 : i32 to index
    %c0_115 = arith.constant 0 : index
    %419 = vector.load %arg9[%418, %c0_115] : memref<128x512xf32, #tpu.memory_space<vmem>>, vector<8x512xf32>
    %cst_116 = arith.constant dense<0.000000e+00> : vector<8x512xf32>
    %420 = tpu.matmul %415, %41, %cst_116 {dimension_numbers = #tpu.dot_dimension_numbers<[1], [0], [0], [1], [0, 0, 1, 1], [], []>} : vector<8x128xf32>, vector<128x512xf32>, vector<8x512xf32> -> vector<8x512xf32>
    %421 = arith.addf %419, %420 : vector<8x512xf32>
    %422 = vector.extract_strided_slice %421 {offsets = [0, 0], sizes = [8, 128], strides = [1, 1]} : vector<8x512xf32> to vector<8x128xf32>
    %423 = arith.negf %422 : vector<8x128xf32>
    %424 = math.exp %423 : vector<8x128xf32>
    %cst_117 = arith.constant 1.000000e+00 : f32
    %425 = vector.broadcast %cst_117 : f32 to vector<8x128xf32>
    %426 = arith.addf %425, %424 : vector<8x128xf32>
    %427 = arith.divf %425, %426 : vector<8x128xf32>
    %428 = vector.extract_strided_slice %421 {offsets = [0, 128], sizes = [8, 128], strides = [1, 1]} : vector<8x512xf32> to vector<8x128xf32>
    %429 = arith.negf %428 : vector<8x128xf32>
    %430 = math.exp %429 : vector<8x128xf32>
    %cst_118 = arith.constant 1.000000e+00 : f32
    %431 = vector.broadcast %cst_118 : f32 to vector<8x128xf32>
    %432 = arith.addf %431, %430 : vector<8x128xf32>
    %433 = arith.divf %431, %432 : vector<8x128xf32>
    %434 = vector.extract_strided_slice %421 {offsets = [0, 256], sizes = [8, 128], strides = [1, 1]} : vector<8x512xf32> to vector<8x128xf32>
    %435 = math.tanh %434 : vector<8x128xf32>
    %436 = vector.extract_strided_slice %421 {offsets = [0, 384], sizes = [8, 128], strides = [1, 1]} : vector<8x512xf32> to vector<8x128xf32>
    %437 = arith.negf %436 : vector<8x128xf32>
    %438 = math.exp %437 : vector<8x128xf32>
    %cst_119 = arith.constant 1.000000e+00 : f32
    %439 = vector.broadcast %cst_119 : f32 to vector<8x128xf32>
    %440 = arith.addf %439, %438 : vector<8x128xf32>
    %441 = arith.divf %439, %440 : vector<8x128xf32>
    %442 = arith.mulf %433, %413 : vector<8x128xf32>
    %443 = arith.mulf %427, %435 : vector<8x128xf32>
    %444 = arith.addf %442, %443 : vector<8x128xf32>
    %445 = math.tanh %444 : vector<8x128xf32>
    %446 = arith.mulf %441, %445 : vector<8x128xf32>
    %c13_i32 = arith.constant 13 : i32
    %c8_i32_120 = arith.constant 8 : i32
    %447 = arith.muli %c13_i32, %c8_i32_120 : i32
    %448 = tpu.assume_multiple %447, 8 : i32
    %449 = arith.index_cast %448 : i32 to index
    %c0_121 = arith.constant 0 : index
    %450 = vector.load %arg9[%449, %c0_121] : memref<128x512xf32, #tpu.memory_space<vmem>>, vector<8x512xf32>
    %cst_122 = arith.constant dense<0.000000e+00> : vector<8x512xf32>
    %451 = tpu.matmul %446, %41, %cst_122 {dimension_numbers = #tpu.dot_dimension_numbers<[1], [0], [0], [1], [0, 0, 1, 1], [], []>} : vector<8x128xf32>, vector<128x512xf32>, vector<8x512xf32> -> vector<8x512xf32>
    %452 = arith.addf %450, %451 : vector<8x512xf32>
    %453 = vector.extract_strided_slice %452 {offsets = [0, 0], sizes = [8, 128], strides = [1, 1]} : vector<8x512xf32> to vector<8x128xf32>
    %454 = arith.negf %453 : vector<8x128xf32>
    %455 = math.exp %454 : vector<8x128xf32>
    %cst_123 = arith.constant 1.000000e+00 : f32
    %456 = vector.broadcast %cst_123 : f32 to vector<8x128xf32>
    %457 = arith.addf %456, %455 : vector<8x128xf32>
    %458 = arith.divf %456, %457 : vector<8x128xf32>
    %459 = vector.extract_strided_slice %452 {offsets = [0, 128], sizes = [8, 128], strides = [1, 1]} : vector<8x512xf32> to vector<8x128xf32>
    %460 = arith.negf %459 : vector<8x128xf32>
    %461 = math.exp %460 : vector<8x128xf32>
    %cst_124 = arith.constant 1.000000e+00 : f32
    %462 = vector.broadcast %cst_124 : f32 to vector<8x128xf32>
    %463 = arith.addf %462, %461 : vector<8x128xf32>
    %464 = arith.divf %462, %463 : vector<8x128xf32>
    %465 = vector.extract_strided_slice %452 {offsets = [0, 256], sizes = [8, 128], strides = [1, 1]} : vector<8x512xf32> to vector<8x128xf32>
    %466 = math.tanh %465 : vector<8x128xf32>
    %467 = vector.extract_strided_slice %452 {offsets = [0, 384], sizes = [8, 128], strides = [1, 1]} : vector<8x512xf32> to vector<8x128xf32>
    %468 = arith.negf %467 : vector<8x128xf32>
    %469 = math.exp %468 : vector<8x128xf32>
    %cst_125 = arith.constant 1.000000e+00 : f32
    %470 = vector.broadcast %cst_125 : f32 to vector<8x128xf32>
    %471 = arith.addf %470, %469 : vector<8x128xf32>
    %472 = arith.divf %470, %471 : vector<8x128xf32>
    %473 = arith.mulf %464, %444 : vector<8x128xf32>
    %474 = arith.mulf %458, %466 : vector<8x128xf32>
    %475 = arith.addf %473, %474 : vector<8x128xf32>
    %476 = math.tanh %475 : vector<8x128xf32>
    %477 = arith.mulf %472, %476 : vector<8x128xf32>
    %c14_i32 = arith.constant 14 : i32
    %c8_i32_126 = arith.constant 8 : i32
    %478 = arith.muli %c14_i32, %c8_i32_126 : i32
    %479 = tpu.assume_multiple %478, 8 : i32
    %480 = arith.index_cast %479 : i32 to index
    %c0_127 = arith.constant 0 : index
    %481 = vector.load %arg9[%480, %c0_127] : memref<128x512xf32, #tpu.memory_space<vmem>>, vector<8x512xf32>
    %cst_128 = arith.constant dense<0.000000e+00> : vector<8x512xf32>
    %482 = tpu.matmul %477, %41, %cst_128 {dimension_numbers = #tpu.dot_dimension_numbers<[1], [0], [0], [1], [0, 0, 1, 1], [], []>} : vector<8x128xf32>, vector<128x512xf32>, vector<8x512xf32> -> vector<8x512xf32>
    %483 = arith.addf %481, %482 : vector<8x512xf32>
    %484 = vector.extract_strided_slice %483 {offsets = [0, 0], sizes = [8, 128], strides = [1, 1]} : vector<8x512xf32> to vector<8x128xf32>
    %485 = arith.negf %484 : vector<8x128xf32>
    %486 = math.exp %485 : vector<8x128xf32>
    %cst_129 = arith.constant 1.000000e+00 : f32
    %487 = vector.broadcast %cst_129 : f32 to vector<8x128xf32>
    %488 = arith.addf %487, %486 : vector<8x128xf32>
    %489 = arith.divf %487, %488 : vector<8x128xf32>
    %490 = vector.extract_strided_slice %483 {offsets = [0, 128], sizes = [8, 128], strides = [1, 1]} : vector<8x512xf32> to vector<8x128xf32>
    %491 = arith.negf %490 : vector<8x128xf32>
    %492 = math.exp %491 : vector<8x128xf32>
    %cst_130 = arith.constant 1.000000e+00 : f32
    %493 = vector.broadcast %cst_130 : f32 to vector<8x128xf32>
    %494 = arith.addf %493, %492 : vector<8x128xf32>
    %495 = arith.divf %493, %494 : vector<8x128xf32>
    %496 = vector.extract_strided_slice %483 {offsets = [0, 256], sizes = [8, 128], strides = [1, 1]} : vector<8x512xf32> to vector<8x128xf32>
    %497 = math.tanh %496 : vector<8x128xf32>
    %498 = vector.extract_strided_slice %483 {offsets = [0, 384], sizes = [8, 128], strides = [1, 1]} : vector<8x512xf32> to vector<8x128xf32>
    %499 = arith.negf %498 : vector<8x128xf32>
    %500 = math.exp %499 : vector<8x128xf32>
    %cst_131 = arith.constant 1.000000e+00 : f32
    %501 = vector.broadcast %cst_131 : f32 to vector<8x128xf32>
    %502 = arith.addf %501, %500 : vector<8x128xf32>
    %503 = arith.divf %501, %502 : vector<8x128xf32>
    %504 = arith.mulf %495, %475 : vector<8x128xf32>
    %505 = arith.mulf %489, %497 : vector<8x128xf32>
    %506 = arith.addf %504, %505 : vector<8x128xf32>
    %507 = math.tanh %506 : vector<8x128xf32>
    %508 = arith.mulf %503, %507 : vector<8x128xf32>
    %c15_i32 = arith.constant 15 : i32
    %c8_i32_132 = arith.constant 8 : i32
    %509 = arith.muli %c15_i32, %c8_i32_132 : i32
    %510 = tpu.assume_multiple %509, 8 : i32
    %511 = arith.index_cast %510 : i32 to index
    %c0_133 = arith.constant 0 : index
    %512 = vector.load %arg9[%511, %c0_133] : memref<128x512xf32, #tpu.memory_space<vmem>>, vector<8x512xf32>
    %cst_134 = arith.constant dense<0.000000e+00> : vector<8x512xf32>
    %513 = tpu.matmul %508, %41, %cst_134 {dimension_numbers = #tpu.dot_dimension_numbers<[1], [0], [0], [1], [0, 0, 1, 1], [], []>} : vector<8x128xf32>, vector<128x512xf32>, vector<8x512xf32> -> vector<8x512xf32>
    %514 = arith.addf %512, %513 : vector<8x512xf32>
    %515 = vector.extract_strided_slice %514 {offsets = [0, 0], sizes = [8, 128], strides = [1, 1]} : vector<8x512xf32> to vector<8x128xf32>
    %516 = arith.negf %515 : vector<8x128xf32>
    %517 = math.exp %516 : vector<8x128xf32>
    %cst_135 = arith.constant 1.000000e+00 : f32
    %518 = vector.broadcast %cst_135 : f32 to vector<8x128xf32>
    %519 = arith.addf %518, %517 : vector<8x128xf32>
    %520 = arith.divf %518, %519 : vector<8x128xf32>
    %521 = vector.extract_strided_slice %514 {offsets = [0, 128], sizes = [8, 128], strides = [1, 1]} : vector<8x512xf32> to vector<8x128xf32>
    %522 = arith.negf %521 : vector<8x128xf32>
    %523 = math.exp %522 : vector<8x128xf32>
    %cst_136 = arith.constant 1.000000e+00 : f32
    %524 = vector.broadcast %cst_136 : f32 to vector<8x128xf32>
    %525 = arith.addf %524, %523 : vector<8x128xf32>
    %526 = arith.divf %524, %525 : vector<8x128xf32>
    %527 = vector.extract_strided_slice %514 {offsets = [0, 256], sizes = [8, 128], strides = [1, 1]} : vector<8x512xf32> to vector<8x128xf32>
    %528 = math.tanh %527 : vector<8x128xf32>
    %529 = vector.extract_strided_slice %514 {offsets = [0, 384], sizes = [8, 128], strides = [1, 1]} : vector<8x512xf32> to vector<8x128xf32>
    %530 = arith.negf %529 : vector<8x128xf32>
    %531 = math.exp %530 : vector<8x128xf32>
    %cst_137 = arith.constant 1.000000e+00 : f32
    %532 = vector.broadcast %cst_137 : f32 to vector<8x128xf32>
    %533 = arith.addf %532, %531 : vector<8x128xf32>
    %534 = arith.divf %532, %533 : vector<8x128xf32>
    %535 = arith.mulf %526, %506 : vector<8x128xf32>
    %536 = arith.mulf %520, %528 : vector<8x128xf32>
    %537 = arith.addf %535, %536 : vector<8x128xf32>
    %538 = math.tanh %537 : vector<8x128xf32>
    %539 = arith.mulf %534, %538 : vector<8x128xf32>
    %c16_i32 = arith.constant 16 : i32
    %c0_138 = arith.constant 0 : index
    %c0_139 = arith.constant 0 : index
    %540 = vector.load %arg7[%c0_138, %c0_139] : memref<8x128xf32, #tpu.memory_space<vmem>>, vector<8x128xf32>
    tpu.vector_store %arg7[%c0_138, %c0_139], %539 {strides = array<i32>} : memref<8x128xf32, #tpu.memory_space<vmem>>, vector<8x128xf32>,
    return
  }
  func.func @transform_0(%arg0: i32) -> (i32, i32) {
    %c0_i32 = arith.constant 0 : i32
    %c0_i32_0 = arith.constant 0 : i32
    %c0_i32_1 = arith.constant 0 : i32
    return %c0_i32, %c0_i32_0 : i32, i32
  }
  func.func @transform_1(%arg0: i32) -> (i32, i32, i32) {
    %c0_i32 = arith.constant 0 : i32
    %c0_i32_0 = arith.constant 0 : i32
    %c0_i32_1 = arith.constant 0 : i32
    %c0_i32_2 = arith.constant 0 : i32
    return %c0_i32, %c0_i32_0, %c0_i32_1 : i32, i32, i32
  }
  func.func @transform_2(%arg0: i32) -> (i32, i32) {
    %c0_i32 = arith.constant 0 : i32
    %c0_i32_0 = arith.constant 0 : i32
    %c0_i32_1 = arith.constant 0 : i32
    return %c0_i32, %c0_i32_0 : i32, i32
  }
  func.func @transform_3(%arg0: i32) -> (i32, i32) {
    %c0_i32 = arith.constant 0 : i32
    %c0_i32_0 = arith.constant 0 : i32
    %c0_i32_1 = arith.constant 0 : i32
    return %c0_i32, %c0_i32_0 : i32, i32
  }
  func.func @transform_4(%arg0: i32) -> (i32, i32) {
    %c0_i32 = arith.constant 0 : i32
    %c0_i32_0 = arith.constant 0 : i32
    %c0_i32_1 = arith.constant 0 : i32
    return %c0_i32, %c0_i32_0 : i32, i32
  }
  func.func @transform_5(%arg0: i32) -> (i32, i32) {
    %c0_i32 = arith.constant 0 : i32
    %c0_i32_0 = arith.constant 0 : i32
    %c0_i32_1 = arith.constant 0 : i32
    return %c0_i32, %c0_i32_0 : i32, i32
  }
  func.func @transform_6(%arg0: i32) -> (i32, i32) {
    %c0_i32 = arith.constant 0 : i32
    %c0_i32_0 = arith.constant 0 : i32
    %c0_i32_1 = arith.constant 0 : i32
    return %c0_i32, %c0_i32_0 : i32, i32
  }
}

</mosaic_0001>

<bundles_post_ra>
// kernel: cnn_lstm_encoder.1
= control target key start
LH: loop header
LB: loop body
LE: loop exit
PB: predicated region body
PF: predicated region fallthrough
CT: control target
= control target key end

     0   :  { %vm23_vm0 = vcmask 130048   ;;  %v7588_v3 = vmov 0.0   ;;  %vm785_vm1 = vcmask 261120   ;;  %s7581_s1 = inlined_call_operand.vmem [shape: f32[5,16,32], index: 1, kind: input, shape index: {}]   ;;  %s7582_s0 = inlined_call_operand.vmem [shape: f32[128,16], index: 0, kind: input, shape index: {}]   ;;  %s7583_s3 = inlined_call_operand.vmem [shape: f32[32,512], index: 3, kind: input, shape index: {}]   ;;  %s7584_s2 = inlined_call_operand.vmem [shape: f32[1,32], index: 2, kind: input, shape index: {}]   ;;  %s7585_s4 = inlined_call_operand.vmem [shape: f32[128,512], index: 4, kind: input, shape index: {}]   ;;  %s7586_s5 = inlined_call_operand.vmem [shape: f32[1,512], index: 5, kind: input, shape index: {}]   ;;  %s7587_s6 = inlined_call_operand.vmem [shape: f32[8,128], index: 6, kind: output, shape index: {}]  }
   0x1   :  { %v3707_v0 = vld [vmem:[%s7581_s1 + $0x18] sm:$0xff]  ;;  %v93_v1 = vld [vmem:[%s7581_s1 + $0x8] sm:$0xff]  ;;  %25 = vst.msk [vmem:[#allocation2 + $0x8] sm:$0xff] %vm23_vm0, %v7588_v3  ;;  %v3706_v4 = vld [vmem:[%s7581_s1 + $0x10] sm:$0xff] }
   0x2   :  { %v3741_v2 = vld [vmem:[%s7581_s1 + $0x28] sm:$0xff]  ;;  %160 = vmatpush.msra.mxu0 %v3707_v0  ;;  %228 = vmatpush.msra.mxu1 %v93_v1  ;;  %v92_v5 = vld [vmem:[%s7581_s1] sm:$0xff]  ;;  %24 = vst.msk [vmem:[#allocation2] sm:$0xff] %vm23_vm0, %v7588_v3  ;;  %v3759_v7 = vld [vmem:[%s7581_s1 + $0x38] sm:$0xff] }
   0x3   :  { %v3740_v6 = vld [vmem:[%s7581_s1 + $0x20] sm:$0xff]  ;;  %360 = vmatpush.msra.mxu2 %v3741_v2  ;;  %26 = vst.msk [vmem:[#allocation2 + $0x10] sm:$0xff] %vm23_vm0, %v7588_v3  ;;  %v3777_v8 = vld [vmem:[%s7581_s1 + $0x48] sm:$0xff]  ;;  %v3758_v9 = vld [vmem:[%s7581_s1 + $0x30] sm:$0xff]  ;;  %508 = vmatpush.msra.mxu3 %v3759_v7 }
   0x4   :  { %161 = vmatpush.msra.mxu0 %v3706_v4  ;;  %229 = vmatpush.msra.mxu1 %v92_v5  ;;  %27 = vst.msk [vmem:[#allocation2 + $0x18] sm:$0xff] %vm23_vm0, %v7588_v3  ;;  %v44_v12 = vld [vmem:[%s7582_s0] sm:$0xff]  ;;  %v45_v13 = vld [vmem:[%s7582_s0 + $0x8] sm:$0xff]  ;;  %v46_v14 = vld [vmem:[%s7582_s0 + $0x10] sm:$0xff] }
   0x5   :  { %28 = vst.msk [vmem:[#allocation2 + $0x20] sm:$0xff] %vm23_vm0, %v7588_v3  ;;  %361 = vmatpush.msra.mxu2 %v3740_v6  ;;  %509 = vmatpush.msra.mxu3 %v3758_v9  ;;  %v47_v15 = vld [vmem:[%s7582_s0 + $0x18] sm:$0xff]  ;;  %v48_v16 = vld [vmem:[%s7582_s0 + $0x20] sm:$0xff]  ;;  %v49_v17 = vld [vmem:[%s7582_s0 + $0x28] sm:$0xff] }
   0x6   :  { %29 = vst.msk [vmem:[#allocation2 + $0x28] sm:$0xff] %vm23_vm0, %v7588_v3  ;;  %656 = vmatpush.msrb.mxu0 %v3777_v8  ;;  %v50_v20 = vld [vmem:[%s7582_s0 + $0x30] sm:$0xff]  ;;  %v51_v22 = vld [vmem:[%s7582_s0 + $0x38] sm:$0xff]  ;;  %v52_v24 = vld [vmem:[%s7582_s0 + $0x40] sm:$0xff] }
   0x7   :  { %30 = vst.msk [vmem:[#allocation2 + $0x30] sm:$0xff] %vm23_vm0, %v7588_v3  ;;  %v3776_v26 = vld [vmem:[%s7581_s1 + $0x40] sm:$0xff]  ;;  %v53_v27 = vld [vmem:[%s7582_s0 + $0x48] sm:$0xff]  ;;  %v54_v29 = vld [vmem:[%s7582_s0 + $0x50] sm:$0xff] }
   0x8   :  { %v77_v10 = vld [vmem:[#allocation2 + $0x8] sm:$0xff]  ;;  %31 = vst.msk [vmem:[#allocation2 + $0x38] sm:$0xff] %vm23_vm0, %v7588_v3  ;;  %657 = vmatpush.msrb.mxu0 %v3776_v26  ;;  %v55_v31 = vld [vmem:[%s7582_s0 + $0x58] sm:$0xff]  ;;  %v56_v33 = vld [vmem:[%s7582_s0 + $0x60] sm:$0xff] }
   0x9   :  { %3708 = vmatmul.msk.f32.vlgmr.msra.gmra.mxu0 %vm23_vm0, %v77_v10  ;;  %32 = vst.msk [vmem:[#allocation2 + $0x40] sm:$0xff] %vm23_vm0, %v7588_v3  ;;  %v76_v11 = vld [vmem:[#allocation2] sm:$0xff]  ;;  %v57_v35 = vld [vmem:[%s7582_s0 + $0x68] sm:$0xff]  ;;  %v58_v37 = vld [vmem:[%s7582_s0 + $0x70] sm:$0xff] }
   0xa   :  { %33 = vst.msk [vmem:[#allocation2 + $0x48] sm:$0xff] %vm23_vm0, %v7588_v3  ;;  %3724 = vmatmul.msk.f32.vlgmr.msra.gmra.mxu1 %vm23_vm0, %v76_v11  ;;  %v59_v39 = vld [vmem:[%s7582_s0 + $0x78] sm:$0xff]  ;;  %v772_v43 = vld [vmem:[%s7583_s3 + $0x68] sm:$0xff]  ;;  %v771_v45 = vld [vmem:[%s7583_s3 + $0x60] sm:$0xff] }
   0xb   :  { %34 = vst.msk [vmem:[#allocation2 + $0x50] sm:$0xff] %vm23_vm0, %v7588_v3  ;;  %911 = vmatpush.msrb.mxu2 %v772_v43  ;;  %846 = vmatpush.msrb.mxu1 %v771_v45  ;;  %v773_v49 = vld [vmem:[%s7583_s3 + $0x70] sm:$0xff]  ;;  %v768_v51 = vld [vmem:[%s7583_s3 + $0x48] sm:$0xff]  ;;  %v767_v53 = vld [vmem:[%s7583_s3 + $0x40] sm:$0xff] }
   0xc   :  { %35 = vst.msk [vmem:[#allocation2 + $0x58] sm:$0xff] %vm23_vm0, %v7588_v3  ;;  %976 = vmatpush.msrb.mxu3 %v773_v49  ;;  %v769_v56 = vld [vmem:[%s7583_s3 + $0x50] sm:$0xff]  ;;  %v764_v58 = vld [vmem:[%s7583_s3 + $0x28] sm:$0xff]  ;;  %v763_v60 = vld [vmem:[%s7583_s3 + $0x20] sm:$0xff] }
   0xd   :  { %36 = vst.msk [vmem:[#allocation2 + $0x60] sm:$0xff] %vm23_vm0, %v7588_v3  ;;  %912 = vmatpush.msrb.mxu2 %v768_v51  ;;  %847 = vmatpush.msrb.mxu1 %v767_v53  ;;  %v765_v63 = vld [vmem:[%s7583_s3 + $0x30] sm:$0xff]  ;;  %v760_v1 = vld [vmem:[%s7583_s3 + $0x8] sm:$0xff]  ;;  %v759_v4 = vld [vmem:[%s7583_s3] sm:$0xff] }
   0xe   :  { %37 = vst.msk [vmem:[#allocation2 + $0x68] sm:$0xff] %vm23_vm0, %v7588_v3  ;;  %977 = vmatpush.msrb.mxu3 %v769_v56  ;;  %v4820_v26 = vld [vmem:[%s7585_s4 + $0x1c0] sm:$0xff]  ;;  %v4891_v56 = vld [vmem:[%s7585_s4 + $0x168] sm:$0xff] }
   0xf   :  { %38 = vst.msk [vmem:[#allocation2 + $0x70] sm:$0xff] %vm23_vm0, %v7588_v3  ;;  %913 = vmatpush.msrb.mxu2 %v764_v58  ;;  %848 = vmatpush.msrb.mxu1 %v763_v60  ;;  %v4878_v49 = vld [vmem:[%s7585_s4 + $0x180] sm:$0xff] }
  0x10   :  { %39 = vst.msk [vmem:[#allocation2 + $0x78] sm:$0xff] %vm23_vm0, %v7588_v3  ;;  %978 = vmatpush.msrb.mxu3 %v765_v63 }
  0x11   :  { %40 = vst.msk [vmem:[#allocation2 + $0x80] sm:$0xff] %vm23_vm0, %v7588_v3  ;;  %914 = vmatpush.msrb.mxu2 %v760_v1  ;;  %849 = vmatpush.msrb.mxu1 %v759_v4 }
  0x12   :  { %41 = vst.msk [vmem:[#allocation2 + $0x88] sm:$0xff] %vm23_vm0, %v7588_v3  ;;  %3725 = vmatmul.msk.f32.gmra.mxu1 %vm23_vm0, %v77_v10  ;;  %v761_v10 = vld [vmem:[%s7583_s3 + $0x10] sm:$0xff] }
  0x13   :  { %42 = vst.msk [vmem:[#allocation2 + $0x90] sm:$0xff] %vm23_vm0, %v7588_v3  ;;  %979 = vmatpush.msrb.mxu3 %v761_v10 }
  0x14   :  { %43 = vst.msk [vmem:[#allocation2 + $0x98] sm:$0xff] %vm23_vm0, %v7588_v3 }
  0x15   :  { %60 = vst.msk [vmem:[#allocation2 + $0x10] sm:$0xff] %vm23_vm0, %v44_v12 }
  0x16   :  { %61 = vst.msk [vmem:[#allocation2 + $0x18] sm:$0xff] %vm23_vm0, %v45_v13  ;;  %v774_v13 = vld [vmem:[%s7583_s3 + $0x78] sm:$0xff] }
  0x17   :  { %62 = vst.msk [vmem:[#allocation2 + $0x20] sm:$0xff] %vm23_vm0, %v46_v14  ;;  %1041 = vmatpush.msra.mxu0 %v774_v13  ;;  %v4916_v13 = vld [vmem:[%s7585_s4 + $0x148] sm:$0xff] }
  0x18   :  { %63 = vst.msk [vmem:[#allocation2 + $0x28] sm:$0xff] %vm23_vm0, %v47_v15 }
  0x19   :  { %64 = vst.msk [vmem:[#allocation2 + $0x30] sm:$0xff] %vm23_vm0, %v48_v16  ;;  %v770_v16 = vld [vmem:[%s7583_s3 + $0x58] sm:$0xff] }
  0x1a   :  { %65 = vst.msk [vmem:[#allocation2 + $0x38] sm:$0xff] %vm23_vm0, %v49_v17  ;;  %v4692_v48 = vld [vmem:[#allocation2 + $0x90] sm:$0xff]  ;;  %1042 = vmatpush.msra.mxu0 %v770_v16  ;;  %v766_v17 = vld [vmem:[%s7583_s3 + $0x38] sm:$0xff] }
  0x1b   :  { %66 = vst.msk [vmem:[#allocation2 + $0x40] sm:$0xff] %vm23_vm0, %v50_v20 }
  0x1c   :  { %v279_v18 = vld [vmem:[#allocation2 + $0x10] sm:$0xff]  ;;  %67 = vst.msk [vmem:[#allocation2 + $0x48] sm:$0xff] %vm23_vm0, %v51_v22  ;;  %1043 = vmatpush.msra.mxu0 %v766_v17 }
  0x1d   :  { %3742 = vmatmul.msk.f32.vlgmr.msra.gmra.mxu2 %vm23_vm0, %v279_v18  ;;  %v427_v19 = vld [vmem:[#allocation2 + $0x18] sm:$0xff]  ;;  %3709 = vmatmul.msk.f32.gmra.mxu0 %vm23_vm0, %v279_v18  ;;  %68 = vst.msk [vmem:[#allocation2 + $0x50] sm:$0xff] %vm23_vm0, %v52_v24  ;;  %v4812_v24 = vld [vmem:[%s7585_s4 + $0x1c8] sm:$0xff] }
  0x1e   :  { %3760 = vmatmul.msk.f32.vlgmr.msra.gmra.mxu3 %vm23_vm0, %v427_v19  ;;  %3726 = vmatmul.msk.f32.gmra.mxu1 %vm23_vm0, %v279_v18  ;;  %v4510_v21 = vld [vmem:[#allocation2 + $0x20] sm:$0xff]  ;;  %69 = vst.msk [vmem:[#allocation2 + $0x58] sm:$0xff] %vm23_vm0, %v53_v27  ;;  %v4792_v18 = vld [vmem:[%s7585_s4 + $0x1e8] sm:$0xff] }
  0x1f   :  { %v4521_v23 = vld [vmem:[#allocation2 + $0x28] sm:$0xff]  ;;  %70 = vst.msk [vmem:[#allocation2 + $0x60] sm:$0xff] %vm23_vm0, %v54_v29  ;;  %1249 = vmatpush.msra.mxu2 %v4792_v18 }
  0x20   :  { %v4535_v25 = vld [vmem:[#allocation2 + $0x30] sm:$0xff]  ;;  %71 = vst.msk [vmem:[#allocation2 + $0x68] sm:$0xff] %vm23_vm0, %v55_v31  ;;  %v4833_v31 = vld [vmem:[%s7585_s4 + $0x1a8] sm:$0xff] }
  0x21   :  { %v4552_v28 = vld [vmem:[#allocation2 + $0x38] sm:$0xff]  ;;  %72 = vst.msk [vmem:[#allocation2 + $0x70] sm:$0xff] %vm23_vm0, %v56_v33  ;;  %1250 = vmatpush.msra.mxu2 %v4812_v24 }
  0x22   :  { %v4566_v30 = vld [vmem:[#allocation2 + $0x40] sm:$0xff]  ;;  %73 = vst.msk [vmem:[#allocation2 + $0x78] sm:$0xff] %vm23_vm0, %v57_v35  ;;  %v4843_v35 = vld [vmem:[%s7585_s4 + $0x1f0] sm:$0xff] }
  0x23   :  { %v4580_v32 = vld [vmem:[#allocation2 + $0x48] sm:$0xff]  ;;  %74 = vst.msk [vmem:[#allocation2 + $0x80] sm:$0xff] %vm23_vm0, %v58_v37  ;;  %1251 = vmatpush.msra.mxu2 %v4833_v31  ;;  %1269 = vmatpush.msra.mxu3 %v4843_v35 }
  0x24   :  { %v4594_v34 = vld [vmem:[#allocation2 + $0x50] sm:$0xff]  ;;  %75 = vst.msk [vmem:[#allocation2 + $0x88] sm:$0xff] %vm23_vm0, %v59_v39 }
  0x25   :  { %3743 = vmatmul.msk.f32.gmra.mxu2 %vm23_vm0, %v427_v19  ;;  %3710 = vmatmul.msk.f32.gmra.mxu0 %vm23_vm0, %v427_v19  ;;  %v4608_v36 = vld [vmem:[#allocation2 + $0x58] sm:$0xff]  ;;  %7771 = vst [vmem:[#allocation4_spill] sm:$0xff] %v4792_v18 }
  0x26   :  { %3761 = vmatmul.msk.f32.gmra.mxu3 %vm23_vm0, %v4510_v21  ;;  %3727 = vmatmul.msk.f32.gmra.mxu1 %vm23_vm0, %v427_v19  ;;  %v4622_v38 = vld [vmem:[#allocation2 + $0x60] sm:$0xff]  ;;  %v762_v19 = vld [vmem:[%s7583_s3 + $0x18] sm:$0xff] }
  0x27   :  { %v4636_v40 = vld [vmem:[#allocation2 + $0x68] sm:$0xff]  ;;  %1044 = vmatpush.msra.mxu0 %v762_v19 }
  0x28   :  { %v4646_v41 = vld [vmem:[#allocation2 + $0x70] sm:$0xff] }
  0x29   :  { %v4656_v42 = vld [vmem:[#allocation2 + $0x78] sm:$0xff] }
  0x2a   :  { %v4669_v44 = vld [vmem:[#allocation2 + $0x80] sm:$0xff] }
  0x2b   :  { %v4682_v46 = vld [vmem:[#allocation2 + $0x88] sm:$0xff] }
  0x2d   :  { %3744 = vmatmul.msk.f32.gmra.mxu2 %vm23_vm0, %v4510_v21  ;;  %3711 = vmatmul.msk.f32.gmra.mxu0 %vm23_vm0, %v4510_v21 }
  0x2e   :  { %3762 = vmatmul.msk.f32.gmra.mxu3 %vm23_vm0, %v4521_v23  ;;  %3728 = vmatmul.msk.f32.gmra.mxu1 %vm23_vm0, %v4510_v21 }
  0x35   :  { %3745 = vmatmul.msk.f32.gmra.mxu2 %vm23_vm0, %v4521_v23  ;;  %3712 = vmatmul.msk.f32.gmra.mxu0 %vm23_vm0, %v4521_v23 }
  0x36   :  { %3763 = vmatmul.msk.f32.gmra.mxu3 %vm23_vm0, %v4535_v25  ;;  %3729 = vmatmul.msk.f32.gmra.mxu1 %vm23_vm0, %v4521_v23 }
  0x3d   :  { %3746 = vmatmul.msk.f32.gmra.mxu2 %vm23_vm0, %v4535_v25  ;;  %3713 = vmatmul.msk.f32.gmra.mxu0 %vm23_vm0, %v4535_v25 }
  0x3e   :  { %3764 = vmatmul.msk.f32.gmra.mxu3 %vm23_vm0, %v4552_v28  ;;  %3730 = vmatmul.msk.f32.gmra.mxu1 %vm23_vm0, %v4535_v25 }
  0x45   :  { %3747 = vmatmul.msk.f32.gmra.mxu2 %vm23_vm0, %v4552_v28  ;;  %3714 = vmatmul.msk.f32.gmra.mxu0 %vm23_vm0, %v4552_v28 }
  0x46   :  { %3765 = vmatmul.msk.f32.gmra.mxu3 %vm23_vm0, %v4566_v30  ;;  %3731 = vmatmul.msk.f32.gmra.mxu1 %vm23_vm0, %v4552_v28 }
  0x4d   :  { %3748 = vmatmul.msk.f32.gmra.mxu2 %vm23_vm0, %v4566_v30  ;;  %3715 = vmatmul.msk.f32.gmra.mxu0 %vm23_vm0, %v4566_v30 }
  0x4e   :  { %3766 = vmatmul.msk.f32.gmra.mxu3 %vm23_vm0, %v4580_v32  ;;  %3732 = vmatmul.msk.f32.gmra.mxu1 %vm23_vm0, %v4566_v30 }
  0x55   :  { %3749 = vmatmul.msk.f32.gmra.mxu2 %vm23_vm0, %v4580_v32  ;;  %3716 = vmatmul.msk.f32.gmra.mxu0 %vm23_vm0, %v4580_v32 }
  0x56   :  { %3767 = vmatmul.msk.f32.gmra.mxu3 %vm23_vm0, %v4594_v34  ;;  %3733 = vmatmul.msk.f32.gmra.mxu1 %vm23_vm0, %v4580_v32 }
  0x5d   :  { %3750 = vmatmul.msk.f32.gmra.mxu2 %vm23_vm0, %v4594_v34  ;;  %3717 = vmatmul.msk.f32.gmra.mxu0 %vm23_vm0, %v4594_v34 }
  0x5e   :  { %3768 = vmatmul.msk.f32.gmra.mxu3 %vm23_vm0, %v4608_v36  ;;  %3734 = vmatmul.msk.f32.gmra.mxu1 %vm23_vm0, %v4594_v34 }
  0x65   :  { %3751 = vmatmul.msk.f32.gmra.mxu2 %vm23_vm0, %v4608_v36  ;;  %3718 = vmatmul.msk.f32.gmra.mxu0 %vm23_vm0, %v4608_v36 }
  0x66   :  { %3769 = vmatmul.msk.f32.gmra.mxu3 %vm23_vm0, %v4622_v38  ;;  %3735 = vmatmul.msk.f32.gmra.mxu1 %vm23_vm0, %v4608_v36 }
  0x6d   :  { %3752 = vmatmul.msk.f32.gmra.mxu2 %vm23_vm0, %v4622_v38  ;;  %3719 = vmatmul.msk.f32.gmra.mxu0 %vm23_vm0, %v4622_v38 }
  0x6e   :  { %3770 = vmatmul.msk.f32.gmra.mxu3 %vm23_vm0, %v4636_v40  ;;  %3736 = vmatmul.msk.f32.gmra.mxu1 %vm23_vm0, %v4622_v38 }
  0x75   :  { %3753 = vmatmul.msk.f32.gmra.mxu2 %vm23_vm0, %v4636_v40  ;;  %3720 = vmatmul.msk.f32.gmra.mxu0 %vm23_vm0, %v4636_v40 }
  0x76   :  { %3771 = vmatmul.msk.f32.gmra.mxu3 %vm23_vm0, %v4646_v41  ;;  %3737 = vmatmul.msk.f32.gmra.mxu1 %vm23_vm0, %v4636_v40 }
  0x7d   :  { %3754 = vmatmul.msk.f32.gmra.mxu2 %vm23_vm0, %v4646_v41  ;;  %3721 = vmatmul.msk.f32.gmra.mxu0 %vm23_vm0, %v4646_v41 }
  0x7e   :  { %3772 = vmatmul.msk.f32.gmra.mxu3 %vm23_vm0, %v4656_v42  ;;  %3738 = vmatmul.msk.f32.gmra.mxu1 %vm23_vm0, %v4646_v41 }
  0x85   :  { %3755 = vmatmul.msk.f32.gmra.mxu2 %vm23_vm0, %v4656_v42  ;;  %3722 = vmatmul.msk.f32.gmra.mxu0 %vm23_vm0, %v4656_v42 }
  0x86   :  { %3773 = vmatmul.msk.f32.gmra.mxu3 %vm23_vm0, %v4669_v44  ;;  %3739 = vmatmul.msk.f32.gmra.mxu1 %vm23_vm0, %v4656_v42  ;;  %v4690_v47 = vpop.f32.mrf.mxu0 }
  0x87   :  { %v231_v5 = vpop.f32.mrf.mxu1 }
  0x8d   :  { %3756 = vmatmul.msk.f32.gmra.mxu2 %vm23_vm0, %v4669_v44  ;;  %3723 = vmatmul.msk.f32.gmra.mxu0 %vm23_vm0, %v4669_v44 }
  0x8e   :  { %3774 = vmatmul.msk.f32.gmra.mxu3 %vm23_vm0, %v4682_v46 }
  0x8f   :  { %v234_v11 = vpop.f32.mrf.mxu1 }
  0x95   :  { %3757 = vmatmul.msk.f32.gmra.mxu2 %vm23_vm0, %v4682_v46  ;;  %3778 = vmatmul.msk.f32.vlgmr.msrb.gmra.mxu0 %vm23_vm0, %v4510_v21  ;;  %v4803_v21 = vld [vmem:[%s7585_s4 + $0x1e0] sm:$0xff] }
  0x96   :  { %3775 = vmatmul.msk.f32.gmra.mxu3 %vm23_vm0, %v4692_v48  ;;  %1229 = vmatpush.msra.mxu1 %v4803_v21 }
  0x97   :  { %1691 = vmatpush.msrb.mxu0 %v4803_v21 }
  0x98   :  { %1230 = vmatpush.msra.mxu1 %v4820_v26 }
  0x99   :  { %1692 = vmatpush.msrb.mxu0 %v4820_v26 }
  0x9a   :  { %v4703_v50 = vpop.f32.mrf.mxu0 }
  0x9b   :  { %v237_v20 = vpop.f32.mrf.mxu1 }
  0x9d   :  { %3779 = vmatmul.msk.f32.gmra.mxu0 %vm23_vm0, %v4521_v23 }
  0xa0   :  { %v363_v7 = vpop.f32.mrf.mxu2 }
  0xa1   :  { %v511_v8 = vpop.f32.mrf.mxu3 }
  0xa2   :  { %v4710_v52 = vpop.f32.mrf.mxu0 }
  0xa3   :  { %v4822_v27 = vpop.f32.mrf.mxu1  ;;  %v238_v58 = vadd.f32 %v237_v20, %v4710_v52  ;;  %v4905_v52 = vld [vmem:[%s7585_s4 + $0x160] sm:$0xff] }
  0xa5   :  { %3780 = vmatmul.msk.f32.gmra.mxu0 %vm23_vm0, %v4535_v25 }
  0xa8   :  { %v366_v12 = vpop.f32.mrf.mxu2 }
  0xa9   :  { %v514_v14 = vpop.f32.mrf.mxu3 }
  0xaa   :  { %v4717_v54 = vpop.f32.mrf.mxu0 }
  0xab   :  { %v4858_v39 = vpop.f32.mrf.mxu1 }
  0xad   :  { %3781 = vmatmul.msk.f32.gmra.mxu0 %vm23_vm0, %v4552_v28 }
  0xb0   :  { %v369_v22 = vpop.f32.mrf.mxu2 }
  0xb1   :  { %v517_v25 = vpop.f32.mrf.mxu3  ;;  %v413_v1 = vadd.f32 %v369_v22, %v238_v58 }
  0xb2   :  { %v4721_v55 = vpop.f32.mrf.mxu0 }
  0xb3   :  { %v246_v63 = vpop.f32.mrf.mxu1  ;;  %v561_v10 = vadd.f32 %v517_v25, %v413_v1  ;;  %v4927_v25 = vld [vmem:[%s7585_s4 + $0x190] sm:$0xff] }
  0xb5   :  { %3782 = vmatmul.msk.f32.gmra.mxu0 %vm23_vm0, %v4566_v30  ;;  %v590_v30 = vld [vmem:[#allocation2 + $0x98] sm:$0xff] }
  0xb8   :  { %v4826_v28 = vpop.f32.mrf.mxu2 }
  0xba   :  { %v4728_v57 = vpop.f32.mrf.mxu0 }
  0xbb   :  { %v249_v20 = vpop.f32.mrf.mxu1 }
  0xbd   :  { %3783 = vmatmul.msk.f32.gmra.mxu0 %vm23_vm0, %v4580_v32  ;;  %v232_v32 = vadd.f32 %v231_v5, %v4690_v47 }
  0xbf   :  { %v411_v33 = vadd.f32 %v363_v7, %v232_v32  ;;  %v4944_v32 = vld [vmem:[%s7585_s4 + $0x128] sm:$0xff] }
  0xc1   :  { %v559_v37 = vadd.f32 %v511_v8, %v411_v33  ;;  %v4900_v8 = vld [vmem:[%s7585_s4 + $0x1b0] sm:$0xff]  ;;  %v244_v33 = vadd.f32 %v4858_v39, %v4721_v55  ;;  %v4960_v55 = vld [vmem:[%s7585_s4 + $0x120] sm:$0xff] }
  0xc2   :  { %v4735_v59 = vpop.f32.mrf.mxu0 }
  0xc3   :  { %v252_v39 = vpop.f32.mrf.mxu1 }
  0xc5   :  { %3784 = vmatmul.msk.f32.gmra.mxu0 %vm23_vm0, %v4594_v34  ;;  %v4838_v34 = vpop.f32.mrf.mxu3 }
  0xca   :  { %v4742_v61 = vpop.f32.mrf.mxu0 }
  0xcd   :  { %3785 = vmatmul.msk.f32.gmra.mxu0 %vm23_vm0, %v4608_v36  ;;  %v4848_v36 = vld [vmem:[%s7585_s4 + $0x1a0] sm:$0xff] }
  0xce   :  { %1231 = vmatpush.msra.mxu1 %v4848_v36  ;;  %1693 = vmatpush.msrb.mxu0 %v4848_v36 }
  0xd0   :  { %1232 = vmatpush.msra.mxu1 %v4878_v49  ;;  %1694 = vmatpush.msrb.mxu0 %v4878_v49 }
  0xd2   :  { %v4746_v62 = vpop.f32.mrf.mxu0  ;;  %1233 = vmatpush.msra.mxu1 %v4905_v52  ;;  %1695 = vmatpush.msrb.mxu0 %v4905_v52 }
  0xd5   :  { %3786 = vmatmul.msk.f32.gmra.mxu0 %vm23_vm0, %v4622_v38  ;;  %v4855_v38 = vld [vmem:[%s7584_s2] ss:$0 sm:$0xff] }
  0xda   :  { %v4753_v0 = vpop.f32.mrf.mxu0 }
  0xdd   :  { %3787 = vmatmul.msk.f32.gmra.mxu0 %vm23_vm0, %v4636_v40 }
  0xe2   :  { %v4760_v2 = vpop.f32.mrf.mxu0 }
  0xe5   :  { %3788 = vmatmul.msk.f32.gmra.mxu0 %vm23_vm0, %v4646_v41  ;;  %v4863_v41 = vld [vmem:[%s7585_s4 + $0x188] sm:$0xff] }
  0xe6   :  { %1252 = vmatpush.msra.mxu2 %v4863_v41 }
  0xe8   :  { %1253 = vmatpush.msra.mxu2 %v4891_v56 }
  0xea   :  { %v4767_v6 = vpop.f32.mrf.mxu0  ;;  %1254 = vmatpush.msra.mxu2 %v4916_v13 }
  0xec   :  { %1255 = vmatpush.msra.mxu2 %v4944_v32 }
  0xed   :  { %3789 = vmatmul.msk.f32.gmra.mxu0 %vm23_vm0, %v4656_v42  ;;  %v235_v42 = vadd.f32 %v234_v11, %v4703_v50  ;;  %v4880_v50 = vpop.f32.mrf.mxu3 }
  0xef   :  { %v412_v45 = vadd.f32 %v366_v12, %v235_v42 }
  0xf1   :  { %v560_v51 = vadd.f32 %v514_v14, %v412_v45  ;;  %v241_v14 = vadd.f32 %v4822_v27, %v4717_v54  ;;  %v4932_v54 = vld [vmem:[%s7585_s4 + $0x140] sm:$0xff]  ;;  %v4955_v45 = vld [vmem:[%s7585_s4 + $0x170] sm:$0xff] }
  0xf2   :  { %v4771_v9 = vpop.f32.mrf.mxu0  ;;  %1234 = vmatpush.msra.mxu1 %v4932_v54  ;;  %1696 = vmatpush.msrb.mxu0 %v4932_v54 }
  0xf3   :  { %v414_v17 = vadd.f32 %v4826_v28, %v241_v14  ;;  %v250_v14 = vadd.f32 %v249_v20, %v4735_v59 }
  0xf4   :  { %1235 = vmatpush.msra.mxu1 %v4960_v55  ;;  %1697 = vmatpush.msrb.mxu0 %v4960_v55 }
  0xf5   :  { %3790 = vmatmul.msk.f32.gmra.mxu0 %vm23_vm0, %v4669_v44  ;;  %v4867_v44 = vpop.f32.mrf.mxu2  ;;  %v526_v11 = vpop.f32.mrf.mxu3  ;;  %v562_v28 = vadd.f32 %v4838_v34, %v414_v17 }
  0xfa   :  { %v4781_v15 = vpop.f32.mrf.mxu0 }
  0xfd   :  { %3791 = vmatmul.msk.f32.gmra.mxu0 %vm23_vm0, %v4682_v46  ;;  %v378_v5 = vpop.f32.mrf.mxu2  ;;  %v529_v34 = vpop.f32.mrf.mxu3 }
 0x102   :  { %v4807_v23 = vpop.f32.mrf.mxu0 }
 0x105   :  { %3792 = vmatmul.msk.f32.gmra.mxu0 %vm23_vm0, %v4692_v48  ;;  %v4873_v48 = vld [vmem:[%s7585_s4 + $0x1d0] sm:$0xff]  ;;  %v381_v27 = vpop.f32.mrf.mxu2  ;;  %v532_v1 = vpop.f32.mrf.mxu3 }
 0x106   :  { %1270 = vmatpush.msra.mxu3 %v4873_v48  ;;  %v417_v17 = vadd.f32 %v381_v27, %v250_v14 }
 0x108   :  { %1271 = vmatpush.msra.mxu3 %v4900_v8  ;;  %v565_v20 = vadd.f32 %v529_v34, %v417_v17  ;;  %v5061_v17 = vld [vmem:[%s7585_s4 + $0xa0] sm:$0xff] }
 0x10a   :  { %v4828_v29 = vpop.f32.mrf.mxu0  ;;  %1272 = vmatpush.msra.mxu3 %v4927_v25 }
 0x10c   :  { %1273 = vmatpush.msra.mxu3 %v4955_v45 }
 0x10d   :  { %3793 = vmatmul.msk.f32.gmra.mxu0 %vm23_vm0, %v590_v30  ;;  %v535_v59 = vpop.f32.mrf.mxu3 }
 0x112   :  { %v659_v40 = vpop.f32.mrf.mxu0 }
 0x113   :  { %v707_v43 = vadd.f32 %v659_v40, %v559_v37  ;;  %v415_v40 = vadd.f32 %v4867_v44, %v244_v33  ;;  %v5022_v33 = vld [vmem:[%s7585_s4 + $0xc8] sm:$0xff] }
 0x115   :  { %v727_v46 = vadd.f32 %v4855_v38, %v707_v43  ;;  %v563_v44 = vadd.f32 %v4880_v50, %v415_v40 }
 0x117   :  { %v743_v47 = vmax.f32 %v727_v46, 0.0  ;;  %v384_v46 = vpop.f32.mrf.mxu2 }
 0x119   :  { %3794 = vmatmul.msk.f32.vlgmr.msrb.gmra.mxu1 %vm785_vm1, %v743_v47  ;;  %3810 = vmatmul.msk.f32.vlgmr.msrb.gmra.mxu2 %vm785_vm1, %v743_v47 }
 0x11a   :  { %3826 = vmatmul.msk.f32.vlgmr.msrb.gmra.mxu3 %vm785_vm1, %v743_v47  ;;  %3842 = vmatmul.msk.f32.vlgmr.msra.gmra.mxu0 %vm785_vm1, %v743_v47  ;;  %v662_v53 = vpop.f32.mrf.mxu0 }
 0x11b   :  { %v708_v60 = vadd.f32 %v662_v53, %v560_v51  ;;  %v4972_v51 = vld [vmem:[%s7585_s4 + $0x108] sm:$0xff]  ;;  %v247_v53 = vadd.f32 %v246_v63, %v4728_v57  ;;  %v255_v63 = vpop.f32.mrf.mxu1 }
 0x11c   :  { %1256 = vmatpush.msra.mxu2 %v4972_v51 }
 0x11d   :  { %v728_v4 = vadd.f32 %v4855_v38, %v708_v60  ;;  %v416_v50 = vadd.f32 %v378_v5, %v247_v53  ;;  %v5031_v53 = vld [vmem:[%s7585_s4 + $0x110] sm:$0xff] }
 0x11f   :  { %v744_v7 = vmax.f32 %v728_v4, 0.0  ;;  %v564_v57 = vadd.f32 %v526_v11, %v416_v50  ;;  %v387_v11 = vpop.f32.mrf.mxu2  ;;  %v5047_v50 = vld [vmem:[%s7585_s4 + $0xa8] sm:$0xff] }
 0x121   :  { %3795 = vmatmul.msk.f32.gmra.mxu1 %vm785_vm1, %v744_v7  ;;  %3811 = vmatmul.msk.f32.gmra.mxu2 %vm785_vm1, %v744_v7 }
 0x122   :  { %3827 = vmatmul.msk.f32.gmra.mxu3 %vm785_vm1, %v744_v7  ;;  %3843 = vmatmul.msk.f32.gmra.mxu0 %vm785_vm1, %v744_v7  ;;  %v665_v12 = vpop.f32.mrf.mxu0  ;;  %v4981_v7 = vld [vmem:[%s7585_s4 + $0x150] sm:$0xff] }
 0x123   :  { %v709_v16 = vadd.f32 %v665_v12, %v561_v10  ;;  %v4986_v10 = vld [vmem:[%s7585_s4 + $0x100] sm:$0xff]  ;;  %1274 = vmatpush.msra.mxu3 %v4981_v7  ;;  %v4997_v12 = vld [vmem:[%s7585_s4 + $0xe8] sm:$0xff]  ;;  %v258_v34 = vpop.f32.mrf.mxu1 }
 0x124   :  { %1236 = vmatpush.msra.mxu1 %v4986_v10  ;;  %1257 = vmatpush.msra.mxu2 %v4997_v12 }
 0x125   :  { %v729_v19 = vadd.f32 %v4855_v38, %v709_v16  ;;  %1698 = vmatpush.msrb.mxu0 %v4986_v10 }
 0x126   :  { %1258 = vmatpush.msra.mxu2 %v5022_v33 }
 0x127   :  { %v745_v22 = vmax.f32 %v729_v19, 0.0 }
 0x128   :  { %1259 = vmatpush.msra.mxu2 %v5047_v50 }
 0x129   :  { %3796 = vmatmul.msk.f32.gmra.mxu1 %vm785_vm1, %v745_v22  ;;  %3812 = vmatmul.msk.f32.gmra.mxu2 %vm785_vm1, %v745_v22 }
 0x12a   :  { %3828 = vmatmul.msk.f32.gmra.mxu3 %vm785_vm1, %v745_v22  ;;  %3844 = vmatmul.msk.f32.gmra.mxu0 %vm785_vm1, %v745_v22  ;;  %v668_v30 = vpop.f32.mrf.mxu0 }
 0x12b   :  { %v710_v37 = vadd.f32 %v668_v30, %v562_v28  ;;  %v5006_v28 = vld [vmem:[%s7585_s4 + $0x130] sm:$0xff]  ;;  %v5011_v30 = vld [vmem:[%s7585_s4 + $0xe0] sm:$0xff] }
 0x12c   :  { %1275 = vmatpush.msra.mxu3 %v5006_v28  ;;  %1237 = vmatpush.msra.mxu1 %v5011_v30 }
 0x12d   :  { %v730_v42 = vadd.f32 %v4855_v38, %v710_v37  ;;  %v253_v37 = vadd.f32 %v252_v39, %v4742_v61  ;;  %1699 = vmatpush.msrb.mxu0 %v5011_v30  ;;  %v5036_v61 = vld [vmem:[%s7585_s4 + $0xc0] sm:$0xff] }
 0x12e   :  { %1276 = vmatpush.msra.mxu3 %v5031_v53  ;;  %1238 = vmatpush.msra.mxu1 %v5036_v61 }
 0x12f   :  { %v746_v43 = vmax.f32 %v730_v42, 0.0  ;;  %v418_v42 = vadd.f32 %v384_v46, %v253_v37  ;;  %v538_v46 = vpop.f32.mrf.mxu3  ;;  %1700 = vmatpush.msrb.mxu0 %v5036_v61 }
 0x130   :  { %1239 = vmatpush.msra.mxu1 %v5061_v17 }
 0x131   :  { %3797 = vmatmul.msk.f32.gmra.mxu1 %vm785_vm1, %v746_v43  ;;  %3813 = vmatmul.msk.f32.gmra.mxu2 %vm785_vm1, %v746_v43  ;;  %v566_v39 = vadd.f32 %v532_v1, %v418_v42  ;;  %v5081_v42 = vld [vmem:[%s7585_s4 + $0xd0] sm:$0xff] }
 0x132   :  { %3829 = vmatmul.msk.f32.gmra.mxu3 %vm785_vm1, %v746_v43  ;;  %3845 = vmatmul.msk.f32.gmra.mxu0 %vm785_vm1, %v746_v43  ;;  %v671_v47 = vpop.f32.mrf.mxu0  ;;  %7773 = vst [vmem:[#allocation6_spill] sm:$0xff] %v5081_v42 }
 0x133   :  { %v711_v58 = vadd.f32 %v671_v47, %v563_v44  ;;  %v390_v44 = vpop.f32.mrf.mxu2  ;;  %1701 = vmatpush.msrb.mxu0 %v5061_v17 }
 0x135   :  { %v731_v60 = vadd.f32 %v4855_v38, %v711_v58 }
 0x137   :  { %v747_v4 = vmax.f32 %v731_v60, 0.0  ;;  %v256_v60 = vadd.f32 %v255_v63, %v4746_v62 }
 0x139   :  { %3798 = vmatmul.msk.f32.gmra.mxu1 %vm785_vm1, %v747_v4  ;;  %3814 = vmatmul.msk.f32.gmra.mxu2 %vm785_vm1, %v747_v4  ;;  %v419_v1 = vadd.f32 %v387_v11, %v256_v60 }
 0x13a   :  { %3830 = vmatmul.msk.f32.gmra.mxu3 %vm785_vm1, %v747_v4  ;;  %3846 = vmatmul.msk.f32.gmra.mxu0 %vm785_vm1, %v747_v4  ;;  %v674_v5 = vpop.f32.mrf.mxu0 }
 0x13b   :  { %v712_v16 = vadd.f32 %v674_v5, %v564_v57  ;;  %v261_v5 = vpop.f32.mrf.mxu1  ;;  %v393_v62 = vpop.f32.mrf.mxu2  ;;  %v567_v63 = vadd.f32 %v535_v59, %v419_v1 }
 0x13c   :  { %v541_v59 = vpop.f32.mrf.mxu3 }
 0x13d   :  { %v732_v19 = vadd.f32 %v4855_v38, %v712_v16  ;;  %v5056_v16 = vld [vmem:[%s7585_s4 + $0xf0] sm:$0xff] }
 0x13e   :  { %7772 = vst [vmem:[#allocation5_spill] sm:$0xff] %v5056_v16  ;;  %1277 = vmatpush.msra.mxu3 %v5056_v16 }
 0x13f   :  { %v748_v22 = vmax.f32 %v732_v19, 0.0  ;;  %v5072_v19 = vld [vmem:[%s7585_s4 + $0x88] sm:$0xff] }
 0x140   :  { %1260 = vmatpush.msra.mxu2 %v5072_v19  ;;  %1278 = vmatpush.msra.mxu3 %v5081_v42 }
 0x141   :  { %3799 = vmatmul.msk.f32.gmra.mxu1 %vm785_vm1, %v748_v22  ;;  %3815 = vmatmul.msk.f32.gmra.mxu2 %vm785_vm1, %v748_v22 }
 0x142   :  { %3831 = vmatmul.msk.f32.gmra.mxu3 %vm785_vm1, %v748_v22  ;;  %3847 = vmatmul.msk.f32.gmra.mxu0 %vm785_vm1, %v748_v22  ;;  %v677_v27 = vpop.f32.mrf.mxu0  ;;  %v259_v22 = vadd.f32 %v258_v34, %v4753_v0 }
 0x143   :  { %v713_v40 = vadd.f32 %v677_v27, %v565_v20  ;;  %v264_v0 = vpop.f32.mrf.mxu1 }
 0x144   :  { %v420_v27 = vadd.f32 %v390_v44, %v259_v22  ;;  %v396_v44 = vpop.f32.mrf.mxu2  ;;  %v544_v1 = vpop.f32.mrf.mxu3  ;;  %v5127_v22 = vld [vmem:[%s7585_s4 + $0x20] sm:$0xff] }
 0x145   :  { %v733_v43 = vadd.f32 %v4855_v38, %v713_v40 }
 0x146   :  { %v568_v34 = vadd.f32 %v538_v46, %v420_v27 }
 0x147   :  { %v749_v47 = vmax.f32 %v733_v43, 0.0  ;;  %v5086_v43 = vld [vmem:[%s7585_s4 + $0x80] sm:$0xff] }
 0x148   :  { %1240 = vmatpush.msra.mxu1 %v5086_v43  ;;  %1702 = vmatpush.msrb.mxu0 %v5086_v43 }
 0x149   :  { %3800 = vmatmul.msk.f32.gmra.mxu1 %vm785_vm1, %v749_v47  ;;  %3816 = vmatmul.msk.f32.gmra.mxu2 %vm785_vm1, %v749_v47 }
 0x14a   :  { %3832 = vmatmul.msk.f32.gmra.mxu3 %vm785_vm1, %v749_v47  ;;  %3848 = vmatmul.msk.f32.gmra.mxu0 %vm785_vm1, %v749_v47  ;;  %v680_v58 = vpop.f32.mrf.mxu0 }
 0x14b   :  { %v714_v4 = vadd.f32 %v680_v58, %v566_v39  ;;  %v5097_v39 = vld [vmem:[%s7585_s4 + $0x68] sm:$0xff]  ;;  %v262_v58 = vadd.f32 %v261_v5, %v4760_v2  ;;  %v5117_v2 = vld [vmem:[%s7585_s4 + $0x40] sm:$0xff] }
 0x14c   :  { %1261 = vmatpush.msra.mxu2 %v5097_v39 }
 0x14d   :  { %v734_v57 = vadd.f32 %v4855_v38, %v714_v4  ;;  %v421_v46 = vadd.f32 %v393_v62, %v262_v58  ;;  %v267_v62 = vpop.f32.mrf.mxu1  ;;  %v5155_v58 = vld [vmem:[%s7585_s4 + $0x90] sm:$0xff] }
 0x14e   :  { %7775 = vst [vmem:[#allocation8_spill] sm:$0xff] %v5155_v58 }
 0x14f   :  { %v750_v14 = vmax.f32 %v734_v57, 0.0  ;;  %v569_v5 = vadd.f32 %v541_v59, %v421_v46  ;;  %v265_v59 = vadd.f32 %v264_v0, %v4767_v6  ;;  %v5150_v0 = vld [vmem:[%s7585_s4 + $0x1f8] sm:$0xff] }
 0x151   :  { %3801 = vmatmul.msk.f32.gmra.mxu1 %vm785_vm1, %v750_v14  ;;  %3817 = vmatmul.msk.f32.gmra.mxu2 %vm785_vm1, %v750_v14 }
 0x152   :  { %3833 = vmatmul.msk.f32.gmra.mxu3 %vm785_vm1, %v750_v14  ;;  %3849 = vmatmul.msk.f32.gmra.mxu0 %vm785_vm1, %v750_v14  ;;  %v683_v11 = vpop.f32.mrf.mxu0  ;;  %v5106_v14 = vld [vmem:[%s7585_s4 + $0x60] sm:$0xff] }
 0x153   :  { %v715_v20 = vadd.f32 %v683_v11, %v567_v63  ;;  %v5111_v63 = vld [vmem:[%s7585_s4 + $0xb0] sm:$0xff]  ;;  %1241 = vmatpush.msra.mxu1 %v5106_v14  ;;  %1703 = vmatpush.msrb.mxu0 %v5106_v14 }
 0x154   :  { %7774 = vst [vmem:[#allocation7_spill] sm:$0xff] %v5111_v63  ;;  %1279 = vmatpush.msra.mxu3 %v5111_v63 }
 0x155   :  { %v735_v37 = vadd.f32 %v4855_v38, %v715_v20  ;;  %v5132_v20 = vld [vmem:[%s7585_s4 + $0x48] sm:$0xff]  ;;  %1242 = vmatpush.msra.mxu1 %v5117_v2  ;;  %1704 = vmatpush.msrb.mxu0 %v5117_v2 }
 0x156   :  { %1262 = vmatpush.msra.mxu2 %v5132_v20  ;;  %1280 = vmatpush.msra.mxu3 %v5155_v58 }
 0x157   :  { %v751_v40 = vmax.f32 %v735_v37, 0.0  ;;  %v399_v37 = vpop.f32.mrf.mxu2  ;;  %1243 = vmatpush.msra.mxu1 %v5127_v22  ;;  %1705 = vmatpush.msrb.mxu0 %v5127_v22 }
 0x159   :  { %3802 = vmatmul.msk.f32.gmra.mxu1 %vm785_vm1, %v751_v40  ;;  %3818 = vmatmul.msk.f32.gmra.mxu2 %vm785_vm1, %v751_v40 }
 0x15a   :  { %3834 = vmatmul.msk.f32.gmra.mxu3 %vm785_vm1, %v751_v40  ;;  %3850 = vmatmul.msk.f32.gmra.mxu0 %vm785_vm1, %v751_v40  ;;  %v686_v47 = vpop.f32.mrf.mxu0  ;;  %v5140_v40 = vld [vmem:[%s7585_s4] sm:$0xff] }
 0x15b   :  { %v716_v60 = vadd.f32 %v686_v47, %v568_v34  ;;  %v422_v34 = vadd.f32 %v396_v44, %v265_v59  ;;  %1244 = vmatpush.msra.mxu1 %v5140_v40  ;;  %v547_v44 = vpop.f32.mrf.mxu3  ;;  %v270_v59 = vpop.f32.mrf.mxu1  ;;  %1706 = vmatpush.msrb.mxu0 %v5140_v40 }
 0x15d   :  { %v736_v4 = vadd.f32 %v4855_v38, %v716_v60  ;;  %1289 = vmatpush.msrb.mxu1 %v5150_v0  ;;  %v5161_v60 = vld [vmem:[%s7585_s4 + $0x1d8] sm:$0xff]  ;;  %v570_v46 = vadd.f32 %v544_v1, %v422_v34  ;;  %v268_v1 = vadd.f32 %v267_v62, %v4771_v9  ;;  %v5194_v62 = vld [vmem:[%s7585_s4 + $0x70] sm:$0xff]  ;;  %1845 = vmatpush.msra.mxu0 %v4803_v21 }
 0x15e   :  { %7776 = vst [vmem:[#allocation9_spill] sm:$0xff] %v5194_v62  ;;  %1281 = vmatpush.msra.mxu3 %v5194_v62 }
 0x15f   :  { %v752_v57 = vmax.f32 %v736_v4, 0.0  ;;  %1290 = vmatpush.msrb.mxu1 %v5161_v60  ;;  %v423_v34 = vadd.f32 %v399_v37, %v268_v1  ;;  %v5200_v37 = vld [vmem:[%s7585_s4 + $0x178] sm:$0xff]  ;;  %1846 = vmatpush.msra.mxu0 %v4820_v26 }
 0x161   :  { %3803 = vmatmul.msk.f32.gmra.mxu1 %vm785_vm1, %v752_v57  ;;  %3819 = vmatmul.msk.f32.gmra.mxu2 %vm785_vm1, %v752_v57 }
 0x162   :  { %3835 = vmatmul.msk.f32.gmra.mxu3 %vm785_vm1, %v752_v57  ;;  %3851 = vmatmul.msk.f32.gmra.mxu0 %vm785_vm1, %v752_v57  ;;  %v689_v11 = vpop.f32.mrf.mxu0  ;;  %v5171_v57 = vld [vmem:[%s7585_s4 + $0x1b8] sm:$0xff] }
 0x163   :  { %v717_v27 = vadd.f32 %v689_v11, %v569_v5  ;;  %v5176_v5 = vld [vmem:[%s7585_s4 + $0x28] sm:$0xff]  ;;  %1291 = vmatpush.msrb.mxu1 %v5171_v57  ;;  %1847 = vmatpush.msra.mxu0 %v4848_v36 }
 0x164   :  { %1263 = vmatpush.msra.mxu2 %v5176_v5 }
 0x165   :  { %v737_v47 = vadd.f32 %v4855_v38, %v717_v27  ;;  %v5184_v27 = vld [vmem:[%s7585_s4 + $0x198] sm:$0xff]  ;;  %1848 = vmatpush.msra.mxu0 %v4878_v49 }
 0x166   :  { %1292 = vmatpush.msrb.mxu1 %v5184_v27 }
 0x167   :  { %v753_v6 = vmax.f32 %v737_v47, 0.0  ;;  %1849 = vmatpush.msra.mxu0 %v4905_v52 }
 0x168   :  { %1293 = vmatpush.msrb.mxu1 %v5200_v37 }
 0x169   :  { %3804 = vmatmul.msk.f32.gmra.mxu1 %vm785_vm1, %v753_v6  ;;  %3820 = vmatmul.msk.f32.gmra.mxu2 %vm785_vm1, %v753_v6 }
 0x16a   :  { %3836 = vmatmul.msk.f32.gmra.mxu3 %vm785_vm1, %v753_v6  ;;  %3852 = vmatmul.msk.f32.gmra.mxu0 %vm785_vm1, %v753_v6  ;;  %v692_v4 = vpop.f32.mrf.mxu0  ;;  %v402_v6 = vpop.f32.mrf.mxu2 }
 0x16b   :  { %v718_v11 = vadd.f32 %v692_v4, %v570_v46  ;;  %v571_v46 = vadd.f32 %v547_v44, %v423_v34  ;;  %v550_v4 = vpop.f32.mrf.mxu3  ;;  %v5220_v44 = vld [vmem:[%s7585_s4 + $0x50] sm:$0xff]  ;;  %v271_v34 = vadd.f32 %v270_v59, %v4781_v15  ;;  %v273_v15 = vpop.f32.mrf.mxu1  ;;  %1850 = vmatpush.msra.mxu0 %v4932_v54 }
 0x16c   :  { %7777 = vst [vmem:[#allocation10_spill] sm:$0xff] %v5220_v44  ;;  %1282 = vmatpush.msra.mxu3 %v5220_v44  ;;  %v5261_v44 = vld [vmem:[%s7585_s4 + $0x10] sm:$0xff] }
 0x16d   :  { %v738_v47 = vadd.f32 %v4855_v38, %v718_v11  ;;  %v5210_v11 = vld [vmem:[%s7585_s4 + $0x158] sm:$0xff]  ;;  %v424_v62 = vadd.f32 %v402_v6, %v271_v34  ;;  %1851 = vmatpush.msra.mxu0 %v4960_v55 }
 0x16e   :  { %1294 = vmatpush.msrb.mxu1 %v5210_v11  ;;  %v5256_v34 = vld [vmem:[%s7585_s4 + $0xf8] sm:$0xff] }
 0x16f   :  { %v754_v9 = vmax.f32 %v738_v47, 0.0  ;;  %v5215_v47 = vld [vmem:[%s7585_s4 + $0x8] sm:$0xff]  ;;  %v572_v6 = vadd.f32 %v550_v4, %v424_v62  ;;  %v274_v62 = vadd.f32 %v273_v15, %v4807_v23  ;;  %1852 = vmatpush.msra.mxu0 %v4986_v10 }
 0x170   :  { %1264 = vmatpush.msra.mxu2 %v5215_v47 }
 0x171   :  { %3805 = vmatmul.msk.f32.gmra.mxu1 %vm785_vm1, %v754_v9  ;;  %3821 = vmatmul.msk.f32.gmra.mxu2 %vm785_vm1, %v754_v9 }
 0x172   :  { %3837 = vmatmul.msk.f32.gmra.mxu3 %vm785_vm1, %v754_v9  ;;  %3853 = vmatmul.msk.f32.gmra.mxu0 %vm785_vm1, %v754_v9  ;;  %v695_v1 = vpop.f32.mrf.mxu0  ;;  %v5228_v9 = vld [vmem:[%s7585_s4 + $0x138] sm:$0xff] }
 0x173   :  { %v719_v3 = vadd.f32 %v695_v1, %v571_v46  ;;  %1383 = vmatpush.msrb.mxu2 %v4803_v21  ;;  %1295 = vmatpush.msrb.mxu1 %v5228_v9  ;;  %v405_v46 = vpop.f32.mrf.mxu2  ;;  %v5241_v1 = vld [vmem:[%s7585_s4 + $0x118] sm:$0xff]  ;;  %v553_v63 = vpop.f32.mrf.mxu3 }
 0x174   :  { %v425_v42 = vadd.f32 %v405_v46, %v274_v62  ;;  %v276_v15 = vpop.f32.mrf.mxu1  ;;  %v5283_v46 = vld [vmem:[%s7585_s4 + $0xb8] sm:$0xff]  ;;  %1853 = vmatpush.msra.mxu0 %v5011_v30 }
 0x175   :  { %v739_v58 = vadd.f32 %v4855_v38, %v719_v3  ;;  %1384 = vmatpush.msrb.mxu2 %v4820_v26  ;;  %v5246_v3 = vld [vmem:[%s7585_s4 + $0x30] sm:$0xff]  ;;  %1296 = vmatpush.msrb.mxu1 %v5241_v1  ;;  %v5294_v62 = vld [vmem:[%s7585_s4 + $0x98] sm:$0xff] }
 0x176   :  { %1283 = vmatpush.msra.mxu3 %v5246_v3  ;;  %1854 = vmatpush.msra.mxu0 %v5036_v61 }
 0x177   :  { %v755_v59 = vmax.f32 %v739_v58, 0.0  ;;  %1385 = vmatpush.msrb.mxu2 %v4848_v36  ;;  %1297 = vmatpush.msrb.mxu1 %v5256_v34 }
 0x178   :  { %1284 = vmatpush.msra.mxu3 %v5261_v44  ;;  %1855 = vmatpush.msra.mxu0 %v5061_v17 }
 0x179   :  { %3806 = vmatmul.msk.f32.gmra.mxu1 %vm785_vm1, %v755_v59  ;;  %3822 = vmatmul.msk.f32.gmra.mxu2 %vm785_vm1, %v755_v59 }
 0x17a   :  { %3838 = vmatmul.msk.f32.gmra.mxu3 %vm785_vm1, %v755_v59  ;;  %3854 = vmatmul.msk.f32.gmra.mxu0 %vm785_vm1, %v755_v59  ;;  %v698_v58 = vpop.f32.mrf.mxu0  ;;  %v5269_v59 = vld [vmem:[%s7585_s4 + $0xd8] sm:$0xff] }
 0x17b   :  { %v720_v4 = vadd.f32 %v698_v58, %v572_v6  ;;  %1386 = vmatpush.msrb.mxu2 %v4878_v49  ;;  %1403 = vmatpush.msrb.mxu3 %v4792_v18  ;;  %v573_v6 = vadd.f32 %v553_v63, %v425_v42  ;;  %v5302_v42 = vld [vmem:[%s7585_s4 + $0x78] sm:$0xff] }
 0x17c   :  { %1298 = vmatpush.msrb.mxu1 %v5269_v59  ;;  %1856 = vmatpush.msra.mxu0 %v5086_v43 }
 0x17d   :  { %v740_v16 = vadd.f32 %v4855_v38, %v720_v4  ;;  %1387 = vmatpush.msrb.mxu2 %v4905_v52  ;;  %1404 = vmatpush.msrb.mxu3 %v4812_v24  ;;  %v277_v4 = vadd.f32 %v276_v15, %v4828_v29  ;;  %v556_v29 = vpop.f32.mrf.mxu3 }
 0x17e   :  { %1299 = vmatpush.msrb.mxu1 %v5283_v46  ;;  %1857 = vmatpush.msra.mxu0 %v5106_v14 }
 0x17f   :  { %v756_v23 = vmax.f32 %v740_v16, 0.0  ;;  %1388 = vmatpush.msrb.mxu2 %v4932_v54  ;;  %v408_v16 = vpop.f32.mrf.mxu2  ;;  %1405 = vmatpush.msrb.mxu3 %v4833_v31 }
 0x180   :  { %v426_v63 = vadd.f32 %v408_v16, %v277_v4  ;;  %1300 = vmatpush.msrb.mxu1 %v5294_v62  ;;  %1858 = vmatpush.msra.mxu0 %v5117_v2 }
 0x181   :  { %3807 = vmatmul.msk.f32.gmra.mxu1 %vm785_vm1, %v756_v23  ;;  %3823 = vmatmul.msk.f32.gmra.mxu2 %vm785_vm1, %v756_v23 }
 0x182   :  { %3839 = vmatmul.msk.f32.gmra.mxu3 %vm785_vm1, %v756_v23  ;;  %3855 = vmatmul.msk.f32.gmra.mxu0 %vm785_vm1, %v756_v23  ;;  %v701_v58 = vpop.f32.mrf.mxu0 }
 0x183   :  { %v721_v18 = vadd.f32 %v701_v58, %v573_v6  ;;  %1389 = vmatpush.msrb.mxu2 %v4960_v55  ;;  %1406 = vmatpush.msrb.mxu3 %v4863_v41  ;;  %v5316_v6 = vld [vmem:[%s7585_s4 + $0x58] sm:$0xff] }
 0x184   :  { %1301 = vmatpush.msrb.mxu1 %v5302_v42  ;;  %v5327_v58 = vld [vmem:[%s7585_s4 + $0x38] sm:$0xff]  ;;  %1859 = vmatpush.msra.mxu0 %v5127_v22 }
 0x185   :  { %v741_v23 = vadd.f32 %v4855_v38, %v721_v18  ;;  %1390 = vmatpush.msrb.mxu2 %v4986_v10  ;;  %1407 = vmatpush.msrb.mxu3 %v4891_v56  ;;  %v574_v18 = vadd.f32 %v556_v29, %v426_v63  ;;  %v5334_v63 = vld [vmem:[%s7585_s4 + $0x18] sm:$0xff] }
 0x186   :  { %1302 = vmatpush.msrb.mxu1 %v5316_v6  ;;  %1860 = vmatpush.msra.mxu0 %v5140_v40 }
 0x187   :  { %v757_v15 = vmax.f32 %v741_v23, 0.0  ;;  %1391 = vmatpush.msrb.mxu2 %v5011_v30  ;;  %1408 = vmatpush.msrb.mxu3 %v4916_v13 }
 0x188   :  { %1303 = vmatpush.msrb.mxu1 %v5327_v58 }
 0x189   :  { %3808 = vmatmul.msk.f32.gmra.mxu1 %vm785_vm1, %v757_v15  ;;  %3824 = vmatmul.msk.f32.gmra.mxu2 %vm785_vm1, %v757_v15 }
 0x18a   :  { %3840 = vmatmul.msk.f32.gmra.mxu3 %vm785_vm1, %v757_v15  ;;  %3856 = vmatmul.msk.f32.gmra.mxu0 %vm785_vm1, %v757_v15  ;;  %v704_v16 = vpop.f32.mrf.mxu0  ;;  %v7778_v15 = vmov 0.0  }
 0x18b   :  { %v722_v4 = vadd.f32 %v704_v16, %v574_v18  ;;  %1392 = vmatpush.msrb.mxu2 %v5036_v61  ;;  %1409 = vmatpush.msrb.mxu3 %v4944_v32 }
 0x18c   :  { %1304 = vmatpush.msrb.mxu1 %v5334_v63 }
 0x18d   :  { %v742_v23 = vadd.f32 %v4855_v38, %v722_v4  ;;  %1393 = vmatpush.msrb.mxu2 %v5061_v17  ;;  %1410 = vmatpush.msrb.mxu3 %v4972_v51 }
 0x18f   :  { %v758_v29 = vmax.f32 %v742_v23, 0.0  ;;  %1394 = vmatpush.msrb.mxu2 %v5086_v43  ;;  %1411 = vmatpush.msrb.mxu3 %v4997_v12 }
 0x191   :  { %3809 = vmatmul.msk.f32.gmra.mxu1 %vm785_vm1, %v758_v29  ;;  %3825 = vmatmul.msk.f32.gmra.mxu2 %vm785_vm1, %v758_v29 }
 0x192   :  { %3841 = vmatmul.msk.f32.gmra.mxu3 %vm785_vm1, %v758_v29  ;;  %3857 = vmatmul.msk.f32.gmra.mxu0 %vm785_vm1, %v758_v29  ;;  %v7786_v29 = vld [vmem:[#allocation7_spill] sm:$0xff] }
 0x193   :  { %1395 = vmatpush.msrb.mxu2 %v5106_v14  ;;  %1412 = vmatpush.msrb.mxu3 %v5022_v33 }
 0x195   :  { %1396 = vmatpush.msrb.mxu2 %v5117_v2  ;;  %1413 = vmatpush.msrb.mxu3 %v5047_v50 }
 0x196   :  { %v5356_v38 = vpop.f32.mrf.mxu1 }
 0x197   :  { %1397 = vmatpush.msrb.mxu2 %v5127_v22  ;;  %1414 = vmatpush.msrb.mxu3 %v5072_v19 }
 0x199   :  { %1245 = vmatmul.f32.vlgmr.msra.gmra.mxu1 %v7778_v15  ;;  %1265 = vmatmul.f32.vlgmr.msra.gmra.mxu2 %v7778_v15 }
 0x19a   :  { %1285 = vmatmul.f32.vlgmr.msra.gmra.mxu3 %v7778_v15  ;;  %1423 = vmatpush.msra.mxu1 %v4843_v35 }
 0x19b   :  { %1398 = vmatpush.msrb.mxu2 %v5140_v40  ;;  %1415 = vmatpush.msrb.mxu3 %v5097_v39 }
 0x19c   :  { %v5368_v18 = vpop.f32.mrf.mxu2  ;;  %1424 = vmatpush.msra.mxu1 %v4873_v48 }
 0x19d   :  { %1443 = vmatpush.msra.mxu2 %v5150_v0  ;;  %v5372_v16 = vpop.f32.mrf.mxu3  ;;  %1416 = vmatpush.msrb.mxu3 %v5132_v20 }
 0x19e   :  { %v5376_v4 = vpop.f32.mrf.mxu1  ;;  %1425 = vmatpush.msra.mxu1 %v4900_v8 }
 0x19f   :  { %1444 = vmatpush.msra.mxu2 %v5161_v60  ;;  %1417 = vmatpush.msrb.mxu3 %v5176_v5 }
 0x1a0   :  { %1426 = vmatpush.msra.mxu1 %v4927_v25  ;;  %v7781_v25 = vld [vmem:[#allocation5_spill] sm:$0xff] }
 0x1a1   :  { %1445 = vmatpush.msra.mxu2 %v5171_v57  ;;  %1305 = vmatmul.f32.vlgmr.msrb.gmra.mxu1 %v7778_v15  ;;  %v7790_v15 = vld [vmem:[#allocation10_spill] sm:$0xff] }
 0x1a2   :  { %1427 = vmatpush.msra.mxu1 %v4955_v45  ;;  %1418 = vmatpush.msrb.mxu3 %v5215_v47  ;;  %v7783_v45 = vld [vmem:[#allocation6_spill] sm:$0xff] }
 0x1a3   :  { %1446 = vmatpush.msra.mxu2 %v5184_v27 }
 0x1a4   :  { %v5389_v35 = vpop.f32.mrf.mxu2  ;;  %1428 = vmatpush.msra.mxu1 %v4981_v7  ;;  %1537 = vmatpush.msra.mxu3 %v4803_v21 }
 0x1a5   :  { %1447 = vmatpush.msra.mxu2 %v5200_v37  ;;  %v5393_v48 = vpop.f32.mrf.mxu3 }
 0x1a6   :  { %7779 = vst [vmem:[#allocation11_spill] sm:$0xff] %v5393_v48  ;;  %v5396_v8 = vpop.f32.mrf.mxu1  ;;  %1429 = vmatpush.msra.mxu1 %v5006_v28  ;;  %1538 = vmatpush.msra.mxu3 %v4820_v26 }
 0x1a7   :  { %7780 = vst [vmem:[#allocation12_spill] sm:$0xff] %v5396_v8  ;;  %1448 = vmatpush.msra.mxu2 %v5210_v11 }
 0x1a8   :  { %1430 = vmatpush.msra.mxu1 %v5031_v53  ;;  %1539 = vmatpush.msra.mxu3 %v4848_v36  ;;  %v7787_v36 = vld [vmem:[#allocation8_spill] sm:$0xff] }
 0x1a9   :  { %1449 = vmatpush.msra.mxu2 %v5228_v9 }
 0x1aa   :  { %1431 = vmatpush.msra.mxu1 %v7781_v25  ;;  %1540 = vmatpush.msra.mxu3 %v4878_v49  ;;  %v7788_v49 = vld [vmem:[#allocation9_spill] sm:$0xff] }
 0x1ab   :  { %1450 = vmatpush.msra.mxu2 %v5241_v1 }
 0x1ac   :  { %v5407_v21 = vpop.f32.mrf.mxu2  ;;  %1432 = vmatpush.msra.mxu1 %v7783_v45  ;;  %1541 = vmatpush.msra.mxu3 %v4905_v52 }
 0x1ad   :  { %7782 = vst [vmem:[#allocation5_spill] sm:$0xff] %v5407_v21  ;;  %1451 = vmatpush.msra.mxu2 %v5256_v34  ;;  %v5411_v23 = vpop.f32.mrf.mxu3 }
 0x1ae   :  { %7784 = vst [vmem:[#allocation6_spill] sm:$0xff] %v5411_v23  ;;  %v5414_v26 = vpop.f32.mrf.mxu1  ;;  %1433 = vmatpush.msra.mxu1 %v7786_v29  ;;  %1542 = vmatpush.msra.mxu3 %v4932_v54 }
 0x1af   :  { %7785 = vst [vmem:[#allocation13_spill] sm:$0xff] %v5414_v26  ;;  %1452 = vmatpush.msra.mxu2 %v5269_v59 }
 0x1b0   :  { %1434 = vmatpush.msra.mxu1 %v7787_v36  ;;  %1543 = vmatpush.msra.mxu3 %v4960_v55  ;;  %v7793_v55 = vld [vmem:[#allocation4_spill] sm:$0xff] }
 0x1b1   :  { %1453 = vmatpush.msra.mxu2 %v5283_v46 }
 0x1b2   :  { %1435 = vmatpush.msra.mxu1 %v7788_v49  ;;  %1544 = vmatpush.msra.mxu3 %v4986_v10 }
 0x1b3   :  { %1454 = vmatpush.msra.mxu2 %v5294_v62 }
 0x1b4   :  { %v5425_v52 = vpop.f32.mrf.mxu2  ;;  %1436 = vmatpush.msra.mxu1 %v7790_v15  ;;  %1545 = vmatpush.msra.mxu3 %v5011_v30 }
 0x1b5   :  { %7789 = vst [vmem:[#allocation7_spill] sm:$0xff] %v5425_v52  ;;  %1455 = vmatpush.msra.mxu2 %v5302_v42  ;;  %v5429_v26 = vpop.f32.mrf.mxu3 }
 0x1b6   :  { %7791 = vst [vmem:[#allocation8_spill] sm:$0xff] %v5429_v26  ;;  %v5432_v54 = vpop.f32.mrf.mxu1  ;;  %1437 = vmatpush.msra.mxu1 %v5246_v3  ;;  %1546 = vmatpush.msra.mxu3 %v5036_v61 }
 0x1b7   :  { %7792 = vst [vmem:[#allocation9_spill] sm:$0xff] %v5432_v54  ;;  %1456 = vmatpush.msra.mxu2 %v5316_v6 }
 0x1b8   :  { %1438 = vmatpush.msra.mxu1 %v5261_v44  ;;  %1547 = vmatpush.msra.mxu3 %v5061_v17 }
 0x1b9   :  { %1457 = vmatpush.msra.mxu2 %v5327_v58 }
 0x1ba   :  { %1557 = vmatpush.msrb.mxu1 %v7793_v55  ;;  %1548 = vmatpush.msra.mxu3 %v5086_v43 }
 0x1bb   :  { %1458 = vmatpush.msra.mxu2 %v5334_v63 }
 0x1bc   :  { %1558 = vmatpush.msrb.mxu1 %v4812_v24  ;;  %v5444_v10 = vpop.f32.mrf.mxu2  ;;  %1549 = vmatpush.msra.mxu3 %v5106_v14 }
 0x1bd   :  { %7794 = vst [vmem:[#allocation10_spill] sm:$0xff] %v5444_v10  ;;  %v5446_v30 = vpop.f32.mrf.mxu3 }
 0x1be   :  { %7795 = vst [vmem:[#allocation4_spill] sm:$0xff] %v5446_v30  ;;  %1559 = vmatpush.msrb.mxu1 %v4833_v31  ;;  %v5450_v61 = vpop.f32.mrf.mxu1  ;;  %1550 = vmatpush.msra.mxu3 %v5117_v2 }
 0x1bf   :  { %7796 = vst [vmem:[#allocation14_spill] sm:$0xff] %v5450_v61 }
 0x1c0   :  { %1560 = vmatpush.msrb.mxu1 %v4863_v41  ;;  %1551 = vmatpush.msra.mxu3 %v5127_v22 }
 0x1c2   :  { %1561 = vmatpush.msrb.mxu1 %v4891_v56  ;;  %1552 = vmatpush.msra.mxu3 %v5140_v40 }
 0x1c4   :  { %1562 = vmatpush.msrb.mxu1 %v4916_v13  ;;  %v5458_v24 = vpop.f32.mrf.mxu2 }
 0x1c5   :  { %7797 = vst [vmem:[#allocation15_spill] sm:$0xff] %v5458_v24  ;;  %v5460_v17 = vpop.f32.mrf.mxu3 }
 0x1c6   :  { %7798 = vst [vmem:[#allocation16_spill] sm:$0xff] %v5460_v17  ;;  %1563 = vmatpush.msrb.mxu1 %v4944_v32  ;;  %v5463_v31 = vpop.f32.mrf.mxu1 }
 0x1c7   :  { %7799 = vst [vmem:[#allocation17_spill] sm:$0xff] %v5463_v31  ;;  %v1046_v31 = vpop.f32.mrf.mxu0 }
 0x1c8   :  { %1564 = vmatpush.msrb.mxu1 %v4972_v51 }
 0x1ca   :  { %1565 = vmatpush.msrb.mxu1 %v4997_v12 }
 0x1cc   :  { %1566 = vmatpush.msrb.mxu1 %v5022_v33  ;;  %v5468_v41 = vpop.f32.mrf.mxu2 }
 0x1cd   :  { %7800 = vst [vmem:[#allocation18_spill] sm:$0xff] %v5468_v41  ;;  %v5470_v56 = vpop.f32.mrf.mxu3 }
 0x1ce   :  { %7801 = vst [vmem:[#allocation19_spill] sm:$0xff] %v5470_v56  ;;  %1567 = vmatpush.msrb.mxu1 %v5047_v50  ;;  %v5473_v13 = vpop.f32.mrf.mxu1 }
 0x1cf   :  { %7802 = vst [vmem:[#allocation20_spill] sm:$0xff] %v5473_v13 }
 0x1d0   :  { %1568 = vmatpush.msrb.mxu1 %v5072_v19 }
 0x1d2   :  { %1569 = vmatpush.msrb.mxu1 %v5097_v39 }
 0x1d4   :  { %1570 = vmatpush.msrb.mxu1 %v5132_v20  ;;  %v5478_v32 = vpop.f32.mrf.mxu2 }
 0x1d5   :  { %7803 = vst [vmem:[#allocation21_spill] sm:$0xff] %v5478_v32  ;;  %v5480_v51 = vpop.f32.mrf.mxu3 }
 0x1d6   :  { %7804 = vst [vmem:[#allocation22_spill] sm:$0xff] %v5480_v51  ;;  %1571 = vmatpush.msrb.mxu1 %v5176_v5  ;;  %v5483_v12 = vpop.f32.mrf.mxu1 }
 0x1d7   :  { %7805 = vst [vmem:[#allocation23_spill] sm:$0xff] %v5483_v12 }
 0x1d8   :  { %1572 = vmatpush.msrb.mxu1 %v5215_v47 }
 0x1dc   :  { %v5486_v43 = vpop.f32.mrf.mxu2 }
 0x1dd   :  { %7806 = vst [vmem:[#allocation24_spill] sm:$0xff] %v5486_v43  ;;  %v5488_v14 = vpop.f32.mrf.mxu3 }
 0x1de   :  { %7807 = vst [vmem:[#allocation25_spill] sm:$0xff] %v5488_v14  ;;  %v5490_v2 = vpop.f32.mrf.mxu1 }
 0x1df   :  { %7808 = vst [vmem:[#allocation26_spill] sm:$0xff] %v5490_v2 }
 0x1e4   :  { %v5492_v22 = vpop.f32.mrf.mxu2 }
 0x1e5   :  { %7809 = vst [vmem:[#allocation27_spill] sm:$0xff] %v5492_v22  ;;  %v5496_v55 = vpop.f32.mrf.mxu3 }
 0x1e6   :  { %v5494_v40 = vpop.f32.mrf.mxu1  ;;  %7811 = vst [vmem:[#allocation29_spill] sm:$0xff] %v5496_v55 }
 0x1e7   :  { %7810 = vst [vmem:[#allocation28_spill] sm:$0xff] %v5494_v40 }
 0x1ec   :  { %v5498_v32 = vpop.f32.mrf.mxu2 }
 0x1ed   :  { %7812 = vst [vmem:[#allocation30_spill] sm:$0xff] %v5498_v32  ;;  %v5502_v13 = vpop.f32.mrf.mxu3 }
 0x1ee   :  { %v5500_v51 = vpop.f32.mrf.mxu1  ;;  %7814 = vst [vmem:[#allocation32_spill] sm:$0xff] %v5502_v13 }
 0x1ef   :  { %7813 = vst [vmem:[#allocation31_spill] sm:$0xff] %v5500_v51 }
 0x1f4   :  { %v5504_v12 = vpop.f32.mrf.mxu2 }
 0x1f5   :  { %7815 = vst [vmem:[#allocation33_spill] sm:$0xff] %v5504_v12  ;;  %v5508_v43 = vpop.f32.mrf.mxu3  ;;  %v775_v12 = vld [vmem:[%s7586_s5] sm:$0xf] }
 0x1f6   :  { %v5506_v56 = vpop.f32.mrf.mxu1  ;;  %7817 = vst [vmem:[#allocation35_spill] sm:$0xff] %v5508_v43  ;;  %v5529_v43 = vperm.slane %v775_v12, 0 }
 0x1f7   :  { %7816 = vst [vmem:[#allocation34_spill] sm:$0xff] %v5506_v56 }
 0x1f8   :  { %7826 = vst [vmem:[#allocation44_spill] sm:$0xff] %v5529_v43 }
 0x1fc   :  { %v5510_v14 = vpop.f32.mrf.mxu2 }
 0x1fd   :  { %7818 = vst [vmem:[#allocation36_spill] sm:$0xff] %v5510_v14  ;;  %v5516_v40 = vpop.f32.mrf.mxu3 }
 0x1fe   :  { %v5512_v2 = vpop.f32.mrf.mxu1  ;;  %7821 = vst [vmem:[#allocation39_spill] sm:$0xff] %v5516_v40  ;;  %v5535_v40 = vperm.slane %v775_v12, 1 }
 0x1ff   :  { %7819 = vst [vmem:[#allocation37_spill] sm:$0xff] %v5512_v2 }
 0x200   :  { %7828 = vst [vmem:[#allocation46_spill] sm:$0xff] %v5535_v40 }
 0x204   :  { %v5514_v22 = vpop.f32.mrf.mxu2 }
 0x205   :  { %7820 = vst [vmem:[#allocation38_spill] sm:$0xff] %v5514_v22  ;;  %v5527_v56 = vpop.f32.mrf.mxu3  ;;  %v852_v22 = vadd.f32 %v5356_v38, %v5529_v43 }
 0x206   :  { %v5518_v55 = vpop.f32.mrf.mxu1  ;;  %7825 = vst [vmem:[#allocation43_spill] sm:$0xff] %v5527_v56 }
 0x207   :  { %7822 = vst [vmem:[#allocation40_spill] sm:$0xff] %v5518_v55 }
 0x20c   :  { %v5520_v32 = vpop.f32.mrf.mxu2 }
 0x20d   :  { %7823 = vst [vmem:[#allocation41_spill] sm:$0xff] %v5520_v32  ;;  %v5537_v32 = vperm.slane %v775_v12, 3  ;;  %v5539_v13 = vpop.f32.mrf.mxu3 }
 0x20e   :  { %v5525_v51 = vpop.f32.mrf.mxu1  ;;  %7830 = vst [vmem:[#allocation48_spill] sm:$0xff] %v5539_v13 }
 0x20f   :  { %7824 = vst [vmem:[#allocation42_spill] sm:$0xff] %v5525_v51  ;;  %v917_v51 = vadd.f32 %v5368_v18, %v5535_v40 }
 0x210   :  { %7829 = vst [vmem:[#allocation47_spill] sm:$0xff] %v5537_v32 }
 0x214   :  { %v5531_v14 = vpop.f32.mrf.mxu2 }
 0x215   :  { %7827 = vst [vmem:[#allocation45_spill] sm:$0xff] %v5531_v14  ;;  %v1047_v14 = vadd.f32 %v1046_v31, %v5537_v32  ;;  %v5544_v10 = vpop.f32.mrf.mxu3 }
 0x216   :  { %v1246_v2 = vpop.f32.mrf.mxu1  ;;  %7831 = vst [vmem:[#allocation49_spill] sm:$0xff] %v5544_v10 }
 0x217   :  { %v1309_v55 = vadd.f32 %v1246_v2, %v852_v22 }
 0x219   :  { %v3858_v41 = vmul.f32 -1.442695, %v1309_v55 }
 0x21b   :  { %3908 = vpow2.f32 %v3858_v41  ;;  %v5546_v41 = vperm.slane %v775_v12, 2 }
 0x21c   :  { %v1266_v56 = vpop.f32.mrf.mxu2 }
 0x21d   :  { %v1310_v17 = vadd.f32 %v1266_v56, %v917_v51  ;;  %7832 = vst [vmem:[#allocation50_spill] sm:$0xff] %v5546_v41 }
 0x21e   :  { %v1306_v24 = vpop.f32.mrf.mxu1 }
 0x21f   :  { %v3859_v38 = vmul.f32 -1.442695, %v1310_v17  ;;  %v1312_v61 = vadd.f32 %v1306_v24, %v1047_v14  ;;  %v1286_v17 = vpop.f32.mrf.mxu3 }
 0x221   :  { %v3909_v30 = vpop.eup %3908  ;;  %3910 = vpow2.f32 %v3859_v38  ;;  %v3860_v2 = vmul.f32 -1.442695, %v1312_v61  ;;  %v982_v61 = vadd.f32 %v5372_v16, %v5546_v41 }
 0x222   :  { %v1316_v22 = vadd.f32 1.0, %v3909_v30 }
 0x223   :  { %3912 = vpow2.f32 %v3860_v2  ;;  %v1311_v14 = vadd.f32 %v1286_v17, %v982_v61 }
 0x224   :  { %3914 = vrcp.f32 %v1316_v22  ;;  %vm1322_vm3 = vweird.f32 %v1316_v22  ;;  %v1326_v12 = vand.u32 2147483647, %v1316_v22 }
 0x226   :  { %vm1327_vm7 = vcmp.eq.f32.partialorder %v1326_v12, 8.507059e+37  ;;  %v5602_v12 = vld [vmem:[%s7585_s4 + $0x170] sm:$0xff] }
 0x227   :  { %v3911_v55 = vpop.eup %3910 }
 0x228   :  { %v1335_v13 = vadd.f32 1.0, %v3911_v55  ;;  %v1328_v55 = vand.u32 2147483648, %v1316_v22 }
 0x229   :  { %v3913_v54 = vpop.eup %3912 }
 0x22a   :  { %v3915_v18 = vpop.eup %3914  ;;  %3916 = vrcp.f32 %v1335_v13  ;;  %v1355_v56 = vadd.f32 1.0, %v3913_v54  ;;  %v1347_v52 = vand.u32 2147483648, %v1335_v13  ;;  %v1345_v8 = vand.u32 2147483647, %v1335_v13 }
 0x22b   :  { %v1318_v31 = vmul.f32 %v3915_v18, %v1316_v22  ;;  %vm1323_vm2 = vweird.f32 %v3915_v18  ;;  %v1329_v16 = vor.u32 1.1754944e-38, %v1328_v55  ;;  %vm1341_vm6 = vweird.f32 %v1335_v13  ;;  %v5595_v55 = vld [vmem:[%s7585_s4 + $0x190] sm:$0xff] }
 0x22c   :  { %3918 = vrcp.f32 %v1355_v56  ;;  %vm1324_vm4 = vmor %vm1322_vm3, %vm1323_vm2  ;;  %v1348_v61 = vor.u32 1.1754944e-38, %v1347_v52  ;;  %vm1346_vm9 = vcmp.eq.f32.partialorder %v1345_v8, 8.507059e+37  ;;  %vm1361_vm11 = vweird.f32 %v1355_v56 }
 0x22d   :  { %v1319_v51 = vsub.f32 1.0, %v1318_v31  ;;  %3920 = vtanh.f32 %v1311_v14 }
 0x22f   :  { %v1320_v30 = vmul.f32 %v3915_v18, %v1319_v51 }
 0x230   :  { %v3917_v24 = vpop.eup %3916 }
 0x231   :  { %v1337_v38 = vmul.f32 %v3917_v24, %v1335_v13  ;;  %v1321_v2 = vadd.f32 %v3915_v18, %v1320_v30  ;;  %vm1342_vm5 = vweird.f32 %v3917_v24  ;;  %v1365_v13 = vand.u32 2147483647, %v1355_v56 }
 0x232   :  { %v3919_v10 = vpop.eup %3918  ;;  %vm1343_vm8 = vmor %vm1341_vm6, %vm1342_vm5 }
 0x233   :  { %v1338_v26 = vsub.f32 1.0, %v1337_v38  ;;  %v1357_v54 = vmul.f32 %v3919_v10, %v1355_v56  ;;  %v1325_v23 = vsel %vm1324_vm4, %v3915_v18, %v1321_v2  ;;  %v3921_v38 = vpop.eup %3920  ;;  %vm1362_vm10 = vweird.f32 %v3919_v10 }
 0x234   :  { %v1330_v30 = vsel %vm1327_vm7, %v1329_v16, %v1325_v23  ;;  %v1367_v18 = vand.u32 2147483648, %v1355_v56  ;;  %vm1363_vm12 = vmor %vm1361_vm11, %vm1362_vm10  ;;  %vm1366_vm13 = vcmp.eq.f32.partialorder %v1365_v13, 8.507059e+37  ;;  %v5589_v56 = vld [vmem:[%s7585_s4 + $0x1a8] sm:$0xff] }
 0x235   :  { %v1339_v31 = vmul.f32 %v3917_v24, %v1338_v26  ;;  %v1358_v51 = vsub.f32 1.0, %v1357_v54  ;;  %v1372_v14 = vmul.f32 %v3921_v38, %v1330_v30  ;;  %v5608_v54 = vld [vmem:[%s7585_s4 + $0x188] sm:$0xff] }
 0x236   :  { %v1368_v23 = vor.u32 1.1754944e-38, %v1367_v18  ;;  %v5624_v16 = vld [vmem:[%s7585_s4 + $0x148] sm:$0xff] }
 0x237   :  { %v1340_v17 = vadd.f32 %v3917_v24, %v1339_v31  ;;  %v1359_v48 = vmul.f32 %v3919_v10, %v1358_v51  ;;  %v5616_v31 = vld [vmem:[%s7585_s4 + $0x168] sm:$0xff] }
 0x238   :  { %v5648_v51 = vld [vmem:[%s7585_s4 + $0xe8] sm:$0xff] }
 0x239   :  { %v1344_v21 = vsel %vm1343_vm8, %v3917_v24, %v1340_v17  ;;  %v1360_v26 = vadd.f32 %v3919_v10, %v1359_v48  ;;  %v5563_v48 = vld [vmem:[%s7585_s4 + $0x1e8] sm:$0xff] }
 0x23a   :  { %v1349_v22 = vsel %vm1346_vm9, %v1348_v61, %v1344_v21  ;;  %v5556_v21 = vld [vmem:[%s7585_s4 + $0x1f0] sm:$0xff] }
 0x23b   :  { %v1371_v41 = vmul.f32 0.0, %v1349_v22  ;;  %v1364_v52 = vsel %vm1363_vm12, %v3919_v10, %v1360_v26  ;;  %v5569_v10 = vld [vmem:[%s7585_s4 + $0x1d0] sm:$0xff]  ;;  %v7835_v26 = vld [vmem:[#allocation11_spill] sm:$0xff] }
 0x23c   :  { %v1369_v8 = vsel %vm1366_vm13, %v1368_v23, %v1364_v52 }
 0x23d   :  { %v5550_v32 = vadd.f32 %v1372_v14, %v1371_v41  ;;  %v5582_v41 = vld [vmem:[%s7585_s4 + $0x1b0] sm:$0xff] }
 0x23e   :  { %v7834_v14 = vld [vmem:[#allocation50_spill] sm:$0xff] }
 0x23f   :  { %3922 = vtanh.f32 %v5550_v32  ;;  %v985_v18 = vadd.f32 %v7835_v26, %v7834_v14 }
 0x245   :  { %v3923_v24 = vpop.eup %3922 }
 0x246   :  { %v1375_v2 = vmul.f32 %v3923_v24, %v1369_v8 }
 0x248   :  { %1399 = vmatmul.f32.vlgmr.msrb.gmra.mxu2 %v1375_v2  ;;  %1419 = vmatmul.f32.vlgmr.msrb.gmra.mxu3 %v1375_v2 }
 0x249   :  { %1439 = vmatmul.f32.vlgmr.msra.gmra.mxu1 %v1375_v2  ;;  %1577 = vmatpush.msrb.mxu2 %v5556_v21 }
 0x24a   :  { %1597 = vmatpush.msrb.mxu3 %v5150_v0  ;;  %1711 = vmatpush.msra.mxu1 %v5563_v48  ;;  %v5576_v0 = vld [vmem:[%s7585_s4 + $0x1c8] sm:$0xff] }
 0x24b   :  { %1578 = vmatpush.msrb.mxu2 %v5569_v10 }
 0x24c   :  { %1598 = vmatpush.msrb.mxu3 %v5161_v60  ;;  %1712 = vmatpush.msra.mxu1 %v5576_v0 }
 0x24d   :  { %1579 = vmatpush.msrb.mxu2 %v5582_v41 }
 0x24e   :  { %1599 = vmatpush.msrb.mxu3 %v5171_v57  ;;  %1713 = vmatpush.msra.mxu1 %v5589_v56 }
 0x24f   :  { %1580 = vmatpush.msrb.mxu2 %v5595_v55 }
 0x250   :  { %1459 = vmatmul.f32.vlgmr.msra.gmra.mxu2 %v1375_v2  ;;  %1600 = vmatpush.msrb.mxu3 %v5184_v27 }
 0x251   :  { %1581 = vmatpush.msrb.mxu2 %v5602_v12  ;;  %1714 = vmatpush.msra.mxu1 %v5608_v54 }
 0x252   :  { %1601 = vmatpush.msrb.mxu3 %v5200_v37 }
 0x253   :  { %1582 = vmatpush.msrb.mxu2 %v4981_v7  ;;  %1715 = vmatpush.msra.mxu1 %v5616_v31  ;;  %v5632_v7 = vld [vmem:[%s7585_s4 + $0x128] sm:$0xff] }
 0x254   :  { %1602 = vmatpush.msrb.mxu3 %v5210_v11 }
 0x255   :  { %1583 = vmatpush.msrb.mxu2 %v5006_v28  ;;  %1716 = vmatpush.msra.mxu1 %v5624_v16  ;;  %v5640_v28 = vld [vmem:[%s7585_s4 + $0x108] sm:$0xff] }
 0x256   :  { %1603 = vmatpush.msrb.mxu3 %v5228_v9 }
 0x257   :  { %1584 = vmatpush.msrb.mxu2 %v5031_v53  ;;  %1717 = vmatpush.msra.mxu1 %v5632_v7 }
 0x258   :  { %1604 = vmatpush.msrb.mxu3 %v5241_v1 }
 0x259   :  { %1585 = vmatpush.msrb.mxu2 %v7781_v25  ;;  %1718 = vmatpush.msra.mxu1 %v5640_v28 }
 0x25a   :  { %1605 = vmatpush.msrb.mxu3 %v5256_v34 }
 0x25b   :  { %1586 = vmatpush.msrb.mxu2 %v7783_v45  ;;  %1719 = vmatpush.msra.mxu1 %v5648_v51 }
 0x25c   :  { %1606 = vmatpush.msrb.mxu3 %v5269_v59 }
 0x25d   :  { %1587 = vmatpush.msrb.mxu2 %v7786_v29  ;;  %1720 = vmatpush.msra.mxu1 %v5022_v33  ;;  %v5679_v33 = vld [vmem:[%s7585_s4 + $0x150] sm:$0xff] }
 0x25e   :  { %1607 = vmatpush.msrb.mxu3 %v5283_v46 }
 0x25f   :  { %1588 = vmatpush.msrb.mxu2 %v7787_v36  ;;  %1721 = vmatpush.msra.mxu1 %v5047_v50  ;;  %v5685_v50 = vld [vmem:[%s7585_s4 + $0x130] sm:$0xff] }
 0x260   :  { %1608 = vmatpush.msrb.mxu3 %v5294_v62 }
 0x261   :  { %1589 = vmatpush.msrb.mxu2 %v7788_v49  ;;  %1722 = vmatpush.msra.mxu1 %v5072_v19  ;;  %v855_v19 = vadd.f32 %v5376_v4, %v5529_v43 }
 0x262   :  { %1609 = vmatpush.msrb.mxu3 %v5302_v42 }
 0x263   :  { %1590 = vmatpush.msrb.mxu2 %v7790_v15  ;;  %1723 = vmatpush.msra.mxu1 %v5097_v39 }
 0x264   :  { %1610 = vmatpush.msrb.mxu3 %v5316_v6 }
 0x265   :  { %1591 = vmatpush.msrb.mxu2 %v5246_v3  ;;  %1724 = vmatpush.msra.mxu1 %v5132_v20 }
 0x266   :  { %1611 = vmatpush.msrb.mxu3 %v5327_v58 }
 0x267   :  { %1592 = vmatpush.msrb.mxu2 %v5261_v44  ;;  %1725 = vmatpush.msra.mxu1 %v5176_v5 }
 0x268   :  { %1612 = vmatpush.msrb.mxu3 %v5334_v63 }
 0x269   :  { %1731 = vmatpush.msra.mxu2 %v5556_v21  ;;  %1726 = vmatpush.msra.mxu1 %v5215_v47 }
 0x26b   :  { %1732 = vmatpush.msra.mxu2 %v5569_v10 }
 0x26d   :  { %1733 = vmatpush.msra.mxu2 %v5582_v41 }
 0x26f   :  { %1734 = vmatpush.msra.mxu2 %v5595_v55 }
 0x271   :  { %1735 = vmatpush.msra.mxu2 %v5602_v12 }
 0x273   :  { %1736 = vmatpush.msra.mxu2 %v5679_v33 }
 0x275   :  { %1737 = vmatpush.msra.mxu2 %v5685_v50 }
 0x277   :  { %1738 = vmatpush.msra.mxu2 %v5031_v53  ;;  %v920_v53 = vadd.f32 %v5389_v35, %v5535_v40 }
 0x279   :  { %1739 = vmatpush.msra.mxu2 %v7781_v25 }
 0x27b   :  { %1740 = vmatpush.msra.mxu2 %v7783_v45 }
 0x27d   :  { %1741 = vmatpush.msra.mxu2 %v7786_v29  ;;  %v1049_v29 = vpop.f32.mrf.mxu0 }
 0x27f   :  { %1742 = vmatpush.msra.mxu2 %v7787_v36  ;;  %v7833_v36 = vld [vmem:[#allocation47_spill] sm:$0xff] }
 0x281   :  { %1743 = vmatpush.msra.mxu2 %v7788_v49  ;;  %v1050_v49 = vadd.f32 %v1049_v29, %v7833_v36 }
 0x283   :  { %1744 = vmatpush.msra.mxu2 %v7790_v15 }
 0x285   :  { %1745 = vmatpush.msra.mxu2 %v5246_v3 }
 0x287   :  { %1746 = vmatpush.msra.mxu2 %v5261_v44 }
 0x2c6   :  { %v1440_v35 = vpop.f32.mrf.mxu1 }
 0x2c7   :  { %v1465_v23 = vadd.f32 %v1440_v35, %v985_v18 }
 0x2cb   :  { %v1400_v39 = vpop.f32.mrf.mxu2  ;;  %v1420_v20 = vpop.f32.mrf.mxu3 }
 0x2cc   :  { %v1463_v5 = vadd.f32 %v1400_v39, %v855_v19  ;;  %v1464_v47 = vadd.f32 %v1420_v20, %v920_v53 }
 0x2ce   :  { %v3861_v25 = vmul.f32 -1.442695, %v1463_v5  ;;  %v3862_v45 = vmul.f32 -1.442695, %v1464_v47 }
 0x2d0   :  { %3924 = vpow2.f32 %v3861_v25 }
 0x2d1   :  { %3926 = vpow2.f32 %v3862_v45 }
 0x2d3   :  { %v1460_v15 = vpop.f32.mrf.mxu2 }
 0x2d4   :  { %v1466_v17 = vadd.f32 %v1460_v15, %v1050_v49 }
 0x2d6   :  { %v3925_v61 = vpop.eup %3924  ;;  %v3863_v30 = vmul.f32 -1.442695, %v1466_v17 }
 0x2d7   :  { %v3927_v38 = vpop.eup %3926  ;;  %v1470_v4 = vadd.f32 1.0, %v3925_v61 }
 0x2d8   :  { %v1489_v22 = vadd.f32 1.0, %v3927_v38  ;;  %3928 = vpow2.f32 %v3863_v30 }
 0x2d9   :  { %3930 = vrcp.f32 %v1470_v4  ;;  %v1482_v39 = vand.u32 2147483648, %v1470_v4  ;;  %v1480_v47 = vand.u32 2147483647, %v1470_v4  ;;  %vm1476_vm0 = vweird.f32 %v1470_v4 }
 0x2da   :  { %3932 = vrcp.f32 %v1489_v22  ;;  %v1501_v25 = vand.u32 2147483648, %v1489_v22  ;;  %v1499_v29 = vand.u32 2147483647, %v1489_v22  ;;  %vm1495_vm2 = vweird.f32 %v1489_v22 }
 0x2db   :  { %v1483_v17 = vor.u32 1.1754944e-38, %v1482_v39  ;;  %vm1481_vm3 = vcmp.eq.f32.partialorder %v1480_v47, 8.507059e+37 }
 0x2dc   :  { %v1502_v38 = vor.u32 1.1754944e-38, %v1501_v25  ;;  %vm1500_vm5 = vcmp.eq.f32.partialorder %v1499_v29, 8.507059e+37  ;;  %v5787_v29 = vld [vmem:[%s7585_s4 + $0x90] sm:$0xff] }
 0x2dd   :  { %7840 = vst [vmem:[#allocation54_spill] sm:$0xff] %v5787_v29 }
 0x2de   :  { %v3929_v13 = vpop.eup %3928 }
 0x2df   :  { %v3931_v52 = vpop.eup %3930  ;;  %v1509_v24 = vadd.f32 1.0, %v3929_v13 }
 0x2e0   :  { %v3933_v8 = vpop.eup %3932  ;;  %v1472_v2 = vmul.f32 %v3931_v52, %v1470_v4  ;;  %vm1477_vm14 = vweird.f32 %v3931_v52 }
 0x2e1   :  { %v1491_v19 = vmul.f32 %v3933_v8, %v1489_v22  ;;  %3934 = vrcp.f32 %v1509_v24  ;;  %vm1496_vm15 = vweird.f32 %v3933_v8  ;;  %vm1478_vm1 = vmor %vm1476_vm0, %vm1477_vm14  ;;  %v1521_v22 = vand.u32 2147483648, %v1509_v24 }
 0x2e2   :  { %v1473_v53 = vsub.f32 1.0, %v1472_v2  ;;  %3936 = vtanh.f32 %v1465_v23  ;;  %vm1497_vm4 = vmor %vm1495_vm2, %vm1496_vm15  ;;  %vm1515_vm7 = vweird.f32 %v1509_v24 }
 0x2e3   :  { %v1492_v20 = vsub.f32 1.0, %v1491_v19  ;;  %v1522_v47 = vor.u32 1.1754944e-38, %v1521_v22 }
 0x2e4   :  { %v1474_v5 = vmul.f32 %v3931_v52, %v1473_v53 }
 0x2e5   :  { %v1493_v45 = vmul.f32 %v3933_v8, %v1492_v20 }
 0x2e6   :  { %v1475_v49 = vadd.f32 %v3931_v52, %v1474_v5 }
 0x2e7   :  { %v3935_v15 = vpop.eup %3934  ;;  %v1494_v61 = vadd.f32 %v3933_v8, %v1493_v45 }
 0x2e8   :  { %v1479_v30 = vsel %vm1478_vm1, %v3931_v52, %v1475_v49  ;;  %v1511_v35 = vmul.f32 %v3935_v15, %v1509_v24  ;;  %v3937_v26 = vpop.eup %3936  ;;  %vm1516_vm6 = vweird.f32 %v3935_v15  ;;  %v1519_v52 = vand.u32 2147483647, %v1509_v24  ;;  %v5780_v24 = vld [vmem:[%s7585_s4 + $0x88] sm:$0xff] }
 0x2e9   :  { %v1484_v18 = vsel %vm1481_vm3, %v1483_v17, %v1479_v30  ;;  %v1498_v13 = vsel %vm1497_vm4, %v3933_v8, %v1494_v61  ;;  %vm1517_vm8 = vmor %vm1515_vm7, %vm1516_vm6  ;;  %7839 = vst [vmem:[#allocation53_spill] sm:$0xff] %v5780_v24  ;;  %v5793_v49 = vld [vmem:[%s7585_s4 + $0x68] sm:$0xff]  ;;  %v5813_v61 = vld [vmem:[%s7585_s4 + $0x50] sm:$0xff] }
 0x2ea   :  { %v1526_v23 = vmul.f32 %v3937_v26, %v1484_v18  ;;  %v1503_v2 = vsel %vm1500_vm5, %v1502_v38, %v1498_v13  ;;  %v1512_v19 = vsub.f32 1.0, %v1511_v35  ;;  %vm1520_vm9 = vcmp.eq.f32.partialorder %v1519_v52, 8.507059e+37  ;;  %7841 = vst [vmem:[#allocation55_spill] sm:$0xff] %v5793_v49  ;;  %v5806_v17 = vld [vmem:[%s7585_s4 + $0x48] sm:$0xff]  ;;  %v5835_v35 = vld [vmem:[%s7585_s4 + $0x1d8] sm:$0xff] }
 0x2eb   :  { %v1525_v53 = vmul.f32 %v1503_v2, %v5550_v32  ;;  %v5711_v32 = vld [vmem:[%s7585_s4 + $0x1f8] sm:$0xff]  ;;  %7843 = vst [vmem:[#allocation57_spill] sm:$0xff] %v5806_v17  ;;  %v5819_v30 = vld [vmem:[%s7585_s4 + $0x28] sm:$0xff] }
 0x2ec   :  { %v1513_v4 = vmul.f32 %v3935_v15, %v1512_v19  ;;  %7844 = vst [vmem:[#allocation58_spill] sm:$0xff] %v5813_v61  ;;  %v5828_v38 = vld [vmem:[%s7585_s4 + $0x8] sm:$0xff]  ;;  %v5847_v26 = vld [vmem:[%s7585_s4 + $0x198] sm:$0xff] }
 0x2ed   :  { %v5705_v20 = vadd.f32 %v1526_v23, %v1525_v53  ;;  %7845 = vst [vmem:[#allocation59_spill] sm:$0xff] %v5819_v30  ;;  %v5859_v18 = vld [vmem:[%s7585_s4 + $0x158] sm:$0xff]  ;;  %v7847_v23 = vld [vmem:[#allocation5_spill] sm:$0xff] }
 0x2ee   :  { %v1514_v39 = vadd.f32 %v3935_v15, %v1513_v4  ;;  %7846 = vst [vmem:[#allocation60_spill] sm:$0xff] %v5828_v38  ;;  %v5865_v13 = vld [vmem:[%s7585_s4 + $0x138] sm:$0xff]  ;;  %v923_v2 = vadd.f32 %v7847_v23, %v5535_v40 }
 0x2ef   :  { %3938 = vtanh.f32 %v5705_v20 }
 0x2f0   :  { %v1518_v5 = vsel %vm1517_vm8, %v3935_v15, %v1514_v39  ;;  %v5800_v15 = vld [vmem:[%s7585_s4 + $0x70] sm:$0xff] }
 0x2f1   :  { %v1523_v25 = vsel %vm1520_vm9, %v1522_v47, %v1518_v5  ;;  %7842 = vst [vmem:[#allocation56_spill] sm:$0xff] %v5800_v15 }
 0x2f5   :  { %v3939_v8 = vpop.eup %3938 }
 0x2f6   :  { %v1529_v45 = vmul.f32 %v3939_v8, %v1523_v25 }
 0x2f8   :  { %1553 = vmatmul.f32.vlgmr.msra.gmra.mxu3 %v1529_v45  ;;  %1573 = vmatmul.f32.vlgmr.msrb.gmra.mxu1 %v1529_v45 }
 0x2f9   :  { %1593 = vmatmul.f32.vlgmr.msrb.gmra.mxu2 %v1529_v45  ;;  %1751 = vmatpush.msra.mxu3 %v5711_v32 }
 0x2fa   :  { %1865 = vmatpush.msrb.mxu1 %v5563_v48  ;;  %1885 = vmatpush.msrb.mxu2 %v5556_v21 }
 0x2fb   :  { %1752 = vmatpush.msra.mxu3 %v5161_v60  ;;  %v5740_v60 = vld [vmem:[%s7585_s4 + $0x110] sm:$0xff] }
 0x2fc   :  { %1866 = vmatpush.msrb.mxu1 %v5576_v0  ;;  %1886 = vmatpush.msrb.mxu2 %v5569_v10 }
 0x2fd   :  { %1753 = vmatpush.msra.mxu3 %v5171_v57  ;;  %v5748_v57 = vld [vmem:[%s7585_s4 + $0xf0] sm:$0xff] }
 0x2fe   :  { %1867 = vmatpush.msrb.mxu1 %v5589_v56  ;;  %1887 = vmatpush.msrb.mxu2 %v5582_v41 }
 0x2ff   :  { %1754 = vmatpush.msra.mxu3 %v5184_v27  ;;  %v5754_v27 = vld [vmem:[%s7585_s4 + $0xc8] sm:$0xff] }
 0x300   :  { %1613 = vmatmul.f32.vlgmr.msrb.gmra.mxu3 %v1529_v45  ;;  %1868 = vmatpush.msrb.mxu1 %v5608_v54 }
 0x301   :  { %1755 = vmatpush.msra.mxu3 %v5200_v37  ;;  %1888 = vmatpush.msrb.mxu2 %v5595_v55  ;;  %v5761_v37 = vld [vmem:[%s7585_s4 + $0xd0] sm:$0xff] }
 0x302   :  { %1869 = vmatpush.msrb.mxu1 %v5616_v31  ;;  %7836 = vst [vmem:[#allocation11_spill] sm:$0xff] %v5761_v37 }
 0x303   :  { %1756 = vmatpush.msra.mxu3 %v5210_v11  ;;  %1889 = vmatpush.msrb.mxu2 %v5602_v12  ;;  %v5767_v11 = vld [vmem:[%s7585_s4 + $0xa8] sm:$0xff] }
 0x304   :  { %1870 = vmatpush.msrb.mxu1 %v5624_v16  ;;  %7837 = vst [vmem:[#allocation51_spill] sm:$0xff] %v5767_v11 }
 0x305   :  { %1757 = vmatpush.msra.mxu3 %v5228_v9  ;;  %1890 = vmatpush.msrb.mxu2 %v5679_v33  ;;  %v5774_v9 = vld [vmem:[%s7585_s4 + $0xb0] sm:$0xff] }
 0x306   :  { %1871 = vmatpush.msrb.mxu1 %v5632_v7  ;;  %7838 = vst [vmem:[#allocation52_spill] sm:$0xff] %v5774_v9 }
 0x307   :  { %1758 = vmatpush.msra.mxu3 %v5241_v1  ;;  %1891 = vmatpush.msrb.mxu2 %v5685_v50 }
 0x308   :  { %1872 = vmatpush.msrb.mxu1 %v5640_v28 }
 0x309   :  { %1759 = vmatpush.msra.mxu3 %v5256_v34  ;;  %1892 = vmatpush.msrb.mxu2 %v5740_v60 }
 0x30a   :  { %1873 = vmatpush.msrb.mxu1 %v5648_v51 }
 0x30b   :  { %1760 = vmatpush.msra.mxu3 %v5269_v59  ;;  %1893 = vmatpush.msrb.mxu2 %v5748_v57 }
 0x30c   :  { %1874 = vmatpush.msrb.mxu1 %v5754_v27 }
 0x30d   :  { %1761 = vmatpush.msra.mxu3 %v5283_v46  ;;  %1894 = vmatpush.msrb.mxu2 %v5761_v37 }
 0x30e   :  { %1875 = vmatpush.msrb.mxu1 %v5767_v11 }
 0x30f   :  { %1762 = vmatpush.msra.mxu3 %v5294_v62  ;;  %1895 = vmatpush.msrb.mxu2 %v5774_v9 }
 0x310   :  { %1876 = vmatpush.msrb.mxu1 %v5780_v24 }
 0x311   :  { %1763 = vmatpush.msra.mxu3 %v5302_v42  ;;  %1896 = vmatpush.msrb.mxu2 %v5787_v29 }
 0x312   :  { %1877 = vmatpush.msrb.mxu1 %v5793_v49 }
 0x313   :  { %1764 = vmatpush.msra.mxu3 %v5316_v6  ;;  %1897 = vmatpush.msrb.mxu2 %v5800_v15 }
 0x314   :  { %1878 = vmatpush.msrb.mxu1 %v5806_v17 }
 0x315   :  { %1765 = vmatpush.msra.mxu3 %v5327_v58  ;;  %1898 = vmatpush.msrb.mxu2 %v5813_v61 }
 0x316   :  { %1879 = vmatpush.msrb.mxu1 %v5819_v30 }
 0x317   :  { %1766 = vmatpush.msra.mxu3 %v5334_v63  ;;  %1899 = vmatpush.msrb.mxu2 %v5246_v3  ;;  %v5841_v3 = vld [vmem:[%s7585_s4 + $0x1b8] sm:$0xff] }
 0x318   :  { %1880 = vmatpush.msrb.mxu1 %v5828_v38 }
 0x319   :  { %1905 = vmatpush.msrb.mxu3 %v5711_v32  ;;  %1900 = vmatpush.msrb.mxu2 %v5261_v44  ;;  %v5853_v44 = vld [vmem:[%s7585_s4 + $0x178] sm:$0xff] }
 0x31b   :  { %1906 = vmatpush.msrb.mxu3 %v5835_v35 }
 0x31d   :  { %1907 = vmatpush.msrb.mxu3 %v5841_v3 }
 0x31f   :  { %1908 = vmatpush.msrb.mxu3 %v5847_v26 }
 0x321   :  { %1909 = vmatpush.msrb.mxu3 %v5853_v44 }
 0x323   :  { %1910 = vmatpush.msrb.mxu3 %v5859_v18 }
 0x325   :  { %1911 = vmatpush.msrb.mxu3 %v5865_v13 }
 0x327   :  { %1912 = vmatpush.msrb.mxu3 %v5241_v1 }
 0x329   :  { %1913 = vmatpush.msrb.mxu3 %v5256_v34 }
 0x32b   :  { %1914 = vmatpush.msrb.mxu3 %v5269_v59  ;;  %v7848_v59 = vld [vmem:[#allocation12_spill] sm:$0xff] }
 0x32c   :  { %v858_v53 = vadd.f32 %v7848_v59, %v5529_v43 }
 0x32d   :  { %1915 = vmatpush.msrb.mxu3 %v5283_v46 }
 0x32f   :  { %1916 = vmatpush.msrb.mxu3 %v5294_v62 }
 0x331   :  { %1917 = vmatpush.msrb.mxu3 %v5302_v42  ;;  %v1052_v42 = vpop.f32.mrf.mxu0 }
 0x333   :  { %1918 = vmatpush.msrb.mxu3 %v5316_v6 }
 0x335   :  { %1919 = vmatpush.msrb.mxu3 %v5327_v58  ;;  %v1053_v58 = vadd.f32 %v1052_v42, %v7833_v36 }
 0x337   :  { %1920 = vmatpush.msrb.mxu3 %v5334_v63 }
 0x375   :  { %v1574_v1 = vpop.f32.mrf.mxu1 }
 0x376   :  { %v1618_v19 = vadd.f32 %v1574_v1, %v923_v2  ;;  %v7849_v2 = vld [vmem:[#allocation6_spill] sm:$0xff] }
 0x377   :  { %v988_v1 = vadd.f32 %v7849_v2, %v7834_v14 }
 0x378   :  { %v3865_v34 = vmul.f32 -1.442695, %v1618_v19 }
 0x37a   :  { %3940 = vpow2.f32 %v3865_v34 }
 0x37b   :  { %v1554_v46 = vpop.f32.mrf.mxu3 }
 0x37c   :  { %v1617_v62 = vadd.f32 %v1554_v46, %v858_v53  ;;  %v1594_v23 = vpop.f32.mrf.mxu2 }
 0x37d   :  { %v1619_v53 = vadd.f32 %v1594_v23, %v988_v1 }
 0x37e   :  { %v3864_v4 = vmul.f32 -1.442695, %v1617_v62 }
 0x380   :  { %v3941_v39 = vpop.eup %3940  ;;  %3942 = vpow2.f32 %v3864_v4 }
 0x381   :  { %v1643_v6 = vadd.f32 1.0, %v3941_v39 }
 0x383   :  { %3944 = vrcp.f32 %v1643_v6  ;;  %v1614_v63 = vpop.f32.mrf.mxu3  ;;  %v1655_v42 = vand.u32 2147483648, %v1643_v6  ;;  %vm1649_vm11 = vweird.f32 %v1643_v6 }
 0x384   :  { %v1620_v22 = vadd.f32 %v1614_v63, %v1053_v58  ;;  %v1653_v58 = vand.u32 2147483647, %v1643_v6 }
 0x386   :  { %v3943_v52 = vpop.eup %3942  ;;  %v3866_v5 = vmul.f32 -1.442695, %v1620_v22  ;;  %vm1654_vm15 = vcmp.eq.f32.partialorder %v1653_v58, 8.507059e+37 }
 0x387   :  { %v1624_v47 = vadd.f32 1.0, %v3943_v52 }
 0x388   :  { %3946 = vpow2.f32 %v3866_v5 }
 0x389   :  { %v3945_v8 = vpop.eup %3944  ;;  %3948 = vrcp.f32 %v1624_v47  ;;  %v1636_v63 = vand.u32 2147483648, %v1624_v47  ;;  %v1634_v52 = vand.u32 2147483647, %v1624_v47  ;;  %vm1630_vm14 = vweird.f32 %v1624_v47 }
 0x38a   :  { %v1645_v25 = vmul.f32 %v3945_v8, %v1643_v6  ;;  %vm1650_vm10 = vweird.f32 %v3945_v8 }
 0x38b   :  { %vm1651_vm12 = vmor %vm1649_vm11, %vm1650_vm10  ;;  %v1637_v2 = vor.u32 1.1754944e-38, %v1636_v63  ;;  %vm1635_vm1 = vcmp.eq.f32.partialorder %v1634_v52, 8.507059e+37 }
 0x38c   :  { %v1646_v45 = vsub.f32 1.0, %v1645_v25  ;;  %v1656_v25 = vor.u32 1.1754944e-38, %v1655_v42 }
 0x38e   :  { %v3947_v19 = vpop.eup %3946  ;;  %v1647_v34 = vmul.f32 %v3945_v8, %v1646_v45 }
 0x38f   :  { %v3949_v59 = vpop.eup %3948  ;;  %v1663_v46 = vadd.f32 1.0, %v3947_v19 }
 0x390   :  { %v1626_v62 = vmul.f32 %v3949_v59, %v1624_v47  ;;  %v1648_v4 = vadd.f32 %v3945_v8, %v1647_v34  ;;  %vm1631_vm13 = vweird.f32 %v3949_v59 }
 0x391   :  { %3950 = vrcp.f32 %v1663_v46  ;;  %vm1632_vm0 = vmor %vm1630_vm14, %vm1631_vm13  ;;  %v1675_v47 = vand.u32 2147483648, %v1663_v46  ;;  %vm1669_vm3 = vweird.f32 %v1663_v46  ;;  %v1673_v42 = vand.u32 2147483647, %v1663_v46 }
 0x392   :  { %v1627_v39 = vsub.f32 1.0, %v1626_v62  ;;  %3952 = vtanh.f32 %v1619_v53  ;;  %v1652_v5 = vsel %vm1651_vm12, %v3945_v8, %v1648_v4 }
 0x393   :  { %v1657_v1 = vsel %vm1654_vm15, %v1656_v25, %v1652_v5  ;;  %v1676_v58 = vor.u32 1.1754944e-38, %v1675_v47  ;;  %vm1674_vm5 = vcmp.eq.f32.partialorder %v1673_v42, 8.507059e+37  ;;  %v5911_v5 = vld [vmem:[%s7585_s4 + $0x1a0] sm:$0xff] }
 0x394   :  { %v1628_v22 = vmul.f32 %v3949_v59, %v1627_v39  ;;  %v1679_v14 = vmul.f32 %v1657_v1, %v5705_v20  ;;  %v5949_v1 = vld [vmem:[%s7585_s4 + $0x120] sm:$0xff] }
 0x395   :  { %v6002_v47 = vld [vmem:[%s7585_s4 + $0xa0] sm:$0xff] }
 0x396   :  { %v1629_v45 = vadd.f32 %v3949_v59, %v1628_v22  ;;  %v5888_v22 = vpop.f32.mrf.mxu0  ;;  %7853 = vst [vmem:[#allocation61_spill] sm:$0xff] %v6002_v47  ;;  %v6016_v42 = vld [vmem:[%s7585_s4 + $0x80] sm:$0xff] }
 0x397   :  { %v3951_v23 = vpop.eup %3950  ;;  %7855 = vst [vmem:[#allocation63_spill] sm:$0xff] %v6016_v42 }
 0x398   :  { %v1633_v19 = vsel %vm1632_vm0, %v3949_v59, %v1629_v45  ;;  %v1665_v34 = vmul.f32 %v3951_v23, %v1663_v46  ;;  %v3953_v62 = vpop.eup %3952  ;;  %vm1670_vm2 = vweird.f32 %v3951_v23  ;;  %v5902_v46 = vld [vmem:[%s7585_s4 + $0x1c0] sm:$0xff] }
 0x399   :  { %v1638_v6 = vsel %vm1635_vm1, %v1637_v2, %v1633_v19  ;;  %vm1671_vm4 = vmor %vm1669_vm3, %vm1670_vm2  ;;  %v5922_v45 = vld [vmem:[%s7585_s4 + $0x180] sm:$0xff] }
 0x39a   :  { %v1680_v53 = vmul.f32 %v3953_v62, %v1638_v6  ;;  %v1666_v39 = vsub.f32 1.0, %v1665_v34  ;;  %v5940_v2 = vld [vmem:[%s7585_s4 + $0x140] sm:$0xff]  ;;  %v5968_v62 = vld [vmem:[%s7585_s4 + $0x118] sm:$0xff] }
 0x39b   :  { %v5958_v19 = vld [vmem:[%s7585_s4 + $0x100] sm:$0xff] }
 0x39c   :  { %v5885_v36 = vadd.f32 %v1680_v53, %v1679_v14  ;;  %v1667_v8 = vmul.f32 %v3951_v23, %v1666_v39  ;;  %v5893_v14 = vld [vmem:[%s7585_s4 + $0x1e0] sm:$0xff]  ;;  %v5982_v53 = vld [vmem:[%s7585_s4 + $0xf8] sm:$0xff] }
 0x39d   :  { %v5974_v6 = vld [vmem:[%s7585_s4 + $0xe0] sm:$0xff] }
 0x39e   :  { %3954 = vtanh.f32 %v5885_v36  ;;  %v1668_v4 = vadd.f32 %v3951_v23, %v1667_v8  ;;  %v5915_v25 = vpop.f32.mrf.mxu0  ;;  %v5988_v39 = vld [vmem:[%s7585_s4 + $0xc0] sm:$0xff]  ;;  %v5996_v8 = vld [vmem:[%s7585_s4 + $0xd8] sm:$0xff] }
 0x39f   :  { %7850 = vst [vmem:[#allocation5_spill] sm:$0xff] %v5915_v25  ;;  %v6067_v25 = vld [vmem:[%s7585_s4 + $0x30] sm:$0xff] }
 0x3a0   :  { %v1672_v59 = vsel %vm1671_vm4, %v3951_v23, %v1668_v4  ;;  %v5931_v23 = vld [vmem:[%s7585_s4 + $0x160] sm:$0xff]  ;;  %7852 = vst [vmem:[#allocation6_spill] sm:$0xff] %v5996_v8  ;;  %v6010_v4 = vld [vmem:[%s7585_s4 + $0xb8] sm:$0xff] }
 0x3a1   :  { %v1677_v20 = vsel %vm1674_vm5, %v1676_v58, %v1672_v59  ;;  %7854 = vst [vmem:[#allocation62_spill] sm:$0xff] %v6010_v4  ;;  %v6024_v59 = vld [vmem:[%s7585_s4 + $0x98] sm:$0xff]  ;;  %v6030_v58 = vld [vmem:[%s7585_s4 + $0x60] sm:$0xff] }
 0x3a2   :  { %7856 = vst [vmem:[#allocation64_spill] sm:$0xff] %v6024_v59 }
 0x3a3   :  { %7857 = vst [vmem:[#allocation65_spill] sm:$0xff] %v6030_v58 }
 0x3a4   :  { %v3955_v63 = vpop.eup %3954  ;;  %7863 = vst [vmem:[#allocation71_spill] sm:$0xff] %v6067_v25 }
 0x3a5   :  { %v1683_v52 = vmul.f32 %v3955_v63, %v1677_v20  ;;  %v6040_v20 = vld [vmem:[%s7585_s4 + $0x78] sm:$0xff] }
 0x3a6   :  { %v5962_v34 = vpop.f32.mrf.mxu0  ;;  %7859 = vst [vmem:[#allocation67_spill] sm:$0xff] %v6040_v20 }
 0x3a7   :  { %1707 = vmatmul.f32.vlgmr.msrb.gmra.mxu0 %v1683_v52  ;;  %1727 = vmatmul.f32.vlgmr.msra.gmra.mxu1 %v1683_v52  ;;  %7851 = vst [vmem:[#allocation12_spill] sm:$0xff] %v5962_v34  ;;  %v6060_v34 = vld [vmem:[%s7585_s4 + $0x20] sm:$0xff] }
 0x3a8   :  { %1747 = vmatmul.f32.vlgmr.msra.gmra.mxu2 %v1683_v52  ;;  %1767 = vmatmul.f32.vlgmr.msra.gmra.mxu3 %v1683_v52  ;;  %v6046_v52 = vld [vmem:[%s7585_s4 + $0x40] sm:$0xff]  ;;  %7862 = vst [vmem:[#allocation70_spill] sm:$0xff] %v6060_v34 }
 0x3a9   :  { %1999 = vmatpush.msrb.mxu0 %v5893_v14  ;;  %2019 = vmatpush.msra.mxu1 %v5563_v48  ;;  %7860 = vst [vmem:[#allocation68_spill] sm:$0xff] %v6046_v52 }
 0x3aa   :  { %2039 = vmatpush.msra.mxu2 %v5556_v21  ;;  %2059 = vmatpush.msra.mxu3 %v5711_v32 }
 0x3ab   :  { %2000 = vmatpush.msrb.mxu0 %v5902_v46  ;;  %2020 = vmatpush.msra.mxu1 %v5576_v0 }
 0x3ac   :  { %2040 = vmatpush.msra.mxu2 %v5569_v10  ;;  %2060 = vmatpush.msra.mxu3 %v5835_v35 }
 0x3ad   :  { %2001 = vmatpush.msrb.mxu0 %v5911_v5  ;;  %2021 = vmatpush.msra.mxu1 %v5589_v56 }
 0x3ae   :  { %2041 = vmatpush.msra.mxu2 %v5582_v41  ;;  %2061 = vmatpush.msra.mxu3 %v5841_v3  ;;  %v6034_v63 = vpop.f32.mrf.mxu0 }
 0x3af   :  { %2002 = vmatpush.msrb.mxu0 %v5922_v45  ;;  %2022 = vmatpush.msra.mxu1 %v5608_v54  ;;  %7858 = vst [vmem:[#allocation66_spill] sm:$0xff] %v6034_v63  ;;  %v6054_v63 = vld [vmem:[%s7585_s4 + $0x58] sm:$0xff] }
 0x3b0   :  { %2042 = vmatpush.msra.mxu2 %v5595_v55  ;;  %2062 = vmatpush.msra.mxu3 %v5847_v26  ;;  %7861 = vst [vmem:[#allocation69_spill] sm:$0xff] %v6054_v63 }
 0x3b1   :  { %2003 = vmatpush.msrb.mxu0 %v5931_v23  ;;  %2023 = vmatpush.msra.mxu1 %v5616_v31 }
 0x3b2   :  { %2043 = vmatpush.msra.mxu2 %v5602_v12  ;;  %2063 = vmatpush.msra.mxu3 %v5853_v44 }
 0x3b3   :  { %2004 = vmatpush.msrb.mxu0 %v5940_v2  ;;  %2024 = vmatpush.msra.mxu1 %v5624_v16 }
 0x3b4   :  { %2044 = vmatpush.msra.mxu2 %v5679_v33  ;;  %2064 = vmatpush.msra.mxu3 %v5859_v18 }
 0x3b5   :  { %2005 = vmatpush.msrb.mxu0 %v5949_v1  ;;  %2025 = vmatpush.msra.mxu1 %v5632_v7 }
 0x3b6   :  { %2045 = vmatpush.msra.mxu2 %v5685_v50  ;;  %2065 = vmatpush.msra.mxu3 %v5865_v13 }
 0x3b7   :  { %2006 = vmatpush.msrb.mxu0 %v5958_v19  ;;  %2026 = vmatpush.msra.mxu1 %v5640_v28 }
 0x3b8   :  { %2046 = vmatpush.msra.mxu2 %v5740_v60  ;;  %2066 = vmatpush.msra.mxu3 %v5968_v62 }
 0x3b9   :  { %2007 = vmatpush.msrb.mxu0 %v5974_v6  ;;  %2027 = vmatpush.msra.mxu1 %v5648_v51 }
 0x3ba   :  { %2047 = vmatpush.msra.mxu2 %v5748_v57  ;;  %2067 = vmatpush.msra.mxu3 %v5982_v53 }
 0x3bb   :  { %2008 = vmatpush.msrb.mxu0 %v5988_v39  ;;  %2028 = vmatpush.msra.mxu1 %v5754_v27 }
 0x3bc   :  { %2048 = vmatpush.msra.mxu2 %v5761_v37  ;;  %2068 = vmatpush.msra.mxu3 %v5996_v8 }
 0x3bd   :  { %2009 = vmatpush.msrb.mxu0 %v6002_v47  ;;  %2029 = vmatpush.msra.mxu1 %v5767_v11 }
 0x3be   :  { %2049 = vmatpush.msra.mxu2 %v5774_v9  ;;  %2069 = vmatpush.msra.mxu3 %v6010_v4 }
 0x3bf   :  { %2010 = vmatpush.msrb.mxu0 %v6016_v42  ;;  %2030 = vmatpush.msra.mxu1 %v5780_v24 }
 0x3c0   :  { %2050 = vmatpush.msra.mxu2 %v5787_v29  ;;  %2070 = vmatpush.msra.mxu3 %v6024_v59 }
 0x3c1   :  { %2011 = vmatpush.msrb.mxu0 %v6030_v58  ;;  %2031 = vmatpush.msra.mxu1 %v5793_v49 }
 0x3c2   :  { %2051 = vmatpush.msra.mxu2 %v5800_v15  ;;  %2071 = vmatpush.msra.mxu3 %v6040_v20 }
 0x3c3   :  { %2012 = vmatpush.msrb.mxu0 %v6046_v52  ;;  %2032 = vmatpush.msra.mxu1 %v5806_v17 }
 0x3c4   :  { %2052 = vmatpush.msra.mxu2 %v5813_v61  ;;  %2072 = vmatpush.msra.mxu3 %v6054_v63  ;;  %v6073_v63 = vld [vmem:[%s7585_s4 + $0x38] sm:$0xff] }
 0x3c5   :  { %2013 = vmatpush.msrb.mxu0 %v6060_v34  ;;  %2033 = vmatpush.msra.mxu1 %v5819_v30  ;;  %7864 = vst [vmem:[#allocation72_spill] sm:$0xff] %v6073_v63  ;;  %v6079_v34 = vld [vmem:[%s7585_s4] sm:$0xff]  ;;  %v6095_v30 = vpop.f32.mrf.mxu0 }
 0x3c6   :  { %2053 = vmatpush.msra.mxu2 %v6067_v25  ;;  %2073 = vmatpush.msra.mxu3 %v6073_v63  ;;  %7865 = vst [vmem:[#allocation73_spill] sm:$0xff] %v6079_v34  ;;  %v6086_v25 = vld [vmem:[%s7585_s4 + $0x10] sm:$0xff]  ;;  %v6092_v63 = vld [vmem:[%s7585_s4 + $0x18] sm:$0xff] }
 0x3c7   :  { %2014 = vmatpush.msrb.mxu0 %v6079_v34  ;;  %2034 = vmatpush.msra.mxu1 %v5828_v38  ;;  %7866 = vst [vmem:[#allocation74_spill] sm:$0xff] %v6086_v25 }
 0x3c8   :  { %2054 = vmatpush.msra.mxu2 %v6086_v25  ;;  %7867 = vst [vmem:[#allocation75_spill] sm:$0xff] %v6092_v63  ;;  %2074 = vmatpush.msra.mxu3 %v6092_v63  ;;  %v7877_v63 = vld [vmem:[#allocation13_spill] sm:$0xff] }
 0x3c9   :  { %7868 = vst [vmem:[#allocation76_spill] sm:$0xff] %v6095_v30  ;;  %v861_v49 = vadd.f32 %v7877_v63, %v5529_v43  ;;  %v7878_v30 = vld [vmem:[#allocation7_spill] sm:$0xff] }
 0x3cd   :  { %v6097_v61 = vpop.f32.mrf.mxu0 }
 0x3ce   :  { %7869 = vst [vmem:[#allocation77_spill] sm:$0xff] %v6097_v61  ;;  %v926_v61 = vadd.f32 %v7878_v30, %v5535_v40 }
 0x3d5   :  { %v6099_v34 = vpop.f32.mrf.mxu0 }
 0x3d6   :  { %7870 = vst [vmem:[#allocation78_spill] sm:$0xff] %v6099_v34 }
 0x3dd   :  { %v6101_v38 = vpop.f32.mrf.mxu0 }
 0x3de   :  { %7871 = vst [vmem:[#allocation79_spill] sm:$0xff] %v6101_v38 }
 0x3e5   :  { %v6103_v17 = vpop.f32.mrf.mxu0 }
 0x3e6   :  { %7872 = vst [vmem:[#allocation80_spill] sm:$0xff] %v6103_v17 }
 0x3ed   :  { %v6105_v52 = vpop.f32.mrf.mxu0 }
 0x3ee   :  { %7873 = vst [vmem:[#allocation81_spill] sm:$0xff] %v6105_v52  ;;  %v7879_v52 = vld [vmem:[#allocation47_spill] sm:$0xff] }
 0x3f5   :  { %v6107_v25 = vpop.f32.mrf.mxu0 }
 0x3f6   :  { %7874 = vst [vmem:[#allocation82_spill] sm:$0xff] %v6107_v25  ;;  %v1056_v25 = vadd.f32 %v5888_v22, %v7879_v52 }
 0x3fd   :  { %v6109_v20 = vpop.f32.mrf.mxu0 }
 0x3fe   :  { %7875 = vst [vmem:[#allocation83_spill] sm:$0xff] %v6109_v20 }
 0x405   :  { %v6111_v15 = vpop.f32.mrf.mxu0 }
 0x406   :  { %7876 = vst [vmem:[#allocation84_spill] sm:$0xff] %v6111_v15 }
 0x424   :  { %v1708_v58 = vpop.f32.mrf.mxu0  ;;  %v1728_v34 = vpop.f32.mrf.mxu1 }
 0x425   :  { %v1771_v59 = vadd.f32 %v1708_v58, %v861_v49  ;;  %v1772_v38 = vadd.f32 %v1728_v34, %v926_v61  ;;  %v7880_v61 = vld [vmem:[#allocation50_spill] sm:$0xff]  ;;  %v7881_v34 = vld [vmem:[#allocation8_spill] sm:$0xff] }
 0x427   :  { %v3867_v29 = vmul.f32 -1.442695, %v1771_v59  ;;  %v3868_v17 = vmul.f32 -1.442695, %v1772_v38  ;;  %v991_v38 = vadd.f32 %v7881_v34, %v7880_v61 }
 0x429   :  { %3956 = vpow2.f32 %v3867_v29 }
 0x42a   :  { %3958 = vpow2.f32 %v3868_v17 }
 0x42b   :  { %v1768_v20 = vpop.f32.mrf.mxu3  ;;  %v1748_v30 = vpop.f32.mrf.mxu2 }
 0x42c   :  { %v1774_v24 = vadd.f32 %v1768_v20, %v1056_v25  ;;  %v1773_v58 = vadd.f32 %v1748_v30, %v991_v38 }
 0x42e   :  { %v3869_v15 = vmul.f32 -1.442695, %v1774_v24 }
 0x42f   :  { %v3957_v42 = vpop.eup %3956 }
 0x430   :  { %v3959_v4 = vpop.eup %3958  ;;  %v1778_v63 = vadd.f32 1.0, %v3957_v42  ;;  %3960 = vpow2.f32 %v3869_v15 }
 0x431   :  { %v1797_v43 = vadd.f32 1.0, %v3959_v4 }
 0x432   :  { %3962 = vrcp.f32 %v1778_v63  ;;  %v1790_v52 = vand.u32 2147483648, %v1778_v63  ;;  %v1788_v42 = vand.u32 2147483647, %v1778_v63  ;;  %vm1784_vm8 = vweird.f32 %v1778_v63 }
 0x433   :  { %3964 = vrcp.f32 %v1797_v43  ;;  %v1809_v15 = vand.u32 2147483648, %v1797_v43  ;;  %v1807_v9 = vand.u32 2147483647, %v1797_v43  ;;  %vm1803_vm9 = vweird.f32 %v1797_v43 }
 0x434   :  { %v1791_v30 = vor.u32 1.1754944e-38, %v1790_v52  ;;  %vm1789_vm12 = vcmp.eq.f32.partialorder %v1788_v42, 8.507059e+37 }
 0x435   :  { %vm1808_vm13 = vcmp.eq.f32.partialorder %v1807_v9, 8.507059e+37 }
 0x436   :  { %v3961_v49 = vpop.eup %3960 }
 0x437   :  { %v1817_v29 = vadd.f32 1.0, %v3961_v49 }
 0x438   :  { %v3963_v59 = vpop.eup %3962 }
 0x439   :  { %v3965_v22 = vpop.eup %3964  ;;  %v1780_v17 = vmul.f32 %v3963_v59, %v1778_v63  ;;  %3966 = vrcp.f32 %v1817_v29  ;;  %vm1785_vm6 = vweird.f32 %v3963_v59  ;;  %vm1823_vm15 = vweird.f32 %v1817_v29 }
 0x43a   :  { %v1799_v25 = vmul.f32 %v3965_v22, %v1797_v43  ;;  %3968 = vtanh.f32 %v1773_v58  ;;  %vm1804_vm7 = vweird.f32 %v3965_v22  ;;  %vm1786_vm10 = vmor %vm1784_vm8, %vm1785_vm6  ;;  %v1827_v52 = vand.u32 2147483647, %v1817_v29 }
 0x43b   :  { %v1781_v24 = vsub.f32 1.0, %v1780_v17  ;;  %vm1805_vm11 = vmor %vm1803_vm9, %vm1804_vm7  ;;  %v1810_v17 = vor.u32 1.1754944e-38, %v1809_v15 }
 0x43c   :  { %v1800_v20 = vsub.f32 1.0, %v1799_v25  ;;  %vm1828_vm1 = vcmp.eq.f32.partialorder %v1827_v52, 8.507059e+37 }
 0x43d   :  { %v1782_v4 = vmul.f32 %v3963_v59, %v1781_v24 }
 0x43e   :  { %v1801_v40 = vmul.f32 %v3965_v22, %v1800_v20 }
 0x43f   :  { %v3967_v11 = vpop.eup %3966  ;;  %v1783_v34 = vadd.f32 %v3963_v59, %v1782_v4 }
 0x440   :  { %v1802_v49 = vadd.f32 %v3965_v22, %v1801_v40  ;;  %v1819_v38 = vmul.f32 %v3967_v11, %v1817_v29  ;;  %v3969_v58 = vpop.eup %3968  ;;  %vm1824_vm14 = vweird.f32 %v3967_v11  ;;  %v1829_v40 = vand.u32 2147483648, %v1817_v29  ;;  %v7904_v29 = vld [vmem:[#allocation73_spill] sm:$0xff] }
 0x441   :  { %v1787_v25 = vsel %vm1786_vm10, %v3963_v59, %v1783_v34  ;;  %vm1825_vm0 = vmor %vm1823_vm15, %vm1824_vm14  ;;  %v7905_v34 = vld [vmem:[#allocation60_spill] sm:$0xff] }
 0x442   :  { %v1792_v61 = vsel %vm1789_vm12, %v1791_v30, %v1787_v25  ;;  %v1806_v24 = vsel %vm1805_vm11, %v3965_v22, %v1802_v49  ;;  %v1820_v47 = vsub.f32 1.0, %v1819_v38  ;;  %v1830_v15 = vor.u32 1.1754944e-38, %v1829_v40  ;;  %v7906_v30 = vld [vmem:[#allocation74_spill] sm:$0xff]  ;;  %v7907_v49 = vld [vmem:[#allocation75_spill] sm:$0xff]  ;;  %v7908_v38 = vld [vmem:[#allocation44_spill] sm:$0xff] }
 0x443   :  { %v1811_v20 = vsel %vm1808_vm13, %v1810_v17, %v1806_v24  ;;  %v1834_v8 = vmul.f32 %v3969_v58, %v1792_v61  ;;  %v7903_v61 = vld [vmem:[#allocation72_spill] sm:$0xff]  ;;  %v7909_v17 = vld [vmem:[#allocation9_spill] sm:$0xff]  ;;  %v7910_v58 = vld [vmem:[#allocation46_spill] sm:$0xff] }
 0x444   :  { %v1833_v37 = vmul.f32 %v1811_v20, %v5885_v36  ;;  %v1821_v4 = vmul.f32 %v3967_v11, %v1820_v47  ;;  %v7898_v36 = vld [vmem:[#allocation58_spill] sm:$0xff]  ;;  %v7902_v47 = vld [vmem:[#allocation71_spill] sm:$0xff]  ;;  %v864_v25 = vadd.f32 %v7909_v17, %v7908_v38 }
 0x445   :  { %v7911_v24 = vld [vmem:[#allocation10_spill] sm:$0xff] }
 0x446   :  { %v6122_v63 = vadd.f32 %v1834_v8, %v1833_v37  ;;  %v1822_v43 = vadd.f32 %v3967_v11, %v1821_v4  ;;  %v7899_v37 = vld [vmem:[#allocation69_spill] sm:$0xff]  ;;  %v7901_v8 = vld [vmem:[#allocation59_spill] sm:$0xff]  ;;  %v929_v20 = vadd.f32 %v7911_v24, %v7910_v58 }
 0x448   :  { %3970 = vtanh.f32 %v6122_v63  ;;  %v1826_v59 = vsel %vm1825_vm0, %v3967_v11, %v1822_v43  ;;  %v7900_v11 = vld [vmem:[#allocation70_spill] sm:$0xff] }
 0x449   :  { %v1831_v22 = vsel %vm1828_vm1, %v1830_v15, %v1826_v59 }
 0x44e   :  { %v3971_v9 = vpop.eup %3970 }
 0x44f   :  { %v1837_v42 = vmul.f32 %v3971_v9, %v1831_v22  ;;  %v7912_v9 = vld [vmem:[#allocation47_spill] sm:$0xff]  ;;  %v7913_v22 = vld [vmem:[#allocation5_spill] sm:$0xff] }
 0x451   :  { %1861 = vmatmul.f32.vlgmr.msra.gmra.mxu0 %v1837_v42  ;;  %1881 = vmatmul.f32.vlgmr.msrb.gmra.mxu1 %v1837_v42 }
 0x452   :  { %1901 = vmatmul.f32.vlgmr.msrb.gmra.mxu2 %v1837_v42  ;;  %1921 = vmatmul.f32.vlgmr.msrb.gmra.mxu3 %v1837_v42  ;;  %v1059_v42 = vadd.f32 %v7913_v22, %v7912_v9 }
 0x453   :  { %2153 = vmatpush.msra.mxu0 %v5893_v14  ;;  %2173 = vmatpush.msrb.mxu1 %v5563_v48  ;;  %v7883_v48 = vld [vmem:[#allocation6_spill] sm:$0xff] }
 0x454   :  { %2193 = vmatpush.msrb.mxu2 %v5556_v21  ;;  %2213 = vmatpush.msrb.mxu3 %v5711_v32  ;;  %v7882_v21 = vld [vmem:[#allocation11_spill] sm:$0xff] }
 0x455   :  { %2154 = vmatpush.msra.mxu0 %v5902_v46  ;;  %2174 = vmatpush.msrb.mxu1 %v5576_v0  ;;  %v7885_v0 = vld [vmem:[#allocation51_spill] sm:$0xff] }
 0x456   :  { %2194 = vmatpush.msrb.mxu2 %v5569_v10  ;;  %2214 = vmatpush.msrb.mxu3 %v5835_v35  ;;  %v7884_v10 = vld [vmem:[#allocation61_spill] sm:$0xff] }
 0x457   :  { %2155 = vmatpush.msra.mxu0 %v5911_v5  ;;  %2175 = vmatpush.msrb.mxu1 %v5589_v56  ;;  %v7887_v56 = vld [vmem:[#allocation62_spill] sm:$0xff] }
 0x458   :  { %2195 = vmatpush.msrb.mxu2 %v5582_v41  ;;  %2215 = vmatpush.msrb.mxu3 %v5841_v3  ;;  %v7886_v41 = vld [vmem:[#allocation52_spill] sm:$0xff] }
 0x459   :  { %2156 = vmatpush.msra.mxu0 %v5922_v45  ;;  %2176 = vmatpush.msrb.mxu1 %v5608_v54  ;;  %v7890_v54 = vld [vmem:[#allocation54_spill] sm:$0xff] }
 0x45a   :  { %2196 = vmatpush.msrb.mxu2 %v5595_v55  ;;  %2216 = vmatpush.msrb.mxu3 %v5847_v26  ;;  %v7888_v55 = vld [vmem:[#allocation63_spill] sm:$0xff] }
 0x45b   :  { %2157 = vmatpush.msra.mxu0 %v5931_v23  ;;  %2177 = vmatpush.msrb.mxu1 %v5616_v31  ;;  %v7891_v31 = vld [vmem:[#allocation64_spill] sm:$0xff] }
 0x45c   :  { %2197 = vmatpush.msrb.mxu2 %v5602_v12  ;;  %2217 = vmatpush.msrb.mxu3 %v5853_v44  ;;  %v7889_v12 = vld [vmem:[#allocation53_spill] sm:$0xff] }
 0x45d   :  { %2158 = vmatpush.msra.mxu0 %v5940_v2  ;;  %2178 = vmatpush.msrb.mxu1 %v5624_v16  ;;  %v7892_v16 = vld [vmem:[#allocation65_spill] sm:$0xff] }
 0x45e   :  { %2198 = vmatpush.msrb.mxu2 %v5679_v33  ;;  %2218 = vmatpush.msrb.mxu3 %v5859_v18  ;;  %v7896_v33 = vld [vmem:[#allocation68_spill] sm:$0xff] }
 0x45f   :  { %2159 = vmatpush.msra.mxu0 %v5949_v1  ;;  %2179 = vmatpush.msrb.mxu1 %v5632_v7  ;;  %v7893_v7 = vld [vmem:[#allocation55_spill] sm:$0xff] }
 0x460   :  { %2199 = vmatpush.msrb.mxu2 %v5685_v50  ;;  %2219 = vmatpush.msrb.mxu3 %v5865_v13  ;;  %v7897_v50 = vld [vmem:[#allocation57_spill] sm:$0xff] }
 0x461   :  { %2160 = vmatpush.msra.mxu0 %v5958_v19  ;;  %2180 = vmatpush.msrb.mxu1 %v5640_v28  ;;  %v7894_v28 = vld [vmem:[#allocation56_spill] sm:$0xff] }
 0x462   :  { %2200 = vmatpush.msrb.mxu2 %v5740_v60  ;;  %2220 = vmatpush.msrb.mxu3 %v5968_v62 }
 0x463   :  { %2161 = vmatpush.msra.mxu0 %v5974_v6  ;;  %2181 = vmatpush.msrb.mxu1 %v5648_v51  ;;  %v7895_v51 = vld [vmem:[#allocation67_spill] sm:$0xff] }
 0x464   :  { %2201 = vmatpush.msrb.mxu2 %v5748_v57  ;;  %2221 = vmatpush.msrb.mxu3 %v5982_v53 }
 0x465   :  { %2162 = vmatpush.msra.mxu0 %v5988_v39  ;;  %2182 = vmatpush.msrb.mxu1 %v5754_v27 }
 0x466   :  { %2202 = vmatpush.msrb.mxu2 %v7882_v21  ;;  %2222 = vmatpush.msrb.mxu3 %v7883_v48 }
 0x467   :  { %2163 = vmatpush.msra.mxu0 %v7884_v10  ;;  %2183 = vmatpush.msrb.mxu1 %v7885_v0 }
 0x468   :  { %2203 = vmatpush.msrb.mxu2 %v7886_v41  ;;  %2223 = vmatpush.msrb.mxu3 %v7887_v56 }
 0x469   :  { %2164 = vmatpush.msra.mxu0 %v7888_v55  ;;  %2184 = vmatpush.msrb.mxu1 %v7889_v12 }
 0x46a   :  { %2204 = vmatpush.msrb.mxu2 %v7890_v54  ;;  %2224 = vmatpush.msrb.mxu3 %v7891_v31 }
 0x46b   :  { %2165 = vmatpush.msra.mxu0 %v7892_v16  ;;  %2185 = vmatpush.msrb.mxu1 %v7893_v7 }
 0x46c   :  { %2205 = vmatpush.msrb.mxu2 %v7894_v28  ;;  %2225 = vmatpush.msrb.mxu3 %v7895_v51 }
 0x46d   :  { %2166 = vmatpush.msra.mxu0 %v7896_v33  ;;  %2186 = vmatpush.msrb.mxu1 %v7897_v50 }
 0x46e   :  { %2206 = vmatpush.msrb.mxu2 %v7898_v36  ;;  %2226 = vmatpush.msrb.mxu3 %v7899_v37 }
 0x46f   :  { %2167 = vmatpush.msra.mxu0 %v7900_v11  ;;  %2187 = vmatpush.msrb.mxu1 %v7901_v8 }
 0x470   :  { %2207 = vmatpush.msrb.mxu2 %v7902_v47  ;;  %2227 = vmatpush.msrb.mxu3 %v7903_v61 }
 0x471   :  { %2168 = vmatpush.msra.mxu0 %v7904_v29  ;;  %2188 = vmatpush.msrb.mxu1 %v7905_v34 }
 0x472   :  { %2208 = vmatpush.msrb.mxu2 %v7906_v30  ;;  %2228 = vmatpush.msrb.mxu3 %v7907_v49 }
 0x4ce   :  { %v1862_v4 = vpop.f32.mrf.mxu0  ;;  %v1882_v43 = vpop.f32.mrf.mxu1 }
 0x4cf   :  { %v1925_v40 = vadd.f32 %v1862_v4, %v864_v25  ;;  %v1926_v52 = vadd.f32 %v1882_v43, %v929_v20  ;;  %v7914_v20 = vld [vmem:[#allocation50_spill] sm:$0xff]  ;;  %v7915_v4 = vld [vmem:[#allocation4_spill] sm:$0xff] }
 0x4d0   :  { %v994_v43 = vadd.f32 %v7915_v4, %v7914_v20 }
 0x4d1   :  { %v3870_v59 = vmul.f32 -1.442695, %v1925_v40  ;;  %v3871_v15 = vmul.f32 -1.442695, %v1926_v52 }
 0x4d3   :  { %3972 = vpow2.f32 %v3870_v59 }
 0x4d4   :  { %3974 = vpow2.f32 %v3871_v15 }
 0x4d5   :  { %v1922_v30 = vpop.f32.mrf.mxu3  ;;  %v1902_v24 = vpop.f32.mrf.mxu2 }
 0x4d6   :  { %v1928_v34 = vadd.f32 %v1922_v30, %v1059_v42  ;;  %v1927_v59 = vadd.f32 %v1902_v24, %v994_v43 }
 0x4d8   :  { %v3872_v49 = vmul.f32 -1.442695, %v1928_v34 }
 0x4d9   :  { %v3973_v29 = vpop.eup %3972 }
 0x4da   :  { %v3975_v61 = vpop.eup %3974  ;;  %v1932_v17 = vadd.f32 1.0, %v3973_v29  ;;  %3976 = vpow2.f32 %v3872_v49 }
 0x4db   :  { %v1951_v38 = vadd.f32 1.0, %v3975_v61 }
 0x4dc   :  { %3978 = vrcp.f32 %v1932_v17  ;;  %v1944_v9 = vand.u32 2147483648, %v1932_v17  ;;  %v1942_v49 = vand.u32 2147483647, %v1932_v17  ;;  %vm1938_vm4 = vweird.f32 %v1932_v17 }
 0x4dd   :  { %3980 = vrcp.f32 %v1951_v38  ;;  %v1963_v29 = vand.u32 2147483648, %v1951_v38  ;;  %v1961_v47 = vand.u32 2147483647, %v1951_v38  ;;  %vm1957_vm5 = vweird.f32 %v1951_v38 }
 0x4de   :  { %v1945_v24 = vor.u32 1.1754944e-38, %v1944_v9  ;;  %vm1943_vm8 = vcmp.eq.f32.partialorder %v1942_v49, 8.507059e+37 }
 0x4df   :  { %vm1962_vm9 = vcmp.eq.f32.partialorder %v1961_v47, 8.507059e+37 }
 0x4e0   :  { %v3977_v25 = vpop.eup %3976 }
 0x4e1   :  { %v1971_v40 = vadd.f32 1.0, %v3977_v25 }
 0x4e2   :  { %v3979_v52 = vpop.eup %3978 }
 0x4e3   :  { %v3981_v22 = vpop.eup %3980  ;;  %v1934_v15 = vmul.f32 %v3979_v52, %v1932_v17  ;;  %3982 = vrcp.f32 %v1971_v40  ;;  %vm1939_vm2 = vweird.f32 %v3979_v52  ;;  %vm1977_vm11 = vweird.f32 %v1971_v40 }
 0x4e4   :  { %v1953_v30 = vmul.f32 %v3981_v22, %v1951_v38  ;;  %3984 = vtanh.f32 %v1927_v59  ;;  %vm1958_vm3 = vweird.f32 %v3981_v22  ;;  %vm1940_vm6 = vmor %vm1938_vm4, %vm1939_vm2  ;;  %v1981_v9 = vand.u32 2147483647, %v1971_v40 }
 0x4e5   :  { %v1935_v34 = vsub.f32 1.0, %v1934_v15  ;;  %vm1959_vm7 = vmor %vm1957_vm5, %vm1958_vm3  ;;  %v1964_v15 = vor.u32 1.1754944e-38, %v1963_v29 }
 0x4e6   :  { %v1954_v42 = vsub.f32 1.0, %v1953_v30  ;;  %vm1982_vm13 = vcmp.eq.f32.partialorder %v1981_v9, 8.507059e+37 }
 0x4e7   :  { %v1936_v61 = vmul.f32 %v3979_v52, %v1935_v34 }
 0x4e8   :  { %v1955_v58 = vmul.f32 %v3981_v22, %v1954_v42 }
 0x4e9   :  { %v3983_v8 = vpop.eup %3982  ;;  %v1937_v4 = vadd.f32 %v3979_v52, %v1936_v61 }
 0x4ea   :  { %v1956_v25 = vadd.f32 %v3981_v22, %v1955_v58  ;;  %v1973_v43 = vmul.f32 %v3983_v8, %v1971_v40  ;;  %v3985_v59 = vpop.eup %3984  ;;  %vm1978_vm10 = vweird.f32 %v3983_v8  ;;  %v1983_v58 = vand.u32 2147483648, %v1971_v40  ;;  %v6267_v40 = vld [vmem:[%s7585_s4 + $0x170] sm:$0xff] }
 0x4eb   :  { %v1941_v30 = vsel %vm1940_vm6, %v3979_v52, %v1937_v4  ;;  %vm1979_vm12 = vmor %vm1977_vm11, %vm1978_vm10  ;;  %v6281_v4 = vld [vmem:[%s7585_s4 + $0x150] sm:$0xff] }
 0x4ec   :  { %v1946_v20 = vsel %vm1943_vm8, %v1945_v24, %v1941_v30  ;;  %v1960_v34 = vsel %vm1959_vm7, %v3981_v22, %v1956_v25  ;;  %v1974_v11 = vsub.f32 1.0, %v1973_v43  ;;  %v1984_v29 = vor.u32 1.1754944e-38, %v1983_v58  ;;  %v6295_v24 = vld [vmem:[%s7585_s4 + $0x130] sm:$0xff]  ;;  %v6312_v25 = vld [vmem:[%s7585_s4 + $0xe8] sm:$0xff]  ;;  %v7929_v30 = vld [vmem:[#allocation15_spill] sm:$0xff] }
 0x4ed   :  { %v1965_v42 = vsel %vm1962_vm9, %v1964_v15, %v1960_v34  ;;  %v1988_v37 = vmul.f32 %v3985_v59, %v1946_v20  ;;  %v6253_v20 = vld [vmem:[%s7585_s4 + $0x190] sm:$0xff] }
 0x4ee   :  { %v1987_v36 = vmul.f32 %v1965_v42, %v6122_v63  ;;  %v1975_v61 = vmul.f32 %v3983_v8, %v1974_v11  ;;  %v6205_v63 = vld [vmem:[%s7585_s4 + $0x1e8] sm:$0xff]  ;;  %v6225_v11 = vld [vmem:[%s7585_s4 + $0x1d0] sm:$0xff] }
 0x4ef   :  { %v7928_v15 = vld [vmem:[#allocation46_spill] sm:$0xff] }
 0x4f0   :  { %v6198_v17 = vadd.f32 %v1988_v37, %v1987_v36  ;;  %v1976_v38 = vadd.f32 %v3983_v8, %v1975_v61  ;;  %v6211_v36 = vld [vmem:[%s7585_s4 + $0x1f0] sm:$0xff]  ;;  %v6219_v37 = vld [vmem:[%s7585_s4 + $0x1c8] sm:$0xff]  ;;  %v932_v59 = vadd.f32 %v7929_v30, %v7928_v15 }
 0x4f2   :  { %3986 = vtanh.f32 %v6198_v17  ;;  %v1980_v52 = vsel %vm1979_vm12, %v3983_v8, %v1976_v38  ;;  %v6239_v8 = vld [vmem:[%s7585_s4 + $0x1b0] sm:$0xff] }
 0x4f3   :  { %v1985_v22 = vsel %vm1982_vm13, %v1984_v29, %v1980_v52  ;;  %v7930_v52 = vld [vmem:[#allocation47_spill] sm:$0xff]  ;;  %v7931_v29 = vld [vmem:[#allocation12_spill] sm:$0xff] }
 0x4f8   :  { %v3987_v47 = vpop.eup %3986 }
 0x4f9   :  { %v1991_v49 = vmul.f32 %v3987_v47, %v1985_v22  ;;  %v1062_v47 = vadd.f32 %v7931_v29, %v7930_v52 }
 0x4fb   :  { %2015 = vmatmul.f32.vlgmr.msrb.gmra.mxu0 %v1991_v49  ;;  %2035 = vmatmul.f32.vlgmr.msra.gmra.mxu1 %v1991_v49 }
 0x4fc   :  { %2055 = vmatmul.f32.vlgmr.msra.gmra.mxu2 %v1991_v49  ;;  %2075 = vmatmul.f32.vlgmr.msra.gmra.mxu3 %v1991_v49 }
 0x4fd   :  { %2307 = vmatpush.msrb.mxu0 %v5893_v14  ;;  %2327 = vmatpush.msra.mxu1 %v6205_v63 }
 0x4fe   :  { %2347 = vmatpush.msra.mxu2 %v6211_v36  ;;  %2367 = vmatpush.msra.mxu3 %v5711_v32  ;;  %v6233_v32 = vld [vmem:[%s7585_s4 + $0x1a8] sm:$0xff] }
 0x4ff   :  { %2308 = vmatpush.msrb.mxu0 %v5902_v46  ;;  %2328 = vmatpush.msra.mxu1 %v6219_v37 }
 0x500   :  { %2348 = vmatpush.msra.mxu2 %v6225_v11  ;;  %2368 = vmatpush.msra.mxu3 %v5835_v35  ;;  %v6247_v35 = vld [vmem:[%s7585_s4 + $0x188] sm:$0xff] }
 0x501   :  { %2309 = vmatpush.msrb.mxu0 %v5911_v5  ;;  %2329 = vmatpush.msra.mxu1 %v6233_v32 }
 0x502   :  { %2349 = vmatpush.msra.mxu2 %v6239_v8  ;;  %2369 = vmatpush.msra.mxu3 %v5841_v3  ;;  %v6261_v3 = vld [vmem:[%s7585_s4 + $0x168] sm:$0xff] }
 0x503   :  { %2310 = vmatpush.msrb.mxu0 %v5922_v45  ;;  %2330 = vmatpush.msra.mxu1 %v6247_v35 }
 0x504   :  { %2350 = vmatpush.msra.mxu2 %v6253_v20  ;;  %2370 = vmatpush.msra.mxu3 %v5847_v26  ;;  %v6275_v26 = vld [vmem:[%s7585_s4 + $0x148] sm:$0xff] }
 0x505   :  { %2311 = vmatpush.msrb.mxu0 %v5931_v23  ;;  %2331 = vmatpush.msra.mxu1 %v6261_v3 }
 0x506   :  { %2351 = vmatpush.msra.mxu2 %v6267_v40  ;;  %2371 = vmatpush.msra.mxu3 %v5853_v44  ;;  %v6289_v44 = vld [vmem:[%s7585_s4 + $0x128] sm:$0xff] }
 0x507   :  { %2312 = vmatpush.msrb.mxu0 %v5940_v2  ;;  %2332 = vmatpush.msra.mxu1 %v6275_v26 }
 0x508   :  { %2352 = vmatpush.msra.mxu2 %v6281_v4  ;;  %2372 = vmatpush.msra.mxu3 %v5859_v18  ;;  %v6303_v18 = vld [vmem:[%s7585_s4 + $0x108] sm:$0xff] }
 0x509   :  { %2313 = vmatpush.msrb.mxu0 %v5949_v1  ;;  %2333 = vmatpush.msra.mxu1 %v6289_v44 }
 0x50a   :  { %2353 = vmatpush.msra.mxu2 %v6295_v24  ;;  %2373 = vmatpush.msra.mxu3 %v5865_v13  ;;  %v7919_v13 = vld [vmem:[#allocation59_spill] sm:$0xff] }
 0x50b   :  { %2314 = vmatpush.msrb.mxu0 %v5958_v19  ;;  %2334 = vmatpush.msra.mxu1 %v6303_v18 }
 0x50c   :  { %2354 = vmatpush.msra.mxu2 %v5740_v60  ;;  %2374 = vmatpush.msra.mxu3 %v5968_v62  ;;  %v7916_v60 = vld [vmem:[#allocation58_spill] sm:$0xff] }
 0x50d   :  { %2315 = vmatpush.msrb.mxu0 %v5974_v6  ;;  %2335 = vmatpush.msra.mxu1 %v6312_v25 }
 0x50e   :  { %2355 = vmatpush.msra.mxu2 %v5748_v57  ;;  %2375 = vmatpush.msra.mxu3 %v5982_v53  ;;  %v7917_v57 = vld [vmem:[#allocation69_spill] sm:$0xff] }
 0x50f   :  { %2316 = vmatpush.msrb.mxu0 %v5988_v39  ;;  %2336 = vmatpush.msra.mxu1 %v5754_v27  ;;  %v7918_v27 = vld [vmem:[#allocation70_spill] sm:$0xff] }
 0x510   :  { %2356 = vmatpush.msra.mxu2 %v7882_v21  ;;  %2376 = vmatpush.msra.mxu3 %v7883_v48  ;;  %v7920_v21 = vld [vmem:[#allocation71_spill] sm:$0xff] }
 0x511   :  { %2317 = vmatpush.msrb.mxu0 %v7884_v10  ;;  %2337 = vmatpush.msra.mxu1 %v7885_v0  ;;  %v7921_v0 = vld [vmem:[#allocation72_spill] sm:$0xff] }
 0x512   :  { %2357 = vmatpush.msra.mxu2 %v7886_v41  ;;  %2377 = vmatpush.msra.mxu3 %v7887_v56  ;;  %v7922_v41 = vld [vmem:[#allocation73_spill] sm:$0xff] }
 0x513   :  { %2318 = vmatpush.msrb.mxu0 %v7888_v55  ;;  %2338 = vmatpush.msra.mxu1 %v7889_v12  ;;  %v7923_v12 = vld [vmem:[#allocation60_spill] sm:$0xff] }
 0x514   :  { %2358 = vmatpush.msra.mxu2 %v7890_v54  ;;  %2378 = vmatpush.msra.mxu3 %v7891_v31  ;;  %v7924_v54 = vld [vmem:[#allocation74_spill] sm:$0xff] }
 0x515   :  { %2319 = vmatpush.msrb.mxu0 %v7892_v16  ;;  %2339 = vmatpush.msra.mxu1 %v7893_v7  ;;  %v7925_v7 = vld [vmem:[#allocation75_spill] sm:$0xff] }
 0x516   :  { %2359 = vmatpush.msra.mxu2 %v7894_v28  ;;  %2379 = vmatpush.msra.mxu3 %v7895_v51  ;;  %v7926_v28 = vld [vmem:[#allocation44_spill] sm:$0xff] }
 0x517   :  { %2320 = vmatpush.msrb.mxu0 %v7896_v33  ;;  %2340 = vmatpush.msra.mxu1 %v7897_v50  ;;  %v7927_v50 = vld [vmem:[#allocation14_spill] sm:$0xff] }
 0x518   :  { %2360 = vmatpush.msra.mxu2 %v7916_v60  ;;  %2380 = vmatpush.msra.mxu3 %v7917_v57  ;;  %v867_v43 = vadd.f32 %v7927_v50, %v7926_v28 }
 0x519   :  { %2321 = vmatpush.msrb.mxu0 %v7918_v27  ;;  %2341 = vmatpush.msra.mxu1 %v7919_v13 }
 0x51a   :  { %2361 = vmatpush.msra.mxu2 %v7920_v21  ;;  %2381 = vmatpush.msra.mxu3 %v7921_v0 }
 0x51b   :  { %2322 = vmatpush.msrb.mxu0 %v7922_v41  ;;  %2342 = vmatpush.msra.mxu1 %v7923_v12 }
 0x51c   :  { %2362 = vmatpush.msra.mxu2 %v7924_v54  ;;  %2382 = vmatpush.msra.mxu3 %v7925_v7 }
 0x578   :  { %v2016_v34 = vpop.f32.mrf.mxu0  ;;  %v2036_v42 = vpop.f32.mrf.mxu1 }
 0x579   :  { %v2079_v61 = vadd.f32 %v2016_v34, %v867_v43  ;;  %v2080_v38 = vadd.f32 %v2036_v42, %v932_v59  ;;  %v7932_v59 = vld [vmem:[#allocation50_spill] sm:$0xff]  ;;  %v7933_v34 = vld [vmem:[#allocation16_spill] sm:$0xff] }
 0x57a   :  { %v997_v42 = vadd.f32 %v7933_v34, %v7932_v59 }
 0x57b   :  { %v3873_v58 = vmul.f32 -1.442695, %v2079_v61  ;;  %v3874_v9 = vmul.f32 -1.442695, %v2080_v38 }
 0x57d   :  { %3988 = vpow2.f32 %v3873_v58 }
 0x57e   :  { %3990 = vpow2.f32 %v3874_v9 }
 0x57f   :  { %v2076_v22 = vpop.f32.mrf.mxu3  ;;  %v2056_v30 = vpop.f32.mrf.mxu2 }
 0x580   :  { %v2082_v49 = vadd.f32 %v2076_v22, %v1062_v47  ;;  %v2081_v58 = vadd.f32 %v2056_v30, %v997_v42 }
 0x582   :  { %v3875_v60 = vmul.f32 -1.442695, %v2082_v49 }
 0x583   :  { %v3989_v13 = vpop.eup %3988 }
 0x584   :  { %v3991_v12 = vpop.eup %3990  ;;  %v2086_v50 = vadd.f32 1.0, %v3989_v13  ;;  %3992 = vpow2.f32 %v3875_v60 }
 0x585   :  { %v2105_v28 = vadd.f32 1.0, %v3991_v12 }
 0x586   :  { %3994 = vrcp.f32 %v2086_v50  ;;  %v2098_v52 = vand.u32 2147483648, %v2086_v50  ;;  %v2096_v12 = vand.u32 2147483647, %v2086_v50  ;;  %vm2092_vm0 = vweird.f32 %v2086_v50 }
 0x587   :  { %3996 = vrcp.f32 %v2105_v28  ;;  %v2117_v60 = vand.u32 2147483648, %v2105_v28  ;;  %v2115_v7 = vand.u32 2147483647, %v2105_v28  ;;  %vm2111_vm1 = vweird.f32 %v2105_v28 }
 0x588   :  { %v2099_v30 = vor.u32 1.1754944e-38, %v2098_v52  ;;  %vm2097_vm4 = vcmp.eq.f32.partialorder %v2096_v12, 8.507059e+37 }
 0x589   :  { %vm2116_vm5 = vcmp.eq.f32.partialorder %v2115_v7, 8.507059e+37 }
 0x58a   :  { %v3993_v43 = vpop.eup %3992 }
 0x58b   :  { %v2125_v61 = vadd.f32 1.0, %v3993_v43 }
 0x58c   :  { %v3995_v38 = vpop.eup %3994 }
 0x58d   :  { %v3997_v29 = vpop.eup %3996  ;;  %v2088_v9 = vmul.f32 %v3995_v38, %v2086_v50  ;;  %3998 = vrcp.f32 %v2125_v61  ;;  %vm2093_vm14 = vweird.f32 %v3995_v38  ;;  %vm2131_vm7 = vweird.f32 %v2125_v61 }
 0x58e   :  { %v2107_v47 = vmul.f32 %v3997_v29, %v2105_v28  ;;  %4000 = vtanh.f32 %v2081_v58  ;;  %vm2112_vm15 = vweird.f32 %v3997_v29  ;;  %vm2094_vm2 = vmor %vm2092_vm0, %vm2093_vm14  ;;  %v2135_v52 = vand.u32 2147483647, %v2125_v61 }
 0x58f   :  { %v2089_v22 = vsub.f32 1.0, %v2088_v9  ;;  %vm2113_vm3 = vmor %vm2111_vm1, %vm2112_vm15  ;;  %v2118_v9 = vor.u32 1.1754944e-38, %v2117_v60 }
 0x590   :  { %v2108_v49 = vsub.f32 1.0, %v2107_v47  ;;  %vm2136_vm9 = vcmp.eq.f32.partialorder %v2135_v52, 8.507059e+37 }
 0x591   :  { %v2090_v13 = vmul.f32 %v3995_v38, %v2089_v22 }
 0x592   :  { %v2109_v15 = vmul.f32 %v3997_v29, %v2108_v49 }
 0x593   :  { %v3999_v54 = vpop.eup %3998  ;;  %v2091_v34 = vadd.f32 %v3995_v38, %v2090_v13 }
 0x594   :  { %v2110_v43 = vadd.f32 %v3997_v29, %v2109_v15  ;;  %v2127_v42 = vmul.f32 %v3999_v54, %v2125_v61  ;;  %v4001_v58 = vpop.eup %4000  ;;  %vm2132_vm6 = vweird.f32 %v3999_v54  ;;  %v2137_v15 = vand.u32 2147483648, %v2125_v61 }
 0x595   :  { %v2095_v47 = vsel %vm2094_vm2, %v3995_v38, %v2091_v34  ;;  %vm2133_vm8 = vmor %vm2131_vm7, %vm2132_vm6  ;;  %v7952_v34 = vld [vmem:[#allocation46_spill] sm:$0xff] }
 0x596   :  { %v2100_v59 = vsel %vm2097_vm4, %v2099_v30, %v2095_v47  ;;  %v2114_v22 = vsel %vm2113_vm3, %v3997_v29, %v2110_v43  ;;  %v2128_v41 = vsub.f32 1.0, %v2127_v42  ;;  %v2138_v60 = vor.u32 1.1754944e-38, %v2137_v15  ;;  %v7953_v30 = vld [vmem:[#allocation18_spill] sm:$0xff] }
 0x597   :  { %v2119_v49 = vsel %vm2116_vm5, %v2118_v9, %v2114_v22  ;;  %v2142_v0 = vmul.f32 %v4001_v58, %v2100_v59  ;;  %v7951_v59 = vld [vmem:[#allocation17_spill] sm:$0xff]  ;;  %v935_v43 = vadd.f32 %v7953_v30, %v7952_v34 }
 0x598   :  { %v2141_v21 = vmul.f32 %v2119_v49, %v6198_v17  ;;  %v2129_v13 = vmul.f32 %v3999_v54, %v2128_v41  ;;  %v6363_v17 = vld [vmem:[%s7585_s4 + $0x1f8] sm:$0xff]  ;;  %v6521_v41 = vld [vmem:[%s7585_s4 + $0x8] sm:$0xff] }
 0x599   :  { %7947 = vst [vmem:[#allocation53_spill] sm:$0xff] %v6521_v41 }
 0x59a   :  { %v6354_v50 = vadd.f32 %v2142_v0, %v2141_v21  ;;  %v2130_v28 = vadd.f32 %v3999_v54, %v2129_v13  ;;  %v6425_v21 = vld [vmem:[%s7585_s4 + $0x110] sm:$0xff]  ;;  %v7946_v0 = vld [vmem:[#allocation73_spill] sm:$0xff]  ;;  %v7954_v13 = vld [vmem:[#allocation47_spill] sm:$0xff] }
 0x59c   :  { %4002 = vtanh.f32 %v6354_v50  ;;  %v2134_v38 = vsel %vm2133_vm8, %v3999_v54, %v2130_v28  ;;  %v7950_v54 = vld [vmem:[#allocation44_spill] sm:$0xff]  ;;  %v7955_v28 = vld [vmem:[#allocation66_spill] sm:$0xff] }
 0x59d   :  { %v2139_v29 = vsel %vm2136_vm9, %v2138_v60, %v2134_v38  ;;  %v870_v61 = vadd.f32 %v7951_v59, %v7950_v54  ;;  %v1065_v15 = vadd.f32 %v7955_v28, %v7954_v13 }
 0x5a2   :  { %v4003_v7 = vpop.eup %4002 }
 0x5a3   :  { %v2145_v12 = vmul.f32 %v4003_v7, %v2139_v29 }
 0x5a5   :  { %2169 = vmatmul.f32.vlgmr.msra.gmra.mxu0 %v2145_v12  ;;  %2189 = vmatmul.f32.vlgmr.msrb.gmra.mxu1 %v2145_v12 }
 0x5a6   :  { %2209 = vmatmul.f32.vlgmr.msrb.gmra.mxu2 %v2145_v12  ;;  %2229 = vmatmul.f32.vlgmr.msrb.gmra.mxu3 %v2145_v12 }
 0x5a7   :  { %2461 = vmatpush.msra.mxu0 %v5893_v14  ;;  %2481 = vmatpush.msrb.mxu1 %v6205_v63  ;;  %v6372_v14 = vld [vmem:[%s7585_s4 + $0x1d8] sm:$0xff] }
 0x5a8   :  { %2501 = vmatpush.msrb.mxu2 %v6211_v36  ;;  %2521 = vmatpush.msrb.mxu3 %v6363_v17 }
 0x5a9   :  { %2462 = vmatpush.msra.mxu0 %v5902_v46  ;;  %2482 = vmatpush.msrb.mxu1 %v6219_v37  ;;  %v6381_v46 = vld [vmem:[%s7585_s4 + $0x1b8] sm:$0xff] }
 0x5aa   :  { %2502 = vmatpush.msrb.mxu2 %v6225_v11  ;;  %2522 = vmatpush.msrb.mxu3 %v6372_v14 }
 0x5ab   :  { %2463 = vmatpush.msra.mxu0 %v5911_v5  ;;  %2483 = vmatpush.msrb.mxu1 %v6233_v32  ;;  %v6390_v5 = vld [vmem:[%s7585_s4 + $0x198] sm:$0xff] }
 0x5ac   :  { %2503 = vmatpush.msrb.mxu2 %v6239_v8  ;;  %2523 = vmatpush.msrb.mxu3 %v6381_v46 }
 0x5ad   :  { %2464 = vmatpush.msra.mxu0 %v5922_v45  ;;  %2484 = vmatpush.msrb.mxu1 %v6247_v35  ;;  %v6399_v45 = vld [vmem:[%s7585_s4 + $0x178] sm:$0xff] }
 0x5ae   :  { %2504 = vmatpush.msrb.mxu2 %v6253_v20  ;;  %2524 = vmatpush.msrb.mxu3 %v6390_v5 }
 0x5af   :  { %2465 = vmatpush.msra.mxu0 %v5931_v23  ;;  %2485 = vmatpush.msrb.mxu1 %v6261_v3  ;;  %v6408_v23 = vld [vmem:[%s7585_s4 + $0x158] sm:$0xff] }
 0x5b0   :  { %2505 = vmatpush.msrb.mxu2 %v6267_v40  ;;  %2525 = vmatpush.msrb.mxu3 %v6399_v45 }
 0x5b1   :  { %2466 = vmatpush.msra.mxu0 %v5940_v2  ;;  %2486 = vmatpush.msrb.mxu1 %v6275_v26  ;;  %v6417_v2 = vld [vmem:[%s7585_s4 + $0x138] sm:$0xff] }
 0x5b2   :  { %2506 = vmatpush.msrb.mxu2 %v6281_v4  ;;  %2526 = vmatpush.msrb.mxu3 %v6408_v23 }
 0x5b3   :  { %2467 = vmatpush.msra.mxu0 %v5949_v1  ;;  %2487 = vmatpush.msrb.mxu1 %v6289_v44  ;;  %v6434_v1 = vld [vmem:[%s7585_s4 + $0xf0] sm:$0xff] }
 0x5b4   :  { %2507 = vmatpush.msrb.mxu2 %v6295_v24  ;;  %2527 = vmatpush.msrb.mxu3 %v6417_v2 }
 0x5b5   :  { %2468 = vmatpush.msra.mxu0 %v5958_v19  ;;  %2488 = vmatpush.msrb.mxu1 %v6303_v18  ;;  %v6442_v19 = vld [vmem:[%s7585_s4 + $0xc8] sm:$0xff] }
 0x5b6   :  { %2508 = vmatpush.msrb.mxu2 %v6425_v21  ;;  %2528 = vmatpush.msrb.mxu3 %v5968_v62  ;;  %v6448_v62 = vld [vmem:[%s7585_s4 + $0xd0] sm:$0xff] }
 0x5b7   :  { %2469 = vmatpush.msra.mxu0 %v5974_v6  ;;  %2489 = vmatpush.msrb.mxu1 %v6312_v25  ;;  %7934 = vst [vmem:[#allocation13_spill] sm:$0xff] %v6448_v62  ;;  %v6456_v6 = vld [vmem:[%s7585_s4 + $0xa8] sm:$0xff] }
 0x5b8   :  { %2509 = vmatpush.msrb.mxu2 %v6434_v1  ;;  %2529 = vmatpush.msrb.mxu3 %v5982_v53  ;;  %7935 = vst [vmem:[#allocation7_spill] sm:$0xff] %v6456_v6  ;;  %v6462_v53 = vld [vmem:[%s7585_s4 + $0xb0] sm:$0xff] }
 0x5b9   :  { %2470 = vmatpush.msra.mxu0 %v5988_v39  ;;  %2490 = vmatpush.msrb.mxu1 %v6442_v19  ;;  %7936 = vst [vmem:[#allocation8_spill] sm:$0xff] %v6462_v53  ;;  %v6470_v39 = vld [vmem:[%s7585_s4 + $0x88] sm:$0xff] }
 0x5ba   :  { %2510 = vmatpush.msrb.mxu2 %v6448_v62  ;;  %2530 = vmatpush.msrb.mxu3 %v7883_v48  ;;  %7937 = vst [vmem:[#allocation11_spill] sm:$0xff] %v6470_v39  ;;  %v6476_v48 = vld [vmem:[%s7585_s4 + $0x90] sm:$0xff] }
 0x5bb   :  { %2471 = vmatpush.msra.mxu0 %v7884_v10  ;;  %2491 = vmatpush.msrb.mxu1 %v6456_v6  ;;  %7938 = vst [vmem:[#allocation6_spill] sm:$0xff] %v6476_v48  ;;  %v6484_v10 = vld [vmem:[%s7585_s4 + $0x68] sm:$0xff] }
 0x5bc   :  { %2511 = vmatpush.msrb.mxu2 %v6462_v53  ;;  %2531 = vmatpush.msrb.mxu3 %v7887_v56  ;;  %7939 = vst [vmem:[#allocation61_spill] sm:$0xff] %v6484_v10  ;;  %v6490_v56 = vld [vmem:[%s7585_s4 + $0x70] sm:$0xff] }
 0x5bd   :  { %2472 = vmatpush.msra.mxu0 %v7888_v55  ;;  %2492 = vmatpush.msrb.mxu1 %v6470_v39  ;;  %7940 = vst [vmem:[#allocation51_spill] sm:$0xff] %v6490_v56  ;;  %v6498_v55 = vld [vmem:[%s7585_s4 + $0x48] sm:$0xff] }
 0x5be   :  { %2512 = vmatpush.msrb.mxu2 %v6476_v48  ;;  %2532 = vmatpush.msrb.mxu3 %v7891_v31  ;;  %7941 = vst [vmem:[#allocation52_spill] sm:$0xff] %v6498_v55  ;;  %v6504_v31 = vld [vmem:[%s7585_s4 + $0x50] sm:$0xff] }
 0x5bf   :  { %2473 = vmatpush.msra.mxu0 %v7892_v16  ;;  %2493 = vmatpush.msrb.mxu1 %v6484_v10  ;;  %7942 = vst [vmem:[#allocation62_spill] sm:$0xff] %v6504_v31  ;;  %v6512_v16 = vld [vmem:[%s7585_s4 + $0x28] sm:$0xff] }
 0x5c0   :  { %2513 = vmatpush.msrb.mxu2 %v6490_v56  ;;  %2533 = vmatpush.msrb.mxu3 %v7895_v51  ;;  %7943 = vst [vmem:[#allocation63_spill] sm:$0xff] %v6512_v16  ;;  %v7944_v51 = vld [vmem:[#allocation71_spill] sm:$0xff] }
 0x5c1   :  { %2474 = vmatpush.msra.mxu0 %v7896_v33  ;;  %2494 = vmatpush.msrb.mxu1 %v6498_v55  ;;  %v7945_v33 = vld [vmem:[#allocation72_spill] sm:$0xff] }
 0x5c2   :  { %2514 = vmatpush.msrb.mxu2 %v6504_v31  ;;  %2534 = vmatpush.msrb.mxu3 %v7917_v57  ;;  %v7948_v57 = vld [vmem:[#allocation74_spill] sm:$0xff] }
 0x5c3   :  { %2475 = vmatpush.msra.mxu0 %v7918_v27  ;;  %2495 = vmatpush.msrb.mxu1 %v6512_v16  ;;  %v7949_v27 = vld [vmem:[#allocation75_spill] sm:$0xff] }
 0x5c4   :  { %2515 = vmatpush.msrb.mxu2 %v7944_v51  ;;  %2535 = vmatpush.msrb.mxu3 %v7945_v33 }
 0x5c5   :  { %2476 = vmatpush.msra.mxu0 %v7946_v0  ;;  %2496 = vmatpush.msrb.mxu1 %v6521_v41 }
 0x5c6   :  { %2516 = vmatpush.msrb.mxu2 %v7948_v57  ;;  %2536 = vmatpush.msrb.mxu3 %v7949_v27  ;;  %v7956_v57 = vld [vmem:[#allocation50_spill] sm:$0xff]  ;;  %v7957_v27 = vld [vmem:[#allocation19_spill] sm:$0xff] }
 0x5c7   :  { %v1000_v59 = vadd.f32 %v7957_v27, %v7956_v57 }
 0x622   :  { %v2170_v42 = vpop.f32.mrf.mxu0  ;;  %v2190_v9 = vpop.f32.mrf.mxu1 }
 0x623   :  { %v2233_v47 = vadd.f32 %v2170_v42, %v870_v61  ;;  %v2234_v58 = vadd.f32 %v2190_v9, %v935_v43 }
 0x625   :  { %v3876_v22 = vmul.f32 -1.442695, %v2233_v47  ;;  %v3877_v49 = vmul.f32 -1.442695, %v2234_v58 }
 0x627   :  { %4004 = vpow2.f32 %v3876_v22 }
 0x628   :  { %4006 = vpow2.f32 %v3877_v49 }
 0x629   :  { %v2230_v52 = vpop.f32.mrf.mxu3  ;;  %v2210_v33 = vpop.f32.mrf.mxu2 }
 0x62a   :  { %v2236_v38 = vadd.f32 %v2230_v52, %v1065_v15  ;;  %v2235_v43 = vadd.f32 %v2210_v33, %v1000_v59 }
 0x62c   :  { %v3878_v60 = vmul.f32 -1.442695, %v2236_v38 }
 0x62d   :  { %v4005_v7 = vpop.eup %4004 }
 0x62e   :  { %v4007_v29 = vpop.eup %4006  ;;  %v2240_v12 = vadd.f32 1.0, %v4005_v7  ;;  %4008 = vpow2.f32 %v3878_v60 }
 0x62f   :  { %v2259_v51 = vadd.f32 1.0, %v4007_v29 }
 0x630   :  { %4010 = vrcp.f32 %v2240_v12  ;;  %v2252_v49 = vand.u32 2147483648, %v2240_v12  ;;  %v2250_v52 = vand.u32 2147483647, %v2240_v12  ;;  %vm2246_vm12 = vweird.f32 %v2240_v12 }
 0x631   :  { %4012 = vrcp.f32 %v2259_v51  ;;  %v2271_v28 = vand.u32 2147483648, %v2259_v51  ;;  %v2269_v60 = vand.u32 2147483647, %v2259_v51  ;;  %vm2265_vm13 = vweird.f32 %v2259_v51 }
 0x632   :  { %v2253_v33 = vor.u32 1.1754944e-38, %v2252_v49  ;;  %vm2251_vm0 = vcmp.eq.f32.partialorder %v2250_v52, 8.507059e+37 }
 0x633   :  { %v2272_v59 = vor.u32 1.1754944e-38, %v2271_v28  ;;  %vm2270_vm1 = vcmp.eq.f32.partialorder %v2269_v60, 8.507059e+37 }
 0x634   :  { %v4009_v0 = vpop.eup %4008 }
 0x635   :  { %v2279_v61 = vadd.f32 1.0, %v4009_v0 }
 0x636   :  { %v4011_v30 = vpop.eup %4010 }
 0x637   :  { %v4013_v42 = vpop.eup %4012  ;;  %v2242_v9 = vmul.f32 %v4011_v30, %v2240_v12  ;;  %4014 = vrcp.f32 %v2279_v61  ;;  %vm2247_vm10 = vweird.f32 %v4011_v30  ;;  %v2291_v49 = vand.u32 2147483648, %v2279_v61 }
 0x638   :  { %v2261_v47 = vmul.f32 %v4013_v42, %v2259_v51  ;;  %4016 = vtanh.f32 %v2235_v43  ;;  %vm2266_vm11 = vweird.f32 %v4013_v42  ;;  %vm2248_vm14 = vmor %vm2246_vm12, %vm2247_vm10  ;;  %vm2285_vm3 = vweird.f32 %v2279_v61 }
 0x639   :  { %v2243_v58 = vsub.f32 1.0, %v2242_v9  ;;  %vm2267_vm15 = vmor %vm2265_vm13, %vm2266_vm11  ;;  %v2292_v52 = vor.u32 1.1754944e-38, %v2291_v49  ;;  %v6682_v49 = vld [vmem:[%s7585_s4 + $0x78] sm:$0xff] }
 0x63a   :  { %v2262_v22 = vsub.f32 1.0, %v2261_v47  ;;  %7964 = vst [vmem:[#allocation68_spill] sm:$0xff] %v6682_v49 }
 0x63b   :  { %v2244_v15 = vmul.f32 %v4011_v30, %v2243_v58 }
 0x63c   :  { %v2263_v38 = vmul.f32 %v4013_v42, %v2262_v22 }
 0x63d   :  { %v4015_v7 = vpop.eup %4014  ;;  %v2245_v29 = vadd.f32 %v4011_v30, %v2244_v15 }
 0x63e   :  { %v2264_v0 = vadd.f32 %v4013_v42, %v2263_v38  ;;  %v2281_v27 = vmul.f32 %v4015_v7, %v2279_v61  ;;  %v4017_v43 = vpop.eup %4016  ;;  %vm2286_vm2 = vweird.f32 %v4015_v7 }
 0x63f   :  { %v2249_v9 = vsel %vm2248_vm14, %v4011_v30, %v2245_v29  ;;  %v2289_v30 = vand.u32 2147483647, %v2279_v61  ;;  %vm2287_vm4 = vmor %vm2285_vm3, %vm2286_vm2  ;;  %v6577_v61 = vld [vmem:[%s7585_s4 + $0x160] sm:$0xff] }
 0x640   :  { %v2254_v47 = vsel %vm2251_vm0, %v2253_v33, %v2249_v9  ;;  %v2268_v58 = vsel %vm2267_vm15, %v4013_v42, %v2264_v0  ;;  %v2282_v57 = vsub.f32 1.0, %v2281_v27  ;;  %v6595_v29 = vld [vmem:[%s7585_s4 + $0x120] sm:$0xff]  ;;  %v6612_v0 = vld [vmem:[%s7585_s4 + $0x118] sm:$0xff] }
 0x641   :  { %v2273_v22 = vsel %vm2270_vm1, %v2272_v59, %v2268_v58  ;;  %v2296_v13 = vmul.f32 %v4017_v43, %v2254_v47  ;;  %vm2290_vm5 = vcmp.eq.f32.partialorder %v2289_v30, 8.507059e+37  ;;  %v6604_v33 = vld [vmem:[%s7585_s4 + $0x100] sm:$0xff]  ;;  %v6626_v59 = vld [vmem:[%s7585_s4 + $0xf8] sm:$0xff] }
 0x642   :  { %v2295_v34 = vmul.f32 %v2273_v22, %v6354_v50  ;;  %v2283_v15 = vmul.f32 %v4015_v7, %v2282_v57  ;;  %v6541_v50 = vld [vmem:[%s7585_s4 + $0x1e0] sm:$0xff]  ;;  %v6640_v43 = vld [vmem:[%s7585_s4 + $0xd8] sm:$0xff] }
 0x643   :  { %v6568_v57 = vld [vmem:[%s7585_s4 + $0x180] sm:$0xff]  ;;  %7958 = vst [vmem:[#allocation54_spill] sm:$0xff] %v6640_v43  ;;  %v6654_v58 = vld [vmem:[%s7585_s4 + $0xb8] sm:$0xff] }
 0x644   :  { %v6535_v12 = vadd.f32 %v2296_v13, %v2295_v34  ;;  %v2284_v51 = vadd.f32 %v4015_v7, %v2283_v15  ;;  %v6550_v34 = vld [vmem:[%s7585_s4 + $0x1c0] sm:$0xff]  ;;  %7960 = vst [vmem:[#allocation65_spill] sm:$0xff] %v6654_v58  ;;  %v6668_v15 = vld [vmem:[%s7585_s4 + $0x98] sm:$0xff] }
 0x645   :  { %v6559_v13 = vld [vmem:[%s7585_s4 + $0x1a0] sm:$0xff]  ;;  %7962 = vst [vmem:[#allocation56_spill] sm:$0xff] %v6668_v15 }
 0x646   :  { %4018 = vtanh.f32 %v6535_v12  ;;  %v2288_v28 = vsel %vm2287_vm4, %v4015_v7, %v2284_v51  ;;  %v6586_v7 = vld [vmem:[%s7585_s4 + $0x140] sm:$0xff] }
 0x647   :  { %v2293_v38 = vsel %vm2290_vm5, %v2292_v52, %v2288_v28  ;;  %v6618_v27 = vld [vmem:[%s7585_s4 + $0xe0] sm:$0xff]  ;;  %v6696_v28 = vld [vmem:[%s7585_s4 + $0x58] sm:$0xff] }
 0x648   :  { %v6632_v9 = vld [vmem:[%s7585_s4 + $0xc0] sm:$0xff]  ;;  %7966 = vst [vmem:[#allocation9_spill] sm:$0xff] %v6696_v28 }
 0x649   :  { %v6646_v47 = vld [vmem:[%s7585_s4 + $0xa0] sm:$0xff] }
 0x64a   :  { %7959 = vst [vmem:[#allocation64_spill] sm:$0xff] %v6646_v47  ;;  %v6660_v22 = vld [vmem:[%s7585_s4 + $0x80] sm:$0xff] }
 0x64b   :  { %7961 = vst [vmem:[#allocation55_spill] sm:$0xff] %v6660_v22  ;;  %v6674_v51 = vld [vmem:[%s7585_s4 + $0x60] sm:$0xff] }
 0x64c   :  { %v4019_v42 = vpop.eup %4018  ;;  %7963 = vst [vmem:[#allocation67_spill] sm:$0xff] %v6674_v51  ;;  %v6688_v30 = vld [vmem:[%s7585_s4 + $0x40] sm:$0xff] }
 0x64d   :  { %v2299_v60 = vmul.f32 %v4019_v42, %v2293_v38  ;;  %7965 = vst [vmem:[#allocation57_spill] sm:$0xff] %v6688_v30  ;;  %v6702_v52 = vld [vmem:[%s7585_s4 + $0x20] sm:$0xff]  ;;  %v6709_v42 = vld [vmem:[%s7585_s4 + $0x30] sm:$0xff]  ;;  %v6715_v38 = vld [vmem:[%s7585_s4 + $0x38] sm:$0xff] }
 0x64e   :  { %7967 = vst [vmem:[#allocation10_spill] sm:$0xff] %v6702_v52 }
 0x64f   :  { %2323 = vmatmul.f32.vlgmr.msrb.gmra.mxu0 %v2299_v60  ;;  %2343 = vmatmul.f32.vlgmr.msra.gmra.mxu1 %v2299_v60  ;;  %7968 = vst [vmem:[#allocation5_spill] sm:$0xff] %v6709_v42 }
 0x650   :  { %2363 = vmatmul.f32.vlgmr.msra.gmra.mxu2 %v2299_v60  ;;  %2383 = vmatmul.f32.vlgmr.msra.gmra.mxu3 %v2299_v60  ;;  %7969 = vst [vmem:[#allocation4_spill] sm:$0xff] %v6715_v38  ;;  %v6721_v60 = vld [vmem:[%s7585_s4] sm:$0xff] }
 0x651   :  { %2615 = vmatpush.msrb.mxu0 %v6541_v50  ;;  %2635 = vmatpush.msra.mxu1 %v6205_v63  ;;  %7970 = vst [vmem:[#allocation58_spill] sm:$0xff] %v6721_v60 }
 0x652   :  { %2655 = vmatpush.msra.mxu2 %v6211_v36  ;;  %2675 = vmatpush.msra.mxu3 %v6363_v17 }
 0x653   :  { %2616 = vmatpush.msrb.mxu0 %v6550_v34  ;;  %2636 = vmatpush.msra.mxu1 %v6219_v37 }
 0x654   :  { %2656 = vmatpush.msra.mxu2 %v6225_v11  ;;  %2676 = vmatpush.msra.mxu3 %v6372_v14 }
 0x655   :  { %2617 = vmatpush.msrb.mxu0 %v6559_v13  ;;  %2637 = vmatpush.msra.mxu1 %v6233_v32 }
 0x656   :  { %2657 = vmatpush.msra.mxu2 %v6239_v8  ;;  %2677 = vmatpush.msra.mxu3 %v6381_v46 }
 0x657   :  { %2618 = vmatpush.msrb.mxu0 %v6568_v57  ;;  %2638 = vmatpush.msra.mxu1 %v6247_v35 }
 0x658   :  { %2658 = vmatpush.msra.mxu2 %v6253_v20  ;;  %2678 = vmatpush.msra.mxu3 %v6390_v5 }
 0x659   :  { %2619 = vmatpush.msrb.mxu0 %v6577_v61  ;;  %2639 = vmatpush.msra.mxu1 %v6261_v3 }
 0x65a   :  { %2659 = vmatpush.msra.mxu2 %v6267_v40  ;;  %2679 = vmatpush.msra.mxu3 %v6399_v45 }
 0x65b   :  { %2620 = vmatpush.msrb.mxu0 %v6586_v7  ;;  %2640 = vmatpush.msra.mxu1 %v6275_v26 }
 0x65c   :  { %2660 = vmatpush.msra.mxu2 %v6281_v4  ;;  %2680 = vmatpush.msra.mxu3 %v6408_v23 }
 0x65d   :  { %2621 = vmatpush.msrb.mxu0 %v6595_v29  ;;  %2641 = vmatpush.msra.mxu1 %v6289_v44 }
 0x65e   :  { %2661 = vmatpush.msra.mxu2 %v6295_v24  ;;  %2681 = vmatpush.msra.mxu3 %v6417_v2 }
 0x65f   :  { %2622 = vmatpush.msrb.mxu0 %v6604_v33  ;;  %2642 = vmatpush.msra.mxu1 %v6303_v18 }
 0x660   :  { %2662 = vmatpush.msra.mxu2 %v6425_v21  ;;  %2682 = vmatpush.msra.mxu3 %v6612_v0 }
 0x661   :  { %2623 = vmatpush.msrb.mxu0 %v6618_v27  ;;  %2643 = vmatpush.msra.mxu1 %v6312_v25 }
 0x662   :  { %2663 = vmatpush.msra.mxu2 %v6434_v1  ;;  %2683 = vmatpush.msra.mxu3 %v6626_v59 }
 0x663   :  { %2624 = vmatpush.msrb.mxu0 %v6632_v9  ;;  %2644 = vmatpush.msra.mxu1 %v6442_v19 }
 0x664   :  { %2664 = vmatpush.msra.mxu2 %v6448_v62  ;;  %2684 = vmatpush.msra.mxu3 %v6640_v43 }
 0x665   :  { %2625 = vmatpush.msrb.mxu0 %v6646_v47  ;;  %2645 = vmatpush.msra.mxu1 %v6456_v6 }
 0x666   :  { %2665 = vmatpush.msra.mxu2 %v6462_v53  ;;  %2685 = vmatpush.msra.mxu3 %v6654_v58 }
 0x667   :  { %2626 = vmatpush.msrb.mxu0 %v6660_v22  ;;  %2646 = vmatpush.msra.mxu1 %v6470_v39 }
 0x668   :  { %2666 = vmatpush.msra.mxu2 %v6476_v48  ;;  %2686 = vmatpush.msra.mxu3 %v6668_v15 }
 0x669   :  { %2627 = vmatpush.msrb.mxu0 %v6674_v51  ;;  %2647 = vmatpush.msra.mxu1 %v6484_v10  ;;  %v7977_v51 = vld [vmem:[#allocation76_spill] sm:$0xff] }
 0x66a   :  { %2667 = vmatpush.msra.mxu2 %v6490_v56  ;;  %2687 = vmatpush.msra.mxu3 %v6682_v49 }
 0x66b   :  { %2628 = vmatpush.msrb.mxu0 %v6688_v30  ;;  %2648 = vmatpush.msra.mxu1 %v6498_v55 }
 0x66c   :  { %2668 = vmatpush.msra.mxu2 %v6504_v31  ;;  %2688 = vmatpush.msra.mxu3 %v6696_v28  ;;  %v7975_v28 = vld [vmem:[#allocation21_spill] sm:$0xff] }
 0x66d   :  { %2629 = vmatpush.msrb.mxu0 %v6702_v52  ;;  %2649 = vmatpush.msra.mxu1 %v6512_v16  ;;  %v7973_v16 = vld [vmem:[#allocation20_spill] sm:$0xff] }
 0x66e   :  { %2669 = vmatpush.msra.mxu2 %v6709_v42  ;;  %2689 = vmatpush.msra.mxu3 %v6715_v38  ;;  %v6728_v42 = vld [vmem:[%s7585_s4 + $0x10] sm:$0xff]  ;;  %v6734_v38 = vld [vmem:[%s7585_s4 + $0x18] sm:$0xff]  ;;  %v873_v52 = vadd.f32 %v7973_v16, %v7950_v54 }
 0x66f   :  { %2630 = vmatpush.msrb.mxu0 %v6721_v60  ;;  %2650 = vmatpush.msra.mxu1 %v6521_v41  ;;  %7971 = vst [vmem:[#allocation69_spill] sm:$0xff] %v6728_v42  ;;  %v7974_v60 = vld [vmem:[#allocation46_spill] sm:$0xff] }
 0x670   :  { %2670 = vmatpush.msra.mxu2 %v6728_v42  ;;  %7972 = vst [vmem:[#allocation70_spill] sm:$0xff] %v6734_v38  ;;  %2690 = vmatpush.msra.mxu3 %v6734_v38  ;;  %v938_v41 = vadd.f32 %v7975_v28, %v7974_v60  ;;  %v7976_v42 = vld [vmem:[#allocation47_spill] sm:$0xff] }
 0x671   :  { %v1068_v15 = vadd.f32 %v7977_v51, %v7976_v42 }
 0x6cc   :  { %v2324_v31 = vpop.f32.mrf.mxu0  ;;  %v2344_v55 = vpop.f32.mrf.mxu1 }
 0x6cd   :  { %v2387_v30 = vadd.f32 %v2324_v31, %v873_v52  ;;  %v2388_v49 = vadd.f32 %v2344_v55, %v938_v41  ;;  %v7978_v55 = vld [vmem:[#allocation50_spill] sm:$0xff] }
 0x6ce   :  { %v7979_v41 = vld [vmem:[#allocation22_spill] sm:$0xff] }
 0x6cf   :  { %v3879_v56 = vmul.f32 -1.442695, %v2387_v30  ;;  %v3880_v10 = vmul.f32 -1.442695, %v2388_v49  ;;  %v1003_v49 = vadd.f32 %v7979_v41, %v7978_v55 }
 0x6d1   :  { %4020 = vpow2.f32 %v3879_v56 }
 0x6d2   :  { %4022 = vpow2.f32 %v3880_v10 }
 0x6d3   :  { %v2384_v48 = vpop.f32.mrf.mxu3  ;;  %v2364_v28 = vpop.f32.mrf.mxu2 }
 0x6d4   :  { %v2390_v39 = vadd.f32 %v2384_v48, %v1068_v15  ;;  %v2389_v52 = vadd.f32 %v2364_v28, %v1003_v49 }
 0x6d6   :  { %v3881_v38 = vmul.f32 -1.442695, %v2390_v39 }
 0x6d7   :  { %v4021_v22 = vpop.eup %4020 }
 0x6d8   :  { %v4023_v58 = vpop.eup %4022  ;;  %v2394_v16 = vadd.f32 1.0, %v4021_v22  ;;  %4024 = vpow2.f32 %v3881_v38 }
 0x6d9   :  { %v2413_v54 = vadd.f32 1.0, %v4023_v58 }
 0x6da   :  { %4026 = vrcp.f32 %v2394_v16  ;;  %v2406_v42 = vand.u32 2147483648, %v2394_v16  ;;  %v2404_v38 = vand.u32 2147483647, %v2394_v16  ;;  %vm2400_vm8 = vweird.f32 %v2394_v16 }
 0x6db   :  { %4028 = vrcp.f32 %v2413_v54  ;;  %v2425_v22 = vand.u32 2147483648, %v2413_v54  ;;  %v2423_v53 = vand.u32 2147483647, %v2413_v54  ;;  %vm2419_vm9 = vweird.f32 %v2413_v54 }
 0x6dc   :  { %v2407_v28 = vor.u32 1.1754944e-38, %v2406_v42  ;;  %vm2405_vm12 = vcmp.eq.f32.partialorder %v2404_v38, 8.507059e+37 }
 0x6dd   :  { %vm2424_vm13 = vcmp.eq.f32.partialorder %v2423_v53, 8.507059e+37 }
 0x6de   :  { %v4025_v31 = vpop.eup %4024 }
 0x6df   :  { %v2433_v56 = vadd.f32 1.0, %v4025_v31 }
 0x6e0   :  { %v4027_v30 = vpop.eup %4026 }
 0x6e1   :  { %v4029_v51 = vpop.eup %4028  ;;  %v2396_v10 = vmul.f32 %v4027_v30, %v2394_v16  ;;  %4030 = vrcp.f32 %v2433_v56  ;;  %vm2401_vm6 = vweird.f32 %v4027_v30  ;;  %v2445_v42 = vand.u32 2147483648, %v2433_v56 }
 0x6e2   :  { %v2415_v48 = vmul.f32 %v4029_v51, %v2413_v54  ;;  %4032 = vtanh.f32 %v2389_v52  ;;  %vm2420_vm7 = vweird.f32 %v4029_v51  ;;  %vm2402_vm10 = vmor %vm2400_vm8, %vm2401_vm6  ;;  %vm2439_vm15 = vweird.f32 %v2433_v56 }
 0x6e3   :  { %v2397_v39 = vsub.f32 1.0, %v2396_v10  ;;  %vm2421_vm11 = vmor %vm2419_vm9, %vm2420_vm7  ;;  %v2426_v10 = vor.u32 1.1754944e-38, %v2425_v22  ;;  %v2446_v22 = vor.u32 1.1754944e-38, %v2445_v42 }
 0x6e4   :  { %v2416_v15 = vsub.f32 1.0, %v2415_v48 }
 0x6e5   :  { %v2398_v58 = vmul.f32 %v4027_v30, %v2397_v39 }
 0x6e6   :  { %v2417_v60 = vmul.f32 %v4029_v51, %v2416_v15 }
 0x6e7   :  { %v4031_v6 = vpop.eup %4030  ;;  %v2399_v41 = vadd.f32 %v4027_v30, %v2398_v58 }
 0x6e8   :  { %v2418_v31 = vadd.f32 %v4029_v51, %v2417_v60  ;;  %v2435_v49 = vmul.f32 %v4031_v6, %v2433_v56  ;;  %v4033_v52 = vpop.eup %4032  ;;  %vm2440_vm14 = vweird.f32 %v4031_v6  ;;  %v2443_v60 = vand.u32 2147483647, %v2433_v56  ;;  %v8002_v56 = vld [vmem:[#allocation58_spill] sm:$0xff] }
 0x6e9   :  { %v2403_v48 = vsel %vm2402_vm10, %v4027_v30, %v2399_v41  ;;  %vm2441_vm0 = vmor %vm2439_vm15, %vm2440_vm14  ;;  %v8003_v41 = vld [vmem:[#allocation53_spill] sm:$0xff] }
 0x6ea   :  { %v2408_v55 = vsel %vm2405_vm12, %v2407_v28, %v2403_v48  ;;  %v2422_v39 = vsel %vm2421_vm11, %v4029_v51, %v2418_v31  ;;  %v2436_v47 = vsub.f32 1.0, %v2435_v49  ;;  %vm2444_vm1 = vcmp.eq.f32.partialorder %v2443_v60, 8.507059e+37  ;;  %v8004_v28 = vld [vmem:[#allocation69_spill] sm:$0xff]  ;;  %v8005_v31 = vld [vmem:[#allocation70_spill] sm:$0xff]  ;;  %v8006_v49 = vld [vmem:[#allocation44_spill] sm:$0xff] }
 0x6eb   :  { %v2427_v15 = vsel %vm2424_vm13, %v2426_v10, %v2422_v39  ;;  %v2450_v43 = vmul.f32 %v4033_v52, %v2408_v55  ;;  %v8001_v55 = vld [vmem:[#allocation4_spill] sm:$0xff]  ;;  %v8007_v10 = vld [vmem:[#allocation23_spill] sm:$0xff]  ;;  %v8008_v52 = vld [vmem:[#allocation46_spill] sm:$0xff] }
 0x6ec   :  { %v2449_v62 = vmul.f32 %v2427_v15, %v6535_v12  ;;  %v2437_v58 = vmul.f32 %v4031_v6, %v2436_v47  ;;  %v7998_v12 = vld [vmem:[#allocation10_spill] sm:$0xff]  ;;  %v8000_v47 = vld [vmem:[#allocation5_spill] sm:$0xff]  ;;  %v876_v48 = vadd.f32 %v8007_v10, %v8006_v49  ;;  %v8009_v39 = vld [vmem:[#allocation24_spill] sm:$0xff] }
 0x6ed   :  { %v941_v15 = vadd.f32 %v8009_v39, %v8008_v52 }
 0x6ee   :  { %v6746_v16 = vadd.f32 %v2450_v43, %v2449_v62  ;;  %v2438_v54 = vadd.f32 %v4031_v6, %v2437_v58  ;;  %v7996_v62 = vld [vmem:[#allocation62_spill] sm:$0xff]  ;;  %v7999_v43 = vld [vmem:[#allocation63_spill] sm:$0xff] }
 0x6f0   :  { %4034 = vtanh.f32 %v6746_v16  ;;  %v2442_v30 = vsel %vm2441_vm0, %v4031_v6, %v2438_v54  ;;  %v7997_v6 = vld [vmem:[#allocation9_spill] sm:$0xff] }
 0x6f1   :  { %v2447_v51 = vsel %vm2444_vm1, %v2446_v22, %v2442_v30 }
 0x6f6   :  { %v4035_v53 = vpop.eup %4034 }
 0x6f7   :  { %v2453_v38 = vmul.f32 %v4035_v53, %v2447_v51  ;;  %v8010_v53 = vld [vmem:[#allocation47_spill] sm:$0xff]  ;;  %v8011_v51 = vld [vmem:[#allocation77_spill] sm:$0xff] }
 0x6f9   :  { %2477 = vmatmul.f32.vlgmr.msra.gmra.mxu0 %v2453_v38  ;;  %2497 = vmatmul.f32.vlgmr.msrb.gmra.mxu1 %v2453_v38 }
 0x6fa   :  { %2517 = vmatmul.f32.vlgmr.msrb.gmra.mxu2 %v2453_v38  ;;  %2537 = vmatmul.f32.vlgmr.msrb.gmra.mxu3 %v2453_v38  ;;  %v1071_v38 = vadd.f32 %v8011_v51, %v8010_v53 }
 0x6fb   :  { %2769 = vmatpush.msra.mxu0 %v6541_v50  ;;  %2789 = vmatpush.msrb.mxu1 %v6205_v63  ;;  %v7980_v63 = vld [vmem:[#allocation13_spill] sm:$0xff] }
 0x6fc   :  { %2809 = vmatpush.msrb.mxu2 %v6211_v36  ;;  %2829 = vmatpush.msrb.mxu3 %v6363_v17  ;;  %v7981_v36 = vld [vmem:[#allocation54_spill] sm:$0xff] }
 0x6fd   :  { %2770 = vmatpush.msra.mxu0 %v6550_v34  ;;  %2790 = vmatpush.msrb.mxu1 %v6219_v37  ;;  %v7982_v37 = vld [vmem:[#allocation64_spill] sm:$0xff] }
 0x6fe   :  { %2810 = vmatpush.msrb.mxu2 %v6225_v11  ;;  %2830 = vmatpush.msrb.mxu3 %v6372_v14  ;;  %v7983_v11 = vld [vmem:[#allocation7_spill] sm:$0xff] }
 0x6ff   :  { %2771 = vmatpush.msra.mxu0 %v6559_v13  ;;  %2791 = vmatpush.msrb.mxu1 %v6233_v32  ;;  %v7984_v32 = vld [vmem:[#allocation8_spill] sm:$0xff] }
 0x700   :  { %2811 = vmatpush.msrb.mxu2 %v6239_v8  ;;  %2831 = vmatpush.msrb.mxu3 %v6381_v46  ;;  %v7985_v8 = vld [vmem:[#allocation65_spill] sm:$0xff] }
 0x701   :  { %2772 = vmatpush.msra.mxu0 %v6568_v57  ;;  %2792 = vmatpush.msrb.mxu1 %v6247_v35  ;;  %v7986_v35 = vld [vmem:[#allocation55_spill] sm:$0xff] }
 0x702   :  { %2812 = vmatpush.msrb.mxu2 %v6253_v20  ;;  %2832 = vmatpush.msrb.mxu3 %v6390_v5  ;;  %v7987_v20 = vld [vmem:[#allocation11_spill] sm:$0xff] }
 0x703   :  { %2773 = vmatpush.msra.mxu0 %v6577_v61  ;;  %2793 = vmatpush.msrb.mxu1 %v6261_v3  ;;  %v7988_v3 = vld [vmem:[#allocation6_spill] sm:$0xff] }
 0x704   :  { %2813 = vmatpush.msrb.mxu2 %v6267_v40  ;;  %2833 = vmatpush.msrb.mxu3 %v6399_v45  ;;  %v7989_v40 = vld [vmem:[#allocation56_spill] sm:$0xff] }
 0x705   :  { %2774 = vmatpush.msra.mxu0 %v6586_v7  ;;  %2794 = vmatpush.msrb.mxu1 %v6275_v26  ;;  %v7990_v26 = vld [vmem:[#allocation67_spill] sm:$0xff] }
 0x706   :  { %2814 = vmatpush.msrb.mxu2 %v6281_v4  ;;  %2834 = vmatpush.msrb.mxu3 %v6408_v23  ;;  %v7991_v4 = vld [vmem:[#allocation61_spill] sm:$0xff] }
 0x707   :  { %2775 = vmatpush.msra.mxu0 %v6595_v29  ;;  %2795 = vmatpush.msrb.mxu1 %v6289_v44  ;;  %v7992_v44 = vld [vmem:[#allocation51_spill] sm:$0xff] }
 0x708   :  { %2815 = vmatpush.msrb.mxu2 %v6295_v24  ;;  %2835 = vmatpush.msrb.mxu3 %v6417_v2  ;;  %v7993_v24 = vld [vmem:[#allocation68_spill] sm:$0xff] }
 0x709   :  { %2776 = vmatpush.msra.mxu0 %v6604_v33  ;;  %2796 = vmatpush.msrb.mxu1 %v6303_v18  ;;  %v7994_v18 = vld [vmem:[#allocation57_spill] sm:$0xff] }
 0x70a   :  { %2816 = vmatpush.msrb.mxu2 %v6425_v21  ;;  %2836 = vmatpush.msrb.mxu3 %v6612_v0 }
 0x70b   :  { %2777 = vmatpush.msra.mxu0 %v6618_v27  ;;  %2797 = vmatpush.msrb.mxu1 %v6312_v25  ;;  %v7995_v25 = vld [vmem:[#allocation52_spill] sm:$0xff] }
 0x70c   :  { %2817 = vmatpush.msrb.mxu2 %v6434_v1  ;;  %2837 = vmatpush.msrb.mxu3 %v6626_v59 }
 0x70d   :  { %2778 = vmatpush.msra.mxu0 %v6632_v9  ;;  %2798 = vmatpush.msrb.mxu1 %v6442_v19 }
 0x70e   :  { %2818 = vmatpush.msrb.mxu2 %v7980_v63  ;;  %2838 = vmatpush.msrb.mxu3 %v7981_v36 }
 0x70f   :  { %2779 = vmatpush.msra.mxu0 %v7982_v37  ;;  %2799 = vmatpush.msrb.mxu1 %v7983_v11 }
 0x710   :  { %2819 = vmatpush.msrb.mxu2 %v7984_v32  ;;  %2839 = vmatpush.msrb.mxu3 %v7985_v8 }
 0x711   :  { %2780 = vmatpush.msra.mxu0 %v7986_v35  ;;  %2800 = vmatpush.msrb.mxu1 %v7987_v20 }
 0x712   :  { %2820 = vmatpush.msrb.mxu2 %v7988_v3  ;;  %2840 = vmatpush.msrb.mxu3 %v7989_v40 }
 0x713   :  { %2781 = vmatpush.msra.mxu0 %v7990_v26  ;;  %2801 = vmatpush.msrb.mxu1 %v7991_v4 }
 0x714   :  { %2821 = vmatpush.msrb.mxu2 %v7992_v44  ;;  %2841 = vmatpush.msrb.mxu3 %v7993_v24 }
 0x715   :  { %2782 = vmatpush.msra.mxu0 %v7994_v18  ;;  %2802 = vmatpush.msrb.mxu1 %v7995_v25 }
 0x716   :  { %2822 = vmatpush.msrb.mxu2 %v7996_v62  ;;  %2842 = vmatpush.msrb.mxu3 %v7997_v6 }
 0x717   :  { %2783 = vmatpush.msra.mxu0 %v7998_v12  ;;  %2803 = vmatpush.msrb.mxu1 %v7999_v43 }
 0x718   :  { %2823 = vmatpush.msrb.mxu2 %v8000_v47  ;;  %2843 = vmatpush.msrb.mxu3 %v8001_v55 }
 0x719   :  { %2784 = vmatpush.msra.mxu0 %v8002_v56  ;;  %2804 = vmatpush.msrb.mxu1 %v8003_v41 }
 0x71a   :  { %2824 = vmatpush.msrb.mxu2 %v8004_v28  ;;  %2844 = vmatpush.msrb.mxu3 %v8005_v31 }
 0x776   :  { %v2478_v58 = vpop.f32.mrf.mxu0  ;;  %v2498_v54 = vpop.f32.mrf.mxu1 }
 0x777   :  { %v2541_v42 = vadd.f32 %v2478_v58, %v876_v48  ;;  %v2542_v60 = vadd.f32 %v2498_v54, %v941_v15  ;;  %v8012_v15 = vld [vmem:[#allocation50_spill] sm:$0xff]  ;;  %v8013_v58 = vld [vmem:[#allocation25_spill] sm:$0xff] }
 0x778   :  { %v1006_v54 = vadd.f32 %v8013_v58, %v8012_v15 }
 0x779   :  { %v3882_v30 = vmul.f32 -1.442695, %v2541_v42  ;;  %v3883_v22 = vmul.f32 -1.442695, %v2542_v60 }
 0x77b   :  { %4036 = vpow2.f32 %v3882_v30 }
 0x77c   :  { %4038 = vpow2.f32 %v3883_v22 }
 0x77d   :  { %v2538_v28 = vpop.f32.mrf.mxu3  ;;  %v2518_v39 = vpop.f32.mrf.mxu2 }
 0x77e   :  { %v2544_v41 = vadd.f32 %v2538_v28, %v1071_v38  ;;  %v2543_v30 = vadd.f32 %v2518_v39, %v1006_v54 }
 0x780   :  { %v3884_v31 = vmul.f32 -1.442695, %v2544_v41 }
 0x781   :  { %v4037_v56 = vpop.eup %4036 }
 0x782   :  { %v4039_v55 = vpop.eup %4038  ;;  %v2548_v10 = vadd.f32 1.0, %v4037_v56  ;;  %4040 = vpow2.f32 %v3884_v31 }
 0x783   :  { %v2567_v49 = vadd.f32 1.0, %v4039_v55 }
 0x784   :  { %4042 = vrcp.f32 %v2548_v10  ;;  %v2560_v53 = vand.u32 2147483648, %v2548_v10  ;;  %v2558_v31 = vand.u32 2147483647, %v2548_v10  ;;  %vm2554_vm4 = vweird.f32 %v2548_v10 }
 0x785   :  { %4044 = vrcp.f32 %v2567_v49  ;;  %v2579_v56 = vand.u32 2147483648, %v2567_v49  ;;  %v2577_v47 = vand.u32 2147483647, %v2567_v49  ;;  %vm2573_vm5 = vweird.f32 %v2567_v49 }
 0x786   :  { %v2561_v39 = vor.u32 1.1754944e-38, %v2560_v53  ;;  %vm2559_vm8 = vcmp.eq.f32.partialorder %v2558_v31, 8.507059e+37 }
 0x787   :  { %vm2578_vm9 = vcmp.eq.f32.partialorder %v2577_v47, 8.507059e+37 }
 0x788   :  { %v4041_v48 = vpop.eup %4040 }
 0x789   :  { %v2587_v42 = vadd.f32 1.0, %v4041_v48 }
 0x78a   :  { %v4043_v60 = vpop.eup %4042 }
 0x78b   :  { %v4045_v51 = vpop.eup %4044  ;;  %v2550_v22 = vmul.f32 %v4043_v60, %v2548_v10  ;;  %4046 = vrcp.f32 %v2587_v42  ;;  %vm2555_vm2 = vweird.f32 %v4043_v60  ;;  %vm2593_vm11 = vweird.f32 %v2587_v42 }
 0x78c   :  { %v2569_v28 = vmul.f32 %v4045_v51, %v2567_v49  ;;  %4048 = vtanh.f32 %v2543_v30  ;;  %vm2574_vm3 = vweird.f32 %v4045_v51  ;;  %vm2556_vm6 = vmor %vm2554_vm4, %vm2555_vm2  ;;  %v2597_v53 = vand.u32 2147483647, %v2587_v42 }
 0x78d   :  { %v2551_v41 = vsub.f32 1.0, %v2550_v22  ;;  %vm2575_vm7 = vmor %vm2573_vm5, %vm2574_vm3  ;;  %v2580_v22 = vor.u32 1.1754944e-38, %v2579_v56 }
 0x78e   :  { %v2570_v38 = vsub.f32 1.0, %v2569_v28  ;;  %vm2598_vm13 = vcmp.eq.f32.partialorder %v2597_v53, 8.507059e+37 }
 0x78f   :  { %v2552_v55 = vmul.f32 %v4043_v60, %v2551_v41 }
 0x790   :  { %v2571_v52 = vmul.f32 %v4045_v51, %v2570_v38 }
 0x791   :  { %v4047_v43 = vpop.eup %4046  ;;  %v2553_v58 = vadd.f32 %v4043_v60, %v2552_v55 }
 0x792   :  { %v2572_v48 = vadd.f32 %v4045_v51, %v2571_v52  ;;  %v2589_v54 = vmul.f32 %v4047_v43, %v2587_v42  ;;  %v4049_v30 = vpop.eup %4048  ;;  %vm2594_vm10 = vweird.f32 %v4047_v43  ;;  %v2599_v52 = vand.u32 2147483648, %v2587_v42  ;;  %v6891_v42 = vld [vmem:[%s7585_s4 + $0x170] sm:$0xff] }
 0x793   :  { %v2557_v28 = vsel %vm2556_vm6, %v4043_v60, %v2553_v58  ;;  %vm2595_vm12 = vmor %vm2593_vm11, %vm2594_vm10  ;;  %v6905_v58 = vld [vmem:[%s7585_s4 + $0x150] sm:$0xff] }
 0x794   :  { %v2562_v15 = vsel %vm2559_vm8, %v2561_v39, %v2557_v28  ;;  %v2576_v41 = vsel %vm2575_vm7, %v4045_v51, %v2572_v48  ;;  %v2590_v12 = vsub.f32 1.0, %v2589_v54  ;;  %v2600_v56 = vor.u32 1.1754944e-38, %v2599_v52  ;;  %v6919_v39 = vld [vmem:[%s7585_s4 + $0x130] sm:$0xff]  ;;  %v6936_v48 = vld [vmem:[%s7585_s4 + $0xe8] sm:$0xff]  ;;  %v8027_v28 = vld [vmem:[#allocation27_spill] sm:$0xff] }
 0x795   :  { %v2581_v38 = vsel %vm2578_vm9, %v2580_v22, %v2576_v41  ;;  %v2604_v6 = vmul.f32 %v4049_v30, %v2562_v15  ;;  %v6877_v15 = vld [vmem:[%s7585_s4 + $0x190] sm:$0xff] }
 0x796   :  { %v2603_v62 = vmul.f32 %v2581_v38, %v6746_v16  ;;  %v2591_v55 = vmul.f32 %v4047_v43, %v2590_v12  ;;  %v6829_v16 = vld [vmem:[%s7585_s4 + $0x1e8] sm:$0xff]  ;;  %v6849_v12 = vld [vmem:[%s7585_s4 + $0x1d0] sm:$0xff] }
 0x797   :  { %v8026_v22 = vld [vmem:[#allocation46_spill] sm:$0xff] }
 0x798   :  { %v6822_v10 = vadd.f32 %v2604_v6, %v2603_v62  ;;  %v2592_v49 = vadd.f32 %v4047_v43, %v2591_v55  ;;  %v6835_v62 = vld [vmem:[%s7585_s4 + $0x1f0] sm:$0xff]  ;;  %v6843_v6 = vld [vmem:[%s7585_s4 + $0x1c8] sm:$0xff]  ;;  %v944_v30 = vadd.f32 %v8027_v28, %v8026_v22 }
 0x79a   :  { %4050 = vtanh.f32 %v6822_v10  ;;  %v2596_v60 = vsel %vm2595_vm12, %v4047_v43, %v2592_v49  ;;  %v6863_v43 = vld [vmem:[%s7585_s4 + $0x1b0] sm:$0xff] }
 0x79b   :  { %v2601_v51 = vsel %vm2598_vm13, %v2600_v56, %v2596_v60  ;;  %v8028_v60 = vld [vmem:[#allocation47_spill] sm:$0xff]  ;;  %v8029_v56 = vld [vmem:[#allocation78_spill] sm:$0xff] }
 0x7a0   :  { %v4051_v47 = vpop.eup %4050 }
 0x7a1   :  { %v2607_v31 = vmul.f32 %v4051_v47, %v2601_v51  ;;  %v1074_v47 = vadd.f32 %v8029_v56, %v8028_v60 }
 0x7a3   :  { %2631 = vmatmul.f32.vlgmr.msrb.gmra.mxu0 %v2607_v31  ;;  %2651 = vmatmul.f32.vlgmr.msra.gmra.mxu1 %v2607_v31 }
 0x7a4   :  { %2671 = vmatmul.f32.vlgmr.msra.gmra.mxu2 %v2607_v31  ;;  %2691 = vmatmul.f32.vlgmr.msra.gmra.mxu3 %v2607_v31 }
 0x7a5   :  { %2923 = vmatpush.msrb.mxu0 %v6541_v50  ;;  %2943 = vmatpush.msra.mxu1 %v6829_v16 }
 0x7a6   :  { %2963 = vmatpush.msra.mxu2 %v6835_v62  ;;  %2983 = vmatpush.msra.mxu3 %v6363_v17  ;;  %v6857_v17 = vld [vmem:[%s7585_s4 + $0x1a8] sm:$0xff] }
 0x7a7   :  { %2924 = vmatpush.msrb.mxu0 %v6550_v34  ;;  %2944 = vmatpush.msra.mxu1 %v6843_v6 }
 0x7a8   :  { %2964 = vmatpush.msra.mxu2 %v6849_v12  ;;  %2984 = vmatpush.msra.mxu3 %v6372_v14  ;;  %v6871_v14 = vld [vmem:[%s7585_s4 + $0x188] sm:$0xff] }
 0x7a9   :  { %2925 = vmatpush.msrb.mxu0 %v6559_v13  ;;  %2945 = vmatpush.msra.mxu1 %v6857_v17 }
 0x7aa   :  { %2965 = vmatpush.msra.mxu2 %v6863_v43  ;;  %2985 = vmatpush.msra.mxu3 %v6381_v46  ;;  %v6885_v46 = vld [vmem:[%s7585_s4 + $0x168] sm:$0xff] }
 0x7ab   :  { %2926 = vmatpush.msrb.mxu0 %v6568_v57  ;;  %2946 = vmatpush.msra.mxu1 %v6871_v14 }
 0x7ac   :  { %2966 = vmatpush.msra.mxu2 %v6877_v15  ;;  %2986 = vmatpush.msra.mxu3 %v6390_v5  ;;  %v6899_v5 = vld [vmem:[%s7585_s4 + $0x148] sm:$0xff] }
 0x7ad   :  { %2927 = vmatpush.msrb.mxu0 %v6577_v61  ;;  %2947 = vmatpush.msra.mxu1 %v6885_v46 }
 0x7ae   :  { %2967 = vmatpush.msra.mxu2 %v6891_v42  ;;  %2987 = vmatpush.msra.mxu3 %v6399_v45  ;;  %v6913_v45 = vld [vmem:[%s7585_s4 + $0x128] sm:$0xff] }
 0x7af   :  { %2928 = vmatpush.msrb.mxu0 %v6586_v7  ;;  %2948 = vmatpush.msra.mxu1 %v6899_v5 }
 0x7b0   :  { %2968 = vmatpush.msra.mxu2 %v6905_v58  ;;  %2988 = vmatpush.msra.mxu3 %v6408_v23  ;;  %v6927_v23 = vld [vmem:[%s7585_s4 + $0x108] sm:$0xff] }
 0x7b1   :  { %2929 = vmatpush.msrb.mxu0 %v6595_v29  ;;  %2949 = vmatpush.msra.mxu1 %v6913_v45 }
 0x7b2   :  { %2969 = vmatpush.msra.mxu2 %v6919_v39  ;;  %2989 = vmatpush.msra.mxu3 %v6417_v2  ;;  %v8014_v2 = vld [vmem:[#allocation62_spill] sm:$0xff] }
 0x7b3   :  { %2930 = vmatpush.msrb.mxu0 %v6604_v33  ;;  %2950 = vmatpush.msra.mxu1 %v6927_v23 }
 0x7b4   :  { %2970 = vmatpush.msra.mxu2 %v6425_v21  ;;  %2990 = vmatpush.msra.mxu3 %v6612_v0  ;;  %v8015_v21 = vld [vmem:[#allocation9_spill] sm:$0xff] }
 0x7b5   :  { %2931 = vmatpush.msrb.mxu0 %v6618_v27  ;;  %2951 = vmatpush.msra.mxu1 %v6936_v48 }
 0x7b6   :  { %2971 = vmatpush.msra.mxu2 %v6434_v1  ;;  %2991 = vmatpush.msra.mxu3 %v6626_v59  ;;  %v8016_v1 = vld [vmem:[#allocation10_spill] sm:$0xff] }
 0x7b7   :  { %2932 = vmatpush.msrb.mxu0 %v6632_v9  ;;  %2952 = vmatpush.msra.mxu1 %v6442_v19  ;;  %v8017_v19 = vld [vmem:[#allocation63_spill] sm:$0xff] }
 0x7b8   :  { %2972 = vmatpush.msra.mxu2 %v7980_v63  ;;  %2992 = vmatpush.msra.mxu3 %v7981_v36  ;;  %v8018_v63 = vld [vmem:[#allocation5_spill] sm:$0xff] }
 0x7b9   :  { %2933 = vmatpush.msrb.mxu0 %v7982_v37  ;;  %2953 = vmatpush.msra.mxu1 %v7983_v11  ;;  %v8019_v11 = vld [vmem:[#allocation4_spill] sm:$0xff] }
 0x7ba   :  { %2973 = vmatpush.msra.mxu2 %v7984_v32  ;;  %2993 = vmatpush.msra.mxu3 %v7985_v8  ;;  %v8020_v32 = vld [vmem:[#allocation58_spill] sm:$0xff] }
 0x7bb   :  { %2934 = vmatpush.msrb.mxu0 %v7986_v35  ;;  %2954 = vmatpush.msra.mxu1 %v7987_v20  ;;  %v8021_v20 = vld [vmem:[#allocation53_spill] sm:$0xff] }
 0x7bc   :  { %2974 = vmatpush.msra.mxu2 %v7988_v3  ;;  %2994 = vmatpush.msra.mxu3 %v7989_v40  ;;  %v8022_v3 = vld [vmem:[#allocation69_spill] sm:$0xff] }
 0x7bd   :  { %2935 = vmatpush.msrb.mxu0 %v7990_v26  ;;  %2955 = vmatpush.msra.mxu1 %v7991_v4  ;;  %v8023_v4 = vld [vmem:[#allocation70_spill] sm:$0xff] }
 0x7be   :  { %2975 = vmatpush.msra.mxu2 %v7992_v44  ;;  %2995 = vmatpush.msra.mxu3 %v7993_v24  ;;  %v8024_v44 = vld [vmem:[#allocation44_spill] sm:$0xff] }
 0x7bf   :  { %2936 = vmatpush.msrb.mxu0 %v7994_v18  ;;  %2956 = vmatpush.msra.mxu1 %v7995_v25  ;;  %v8025_v25 = vld [vmem:[#allocation26_spill] sm:$0xff] }
 0x7c0   :  { %2976 = vmatpush.msra.mxu2 %v8014_v2  ;;  %2996 = vmatpush.msra.mxu3 %v8015_v21  ;;  %v879_v54 = vadd.f32 %v8025_v25, %v8024_v44 }
 0x7c1   :  { %2937 = vmatpush.msrb.mxu0 %v8016_v1  ;;  %2957 = vmatpush.msra.mxu1 %v8017_v19 }
 0x7c2   :  { %2977 = vmatpush.msra.mxu2 %v8018_v63  ;;  %2997 = vmatpush.msra.mxu3 %v8019_v11 }
 0x7c3   :  { %2938 = vmatpush.msrb.mxu0 %v8020_v32  ;;  %2958 = vmatpush.msra.mxu1 %v8021_v20 }
 0x7c4   :  { %2978 = vmatpush.msra.mxu2 %v8022_v3  ;;  %2998 = vmatpush.msra.mxu3 %v8023_v4 }
 0x820   :  { %v2632_v41 = vpop.f32.mrf.mxu0  ;;  %v2652_v38 = vpop.f32.mrf.mxu1 }
 0x821   :  { %v2695_v55 = vadd.f32 %v2632_v41, %v879_v54  ;;  %v2696_v49 = vadd.f32 %v2652_v38, %v944_v30  ;;  %v8030_v30 = vld [vmem:[#allocation50_spill] sm:$0xff]  ;;  %v8031_v41 = vld [vmem:[#allocation29_spill] sm:$0xff] }
 0x822   :  { %v1009_v38 = vadd.f32 %v8031_v41, %v8030_v30 }
 0x823   :  { %v3885_v52 = vmul.f32 -1.442695, %v2695_v55  ;;  %v3886_v53 = vmul.f32 -1.442695, %v2696_v49 }
 0x825   :  { %4052 = vpow2.f32 %v3885_v52 }
 0x826   :  { %4054 = vpow2.f32 %v3886_v53 }
 0x827   :  { %v2692_v51 = vpop.f32.mrf.mxu3  ;;  %v2672_v28 = vpop.f32.mrf.mxu2 }
 0x828   :  { %v2698_v31 = vadd.f32 %v2692_v51, %v1074_v47  ;;  %v2697_v52 = vadd.f32 %v2672_v28, %v1009_v38 }
 0x82a   :  { %v3887_v2 = vmul.f32 -1.442695, %v2698_v31 }
 0x82b   :  { %v4053_v19 = vpop.eup %4052 }
 0x82c   :  { %v4055_v20 = vpop.eup %4054  ;;  %v2702_v25 = vadd.f32 1.0, %v4053_v19  ;;  %4056 = vpow2.f32 %v3887_v2 }
 0x82d   :  { %v2721_v44 = vadd.f32 1.0, %v4055_v20 }
 0x82e   :  { %4058 = vrcp.f32 %v2702_v25  ;;  %v2714_v60 = vand.u32 2147483648, %v2702_v25  ;;  %v2712_v20 = vand.u32 2147483647, %v2702_v25  ;;  %vm2708_vm0 = vweird.f32 %v2702_v25 }
 0x82f   :  { %4060 = vrcp.f32 %v2721_v44  ;;  %v2733_v2 = vand.u32 2147483648, %v2721_v44  ;;  %v2731_v4 = vand.u32 2147483647, %v2721_v44  ;;  %vm2727_vm1 = vweird.f32 %v2721_v44 }
 0x830   :  { %v2715_v28 = vor.u32 1.1754944e-38, %v2714_v60  ;;  %vm2713_vm4 = vcmp.eq.f32.partialorder %v2712_v20, 8.507059e+37 }
 0x831   :  { %vm2732_vm5 = vcmp.eq.f32.partialorder %v2731_v4, 8.507059e+37 }
 0x832   :  { %v4057_v54 = vpop.eup %4056 }
 0x833   :  { %v2741_v55 = vadd.f32 1.0, %v4057_v54 }
 0x834   :  { %v4059_v49 = vpop.eup %4058 }
 0x835   :  { %v4061_v56 = vpop.eup %4060  ;;  %v2704_v53 = vmul.f32 %v4059_v49, %v2702_v25  ;;  %4062 = vrcp.f32 %v2741_v55  ;;  %vm2709_vm14 = vweird.f32 %v4059_v49  ;;  %vm2747_vm7 = vweird.f32 %v2741_v55 }
 0x836   :  { %v2723_v47 = vmul.f32 %v4061_v56, %v2721_v44  ;;  %4064 = vtanh.f32 %v2697_v52  ;;  %vm2728_vm15 = vweird.f32 %v4061_v56  ;;  %vm2710_vm2 = vmor %vm2708_vm0, %vm2709_vm14  ;;  %v2751_v60 = vand.u32 2147483647, %v2741_v55 }
 0x837   :  { %v2705_v51 = vsub.f32 1.0, %v2704_v53  ;;  %vm2729_vm3 = vmor %vm2727_vm1, %vm2728_vm15  ;;  %v2734_v53 = vor.u32 1.1754944e-38, %v2733_v2 }
 0x838   :  { %v2724_v31 = vsub.f32 1.0, %v2723_v47  ;;  %vm2752_vm9 = vcmp.eq.f32.partialorder %v2751_v60, 8.507059e+37 }
 0x839   :  { %v2706_v19 = vmul.f32 %v4059_v49, %v2705_v51 }
 0x83a   :  { %v2725_v22 = vmul.f32 %v4061_v56, %v2724_v31 }
 0x83b   :  { %v4063_v3 = vpop.eup %4062  ;;  %v2707_v41 = vadd.f32 %v4059_v49, %v2706_v19 }
 0x83c   :  { %v2726_v54 = vadd.f32 %v4061_v56, %v2725_v22  ;;  %v2743_v38 = vmul.f32 %v4063_v3, %v2741_v55  ;;  %v4065_v52 = vpop.eup %4064  ;;  %vm2748_vm6 = vweird.f32 %v4063_v3  ;;  %v2753_v22 = vand.u32 2147483648, %v2741_v55 }
 0x83d   :  { %v2711_v47 = vsel %vm2710_vm2, %v4059_v49, %v2707_v41  ;;  %vm2749_vm8 = vmor %vm2747_vm7, %vm2748_vm6  ;;  %v8050_v41 = vld [vmem:[#allocation46_spill] sm:$0xff] }
 0x83e   :  { %v2716_v30 = vsel %vm2713_vm4, %v2715_v28, %v2711_v47  ;;  %v2730_v51 = vsel %vm2729_vm3, %v4061_v56, %v2726_v54  ;;  %v2744_v32 = vsub.f32 1.0, %v2743_v38  ;;  %v2754_v2 = vor.u32 1.1754944e-38, %v2753_v22  ;;  %v8051_v28 = vld [vmem:[#allocation30_spill] sm:$0xff] }
 0x83f   :  { %v2735_v31 = vsel %vm2732_vm5, %v2734_v53, %v2730_v51  ;;  %v2758_v11 = vmul.f32 %v4065_v52, %v2716_v30  ;;  %v8049_v30 = vld [vmem:[#allocation28_spill] sm:$0xff]  ;;  %v947_v54 = vadd.f32 %v8051_v28, %v8050_v41 }
 0x840   :  { %v2757_v63 = vmul.f32 %v2735_v31, %v6822_v10  ;;  %v2745_v19 = vmul.f32 %v4063_v3, %v2744_v32  ;;  %v6987_v10 = vld [vmem:[%s7585_s4 + $0x1f8] sm:$0xff]  ;;  %v7145_v32 = vld [vmem:[%s7585_s4 + $0x8] sm:$0xff] }
 0x841   :  { %8045 = vst [vmem:[#allocation75_spill] sm:$0xff] %v7145_v32 }
 0x842   :  { %v6978_v25 = vadd.f32 %v2758_v11, %v2757_v63  ;;  %v2746_v44 = vadd.f32 %v4063_v3, %v2745_v19  ;;  %v7049_v63 = vld [vmem:[%s7585_s4 + $0x110] sm:$0xff]  ;;  %v8052_v19 = vld [vmem:[#allocation47_spill] sm:$0xff] }
 0x843   :  { %v8044_v11 = vld [vmem:[#allocation58_spill] sm:$0xff] }
 0x844   :  { %4066 = vtanh.f32 %v6978_v25  ;;  %v2750_v49 = vsel %vm2749_vm8, %v4063_v3, %v2746_v44  ;;  %v8048_v3 = vld [vmem:[#allocation44_spill] sm:$0xff]  ;;  %v8053_v44 = vld [vmem:[#allocation79_spill] sm:$0xff] }
 0x845   :  { %v2755_v56 = vsel %vm2752_vm9, %v2754_v2, %v2750_v49  ;;  %v882_v55 = vadd.f32 %v8049_v30, %v8048_v3  ;;  %v1077_v22 = vadd.f32 %v8053_v44, %v8052_v19 }
 0x84a   :  { %v4067_v4 = vpop.eup %4066 }
 0x84b   :  { %v2761_v20 = vmul.f32 %v4067_v4, %v2755_v56 }
 0x84d   :  { %2785 = vmatmul.f32.vlgmr.msra.gmra.mxu0 %v2761_v20  ;;  %2805 = vmatmul.f32.vlgmr.msrb.gmra.mxu1 %v2761_v20 }
 0x84e   :  { %2825 = vmatmul.f32.vlgmr.msrb.gmra.mxu2 %v2761_v20  ;;  %2845 = vmatmul.f32.vlgmr.msrb.gmra.mxu3 %v2761_v20 }
 0x84f   :  { %3077 = vmatpush.msra.mxu0 %v6541_v50  ;;  %3097 = vmatpush.msrb.mxu1 %v6829_v16  ;;  %v6996_v50 = vld [vmem:[%s7585_s4 + $0x1d8] sm:$0xff] }
 0x850   :  { %3117 = vmatpush.msrb.mxu2 %v6835_v62  ;;  %3137 = vmatpush.msrb.mxu3 %v6987_v10 }
 0x851   :  { %3078 = vmatpush.msra.mxu0 %v6550_v34  ;;  %3098 = vmatpush.msrb.mxu1 %v6843_v6  ;;  %v7005_v34 = vld [vmem:[%s7585_s4 + $0x1b8] sm:$0xff] }
 0x852   :  { %3118 = vmatpush.msrb.mxu2 %v6849_v12  ;;  %3138 = vmatpush.msrb.mxu3 %v6996_v50 }
 0x853   :  { %3079 = vmatpush.msra.mxu0 %v6559_v13  ;;  %3099 = vmatpush.msrb.mxu1 %v6857_v17  ;;  %v7014_v13 = vld [vmem:[%s7585_s4 + $0x198] sm:$0xff] }
 0x854   :  { %3119 = vmatpush.msrb.mxu2 %v6863_v43  ;;  %3139 = vmatpush.msrb.mxu3 %v7005_v34 }
 0x855   :  { %3080 = vmatpush.msra.mxu0 %v6568_v57  ;;  %3100 = vmatpush.msrb.mxu1 %v6871_v14  ;;  %v7023_v57 = vld [vmem:[%s7585_s4 + $0x178] sm:$0xff] }
 0x856   :  { %3120 = vmatpush.msrb.mxu2 %v6877_v15  ;;  %3140 = vmatpush.msrb.mxu3 %v7014_v13 }
 0x857   :  { %3081 = vmatpush.msra.mxu0 %v6577_v61  ;;  %3101 = vmatpush.msrb.mxu1 %v6885_v46  ;;  %v7032_v61 = vld [vmem:[%s7585_s4 + $0x158] sm:$0xff] }
 0x858   :  { %3121 = vmatpush.msrb.mxu2 %v6891_v42  ;;  %3141 = vmatpush.msrb.mxu3 %v7023_v57 }
 0x859   :  { %3082 = vmatpush.msra.mxu0 %v6586_v7  ;;  %3102 = vmatpush.msrb.mxu1 %v6899_v5  ;;  %v7041_v7 = vld [vmem:[%s7585_s4 + $0x138] sm:$0xff] }
 0x85a   :  { %3122 = vmatpush.msrb.mxu2 %v6905_v58  ;;  %3142 = vmatpush.msrb.mxu3 %v7032_v61 }
 0x85b   :  { %3083 = vmatpush.msra.mxu0 %v6595_v29  ;;  %3103 = vmatpush.msrb.mxu1 %v6913_v45  ;;  %v7058_v29 = vld [vmem:[%s7585_s4 + $0xf0] sm:$0xff] }
 0x85c   :  { %3123 = vmatpush.msrb.mxu2 %v6919_v39  ;;  %3143 = vmatpush.msrb.mxu3 %v7041_v7 }
 0x85d   :  { %3084 = vmatpush.msra.mxu0 %v6604_v33  ;;  %3104 = vmatpush.msrb.mxu1 %v6927_v23  ;;  %v7066_v33 = vld [vmem:[%s7585_s4 + $0xc8] sm:$0xff] }
 0x85e   :  { %3124 = vmatpush.msrb.mxu2 %v7049_v63  ;;  %3144 = vmatpush.msrb.mxu3 %v6612_v0  ;;  %v7072_v0 = vld [vmem:[%s7585_s4 + $0xd0] sm:$0xff] }
 0x85f   :  { %3085 = vmatpush.msra.mxu0 %v6618_v27  ;;  %3105 = vmatpush.msrb.mxu1 %v6936_v48  ;;  %8032 = vst [vmem:[#allocation59_spill] sm:$0xff] %v7072_v0  ;;  %v7080_v27 = vld [vmem:[%s7585_s4 + $0xa8] sm:$0xff] }
 0x860   :  { %3125 = vmatpush.msrb.mxu2 %v7058_v29  ;;  %3145 = vmatpush.msrb.mxu3 %v6626_v59  ;;  %8033 = vst [vmem:[#allocation60_spill] sm:$0xff] %v7080_v27  ;;  %v7086_v59 = vld [vmem:[%s7585_s4 + $0xb0] sm:$0xff] }
 0x861   :  { %3086 = vmatpush.msra.mxu0 %v6632_v9  ;;  %3106 = vmatpush.msrb.mxu1 %v7066_v33  ;;  %8034 = vst [vmem:[#allocation14_spill] sm:$0xff] %v7086_v59  ;;  %v7094_v9 = vld [vmem:[%s7585_s4 + $0x88] sm:$0xff] }
 0x862   :  { %3126 = vmatpush.msrb.mxu2 %v7072_v0  ;;  %3146 = vmatpush.msrb.mxu3 %v7981_v36  ;;  %8035 = vst [vmem:[#allocation15_spill] sm:$0xff] %v7094_v9  ;;  %v7100_v36 = vld [vmem:[%s7585_s4 + $0x90] sm:$0xff] }
 0x863   :  { %3087 = vmatpush.msra.mxu0 %v7982_v37  ;;  %3107 = vmatpush.msrb.mxu1 %v7080_v27  ;;  %8036 = vst [vmem:[#allocation12_spill] sm:$0xff] %v7100_v36  ;;  %v7108_v37 = vld [vmem:[%s7585_s4 + $0x68] sm:$0xff] }
 0x864   :  { %3127 = vmatpush.msrb.mxu2 %v7086_v59  ;;  %3147 = vmatpush.msrb.mxu3 %v7985_v8  ;;  %8037 = vst [vmem:[#allocation16_spill] sm:$0xff] %v7108_v37  ;;  %v7114_v8 = vld [vmem:[%s7585_s4 + $0x70] sm:$0xff] }
 0x865   :  { %3088 = vmatpush.msra.mxu0 %v7986_v35  ;;  %3108 = vmatpush.msrb.mxu1 %v7094_v9  ;;  %8038 = vst [vmem:[#allocation71_spill] sm:$0xff] %v7114_v8  ;;  %v7122_v35 = vld [vmem:[%s7585_s4 + $0x48] sm:$0xff] }
 0x866   :  { %3128 = vmatpush.msrb.mxu2 %v7100_v36  ;;  %3148 = vmatpush.msrb.mxu3 %v7989_v40  ;;  %8039 = vst [vmem:[#allocation72_spill] sm:$0xff] %v7122_v35  ;;  %v7128_v40 = vld [vmem:[%s7585_s4 + $0x50] sm:$0xff] }
 0x867   :  { %3089 = vmatpush.msra.mxu0 %v7990_v26  ;;  %3109 = vmatpush.msrb.mxu1 %v7108_v37  ;;  %8040 = vst [vmem:[#allocation73_spill] sm:$0xff] %v7128_v40  ;;  %v7136_v26 = vld [vmem:[%s7585_s4 + $0x28] sm:$0xff] }
 0x868   :  { %3129 = vmatpush.msrb.mxu2 %v7114_v8  ;;  %3149 = vmatpush.msrb.mxu3 %v7993_v24  ;;  %8041 = vst [vmem:[#allocation74_spill] sm:$0xff] %v7136_v26  ;;  %v8042_v24 = vld [vmem:[#allocation5_spill] sm:$0xff] }
 0x869   :  { %3090 = vmatpush.msra.mxu0 %v7994_v18  ;;  %3110 = vmatpush.msrb.mxu1 %v7122_v35  ;;  %v8043_v18 = vld [vmem:[#allocation4_spill] sm:$0xff] }
 0x86a   :  { %3130 = vmatpush.msrb.mxu2 %v7128_v40  ;;  %3150 = vmatpush.msrb.mxu3 %v8015_v21  ;;  %v8046_v21 = vld [vmem:[#allocation69_spill] sm:$0xff] }
 0x86b   :  { %3091 = vmatpush.msra.mxu0 %v8016_v1  ;;  %3111 = vmatpush.msrb.mxu1 %v7136_v26  ;;  %v8047_v1 = vld [vmem:[#allocation70_spill] sm:$0xff] }
 0x86c   :  { %3131 = vmatpush.msrb.mxu2 %v8042_v24  ;;  %3151 = vmatpush.msrb.mxu3 %v8043_v18 }
 0x86d   :  { %3092 = vmatpush.msra.mxu0 %v8044_v11  ;;  %3112 = vmatpush.msrb.mxu1 %v7145_v32 }
 0x86e   :  { %3132 = vmatpush.msrb.mxu2 %v8046_v21  ;;  %3152 = vmatpush.msrb.mxu3 %v8047_v1  ;;  %v8054_v21 = vld [vmem:[#allocation50_spill] sm:$0xff]  ;;  %v8055_v1 = vld [vmem:[#allocation32_spill] sm:$0xff] }
 0x86f   :  { %v1012_v30 = vadd.f32 %v8055_v1, %v8054_v21 }
 0x8ca   :  { %v2786_v38 = vpop.f32.mrf.mxu0  ;;  %v2806_v53 = vpop.f32.mrf.mxu1 }
 0x8cb   :  { %v2849_v47 = vadd.f32 %v2786_v38, %v882_v55  ;;  %v2850_v52 = vadd.f32 %v2806_v53, %v947_v54 }
 0x8cd   :  { %v3888_v51 = vmul.f32 -1.442695, %v2849_v47  ;;  %v3889_v31 = vmul.f32 -1.442695, %v2850_v52 }
 0x8cf   :  { %4068 = vpow2.f32 %v3888_v51 }
 0x8d0   :  { %4070 = vpow2.f32 %v3889_v31 }
 0x8d1   :  { %v2846_v60 = vpop.f32.mrf.mxu3  ;;  %v2826_v18 = vpop.f32.mrf.mxu2 }
 0x8d2   :  { %v2852_v49 = vadd.f32 %v2846_v60, %v1077_v22  ;;  %v2851_v54 = vadd.f32 %v2826_v18, %v1012_v30 }
 0x8d4   :  { %v3890_v2 = vmul.f32 -1.442695, %v2852_v49 }
 0x8d5   :  { %v4069_v4 = vpop.eup %4068 }
 0x8d6   :  { %v4071_v56 = vpop.eup %4070  ;;  %v2856_v20 = vadd.f32 1.0, %v4069_v4  ;;  %4072 = vpow2.f32 %v3890_v2 }
 0x8d7   :  { %v2875_v24 = vadd.f32 1.0, %v4071_v56 }
 0x8d8   :  { %4074 = vrcp.f32 %v2856_v20  ;;  %v2868_v31 = vand.u32 2147483648, %v2856_v20  ;;  %v2866_v60 = vand.u32 2147483647, %v2856_v20  ;;  %vm2862_vm12 = vweird.f32 %v2856_v20 }
 0x8d9   :  { %4076 = vrcp.f32 %v2875_v24  ;;  %v2887_v44 = vand.u32 2147483648, %v2875_v24  ;;  %v2885_v2 = vand.u32 2147483647, %v2875_v24  ;;  %vm2881_vm13 = vweird.f32 %v2875_v24 }
 0x8da   :  { %v2869_v18 = vor.u32 1.1754944e-38, %v2868_v31  ;;  %vm2867_vm0 = vcmp.eq.f32.partialorder %v2866_v60, 8.507059e+37 }
 0x8db   :  { %v2888_v30 = vor.u32 1.1754944e-38, %v2887_v44  ;;  %vm2886_vm1 = vcmp.eq.f32.partialorder %v2885_v2, 8.507059e+37 }
 0x8dc   :  { %v4073_v11 = vpop.eup %4072 }
 0x8dd   :  { %v2895_v55 = vadd.f32 1.0, %v4073_v11 }
 0x8de   :  { %v4075_v28 = vpop.eup %4074 }
 0x8df   :  { %v4077_v38 = vpop.eup %4076  ;;  %v2858_v53 = vmul.f32 %v4075_v28, %v2856_v20  ;;  %4078 = vrcp.f32 %v2895_v55  ;;  %vm2863_vm10 = vweird.f32 %v4075_v28  ;;  %v2907_v31 = vand.u32 2147483648, %v2895_v55 }
 0x8e0   :  { %v2877_v47 = vmul.f32 %v4077_v38, %v2875_v24  ;;  %4080 = vtanh.f32 %v2851_v54  ;;  %vm2882_vm11 = vweird.f32 %v4077_v38  ;;  %vm2864_vm14 = vmor %vm2862_vm12, %vm2863_vm10  ;;  %vm2901_vm3 = vweird.f32 %v2895_v55 }
 0x8e1   :  { %v2859_v52 = vsub.f32 1.0, %v2858_v53  ;;  %vm2883_vm15 = vmor %vm2881_vm13, %vm2882_vm11  ;;  %v2908_v60 = vor.u32 1.1754944e-38, %v2907_v31  ;;  %v7306_v31 = vld [vmem:[%s7585_s4 + $0x78] sm:$0xff] }
 0x8e2   :  { %v2878_v51 = vsub.f32 1.0, %v2877_v47  ;;  %8062 = vst [vmem:[#allocation76_spill] sm:$0xff] %v7306_v31 }
 0x8e3   :  { %v2860_v22 = vmul.f32 %v4075_v28, %v2859_v52 }
 0x8e4   :  { %v2879_v49 = vmul.f32 %v4077_v38, %v2878_v51 }
 0x8e5   :  { %v4079_v4 = vpop.eup %4078  ;;  %v2861_v56 = vadd.f32 %v4075_v28, %v2860_v22 }
 0x8e6   :  { %v2880_v11 = vadd.f32 %v4077_v38, %v2879_v49  ;;  %v2897_v1 = vmul.f32 %v4079_v4, %v2895_v55  ;;  %v4081_v54 = vpop.eup %4080  ;;  %vm2902_vm2 = vweird.f32 %v4079_v4 }
 0x8e7   :  { %v2865_v53 = vsel %vm2864_vm14, %v4075_v28, %v2861_v56  ;;  %v2905_v28 = vand.u32 2147483647, %v2895_v55  ;;  %vm2903_vm4 = vmor %vm2901_vm3, %vm2902_vm2  ;;  %v7201_v55 = vld [vmem:[%s7585_s4 + $0x160] sm:$0xff] }
 0x8e8   :  { %v2870_v47 = vsel %vm2867_vm0, %v2869_v18, %v2865_v53  ;;  %v2884_v52 = vsel %vm2883_vm15, %v4077_v38, %v2880_v11  ;;  %v2898_v21 = vsub.f32 1.0, %v2897_v1  ;;  %v7219_v56 = vld [vmem:[%s7585_s4 + $0x120] sm:$0xff]  ;;  %v7236_v11 = vld [vmem:[%s7585_s4 + $0x118] sm:$0xff] }
 0x8e9   :  { %v2889_v51 = vsel %vm2886_vm1, %v2888_v30, %v2884_v52  ;;  %v2912_v19 = vmul.f32 %v4081_v54, %v2870_v47  ;;  %vm2906_vm5 = vcmp.eq.f32.partialorder %v2905_v28, 8.507059e+37  ;;  %v7228_v18 = vld [vmem:[%s7585_s4 + $0x100] sm:$0xff]  ;;  %v7250_v30 = vld [vmem:[%s7585_s4 + $0xf8] sm:$0xff] }
 0x8ea   :  { %v2911_v41 = vmul.f32 %v2889_v51, %v6978_v25  ;;  %v2899_v22 = vmul.f32 %v4079_v4, %v2898_v21  ;;  %v7165_v25 = vld [vmem:[%s7585_s4 + $0x1e0] sm:$0xff]  ;;  %v7264_v54 = vld [vmem:[%s7585_s4 + $0xd8] sm:$0xff] }
 0x8eb   :  { %v7192_v21 = vld [vmem:[%s7585_s4 + $0x180] sm:$0xff]  ;;  %8056 = vst [vmem:[#allocation17_spill] sm:$0xff] %v7264_v54  ;;  %v7278_v52 = vld [vmem:[%s7585_s4 + $0xb8] sm:$0xff] }
 0x8ec   :  { %v7159_v20 = vadd.f32 %v2912_v19, %v2911_v41  ;;  %v2900_v24 = vadd.f32 %v4079_v4, %v2899_v22  ;;  %v7174_v41 = vld [vmem:[%s7585_s4 + $0x1c0] sm:$0xff]  ;;  %8058 = vst [vmem:[#allocation66_spill] sm:$0xff] %v7278_v52  ;;  %v7292_v22 = vld [vmem:[%s7585_s4 + $0x98] sm:$0xff] }
 0x8ed   :  { %v7183_v19 = vld [vmem:[%s7585_s4 + $0x1a0] sm:$0xff]  ;;  %8060 = vst [vmem:[#allocation20_spill] sm:$0xff] %v7292_v22 }
 0x8ee   :  { %4082 = vtanh.f32 %v7159_v20  ;;  %v2904_v44 = vsel %vm2903_vm4, %v4079_v4, %v2900_v24  ;;  %v7210_v4 = vld [vmem:[%s7585_s4 + $0x140] sm:$0xff] }
 0x8ef   :  { %v2909_v49 = vsel %vm2906_vm5, %v2908_v60, %v2904_v44  ;;  %v7242_v1 = vld [vmem:[%s7585_s4 + $0xe0] sm:$0xff]  ;;  %v7320_v44 = vld [vmem:[%s7585_s4 + $0x58] sm:$0xff] }
 0x8f0   :  { %v7256_v53 = vld [vmem:[%s7585_s4 + $0xc0] sm:$0xff]  ;;  %8064 = vst [vmem:[#allocation13_spill] sm:$0xff] %v7320_v44 }
 0x8f1   :  { %v7270_v47 = vld [vmem:[%s7585_s4 + $0xa0] sm:$0xff] }
 0x8f2   :  { %8057 = vst [vmem:[#allocation18_spill] sm:$0xff] %v7270_v47  ;;  %v7284_v51 = vld [vmem:[%s7585_s4 + $0x80] sm:$0xff] }
 0x8f3   :  { %8059 = vst [vmem:[#allocation19_spill] sm:$0xff] %v7284_v51  ;;  %v7298_v24 = vld [vmem:[%s7585_s4 + $0x60] sm:$0xff] }
 0x8f4   :  { %v4083_v38 = vpop.eup %4082  ;;  %8061 = vst [vmem:[#allocation21_spill] sm:$0xff] %v7298_v24  ;;  %v7312_v28 = vld [vmem:[%s7585_s4 + $0x40] sm:$0xff] }
 0x8f5   :  { %v2915_v2 = vmul.f32 %v4083_v38, %v2909_v49  ;;  %8063 = vst [vmem:[#allocation22_spill] sm:$0xff] %v7312_v28  ;;  %v7326_v60 = vld [vmem:[%s7585_s4 + $0x20] sm:$0xff]  ;;  %v7333_v38 = vld [vmem:[%s7585_s4 + $0x30] sm:$0xff]  ;;  %v7339_v49 = vld [vmem:[%s7585_s4 + $0x38] sm:$0xff] }
 0x8f6   :  { %8065 = vst [vmem:[#allocation54_spill] sm:$0xff] %v7326_v60 }
 0x8f7   :  { %2939 = vmatmul.f32.vlgmr.msrb.gmra.mxu0 %v2915_v2  ;;  %2959 = vmatmul.f32.vlgmr.msra.gmra.mxu1 %v2915_v2  ;;  %8066 = vst [vmem:[#allocation64_spill] sm:$0xff] %v7333_v38 }
 0x8f8   :  { %2979 = vmatmul.f32.vlgmr.msra.gmra.mxu2 %v2915_v2  ;;  %2999 = vmatmul.f32.vlgmr.msra.gmra.mxu3 %v2915_v2  ;;  %8067 = vst [vmem:[#allocation7_spill] sm:$0xff] %v7339_v49  ;;  %v7345_v2 = vld [vmem:[%s7585_s4] sm:$0xff] }
 0x8f9   :  { %3231 = vmatpush.msrb.mxu0 %v7165_v25  ;;  %3251 = vmatpush.msra.mxu1 %v6829_v16  ;;  %8068 = vst [vmem:[#allocation8_spill] sm:$0xff] %v7345_v2 }
 0x8fa   :  { %3271 = vmatpush.msra.mxu2 %v6835_v62  ;;  %3291 = vmatpush.msra.mxu3 %v6987_v10 }
 0x8fb   :  { %3232 = vmatpush.msrb.mxu0 %v7174_v41  ;;  %3252 = vmatpush.msra.mxu1 %v6843_v6 }
 0x8fc   :  { %3272 = vmatpush.msra.mxu2 %v6849_v12  ;;  %3292 = vmatpush.msra.mxu3 %v6996_v50 }
 0x8fd   :  { %3233 = vmatpush.msrb.mxu0 %v7183_v19  ;;  %3253 = vmatpush.msra.mxu1 %v6857_v17 }
 0x8fe   :  { %3273 = vmatpush.msra.mxu2 %v6863_v43  ;;  %3293 = vmatpush.msra.mxu3 %v7005_v34 }
 0x8ff   :  { %3234 = vmatpush.msrb.mxu0 %v7192_v21  ;;  %3254 = vmatpush.msra.mxu1 %v6871_v14 }
 0x900   :  { %3274 = vmatpush.msra.mxu2 %v6877_v15  ;;  %3294 = vmatpush.msra.mxu3 %v7014_v13 }
 0x901   :  { %3235 = vmatpush.msrb.mxu0 %v7201_v55  ;;  %3255 = vmatpush.msra.mxu1 %v6885_v46 }
 0x902   :  { %3275 = vmatpush.msra.mxu2 %v6891_v42  ;;  %3295 = vmatpush.msra.mxu3 %v7023_v57 }
 0x903   :  { %3236 = vmatpush.msrb.mxu0 %v7210_v4  ;;  %3256 = vmatpush.msra.mxu1 %v6899_v5 }
 0x904   :  { %3276 = vmatpush.msra.mxu2 %v6905_v58  ;;  %3296 = vmatpush.msra.mxu3 %v7032_v61 }
 0x905   :  { %3237 = vmatpush.msrb.mxu0 %v7219_v56  ;;  %3257 = vmatpush.msra.mxu1 %v6913_v45 }
 0x906   :  { %3277 = vmatpush.msra.mxu2 %v6919_v39  ;;  %3297 = vmatpush.msra.mxu3 %v7041_v7 }
 0x907   :  { %3238 = vmatpush.msrb.mxu0 %v7228_v18  ;;  %3258 = vmatpush.msra.mxu1 %v6927_v23 }
 0x908   :  { %3278 = vmatpush.msra.mxu2 %v7049_v63  ;;  %3298 = vmatpush.msra.mxu3 %v7236_v11 }
 0x909   :  { %3239 = vmatpush.msrb.mxu0 %v7242_v1  ;;  %3259 = vmatpush.msra.mxu1 %v6936_v48 }
 0x90a   :  { %3279 = vmatpush.msra.mxu2 %v7058_v29  ;;  %3299 = vmatpush.msra.mxu3 %v7250_v30 }
 0x90b   :  { %3240 = vmatpush.msrb.mxu0 %v7256_v53  ;;  %3260 = vmatpush.msra.mxu1 %v7066_v33 }
 0x90c   :  { %3280 = vmatpush.msra.mxu2 %v7072_v0  ;;  %3300 = vmatpush.msra.mxu3 %v7264_v54 }
 0x90d   :  { %3241 = vmatpush.msrb.mxu0 %v7270_v47  ;;  %3261 = vmatpush.msra.mxu1 %v7080_v27 }
 0x90e   :  { %3281 = vmatpush.msra.mxu2 %v7086_v59  ;;  %3301 = vmatpush.msra.mxu3 %v7278_v52 }
 0x90f   :  { %3242 = vmatpush.msrb.mxu0 %v7284_v51  ;;  %3262 = vmatpush.msra.mxu1 %v7094_v9 }
 0x910   :  { %3282 = vmatpush.msra.mxu2 %v7100_v36  ;;  %3302 = vmatpush.msra.mxu3 %v7292_v22 }
 0x911   :  { %3243 = vmatpush.msrb.mxu0 %v7298_v24  ;;  %3263 = vmatpush.msra.mxu1 %v7108_v37  ;;  %v8075_v24 = vld [vmem:[#allocation80_spill] sm:$0xff] }
 0x912   :  { %3283 = vmatpush.msra.mxu2 %v7114_v8  ;;  %3303 = vmatpush.msra.mxu3 %v7306_v31 }
 0x913   :  { %3244 = vmatpush.msrb.mxu0 %v7312_v28  ;;  %3264 = vmatpush.msra.mxu1 %v7122_v35 }
 0x914   :  { %3284 = vmatpush.msra.mxu2 %v7128_v40  ;;  %3304 = vmatpush.msra.mxu3 %v7320_v44  ;;  %v8073_v44 = vld [vmem:[#allocation33_spill] sm:$0xff] }
 0x915   :  { %3245 = vmatpush.msrb.mxu0 %v7326_v60  ;;  %3265 = vmatpush.msra.mxu1 %v7136_v26  ;;  %v8071_v26 = vld [vmem:[#allocation31_spill] sm:$0xff] }
 0x916   :  { %3285 = vmatpush.msra.mxu2 %v7333_v38  ;;  %3305 = vmatpush.msra.mxu3 %v7339_v49  ;;  %v7352_v38 = vld [vmem:[%s7585_s4 + $0x10] sm:$0xff]  ;;  %v7358_v49 = vld [vmem:[%s7585_s4 + $0x18] sm:$0xff]  ;;  %v885_v60 = vadd.f32 %v8071_v26, %v8048_v3 }
 0x917   :  { %3246 = vmatpush.msrb.mxu0 %v7345_v2  ;;  %3266 = vmatpush.msra.mxu1 %v7145_v32  ;;  %8069 = vst [vmem:[#allocation65_spill] sm:$0xff] %v7352_v38  ;;  %v8072_v2 = vld [vmem:[#allocation46_spill] sm:$0xff] }
 0x918   :  { %3286 = vmatpush.msra.mxu2 %v7352_v38  ;;  %8070 = vst [vmem:[#allocation55_spill] sm:$0xff] %v7358_v49  ;;  %3306 = vmatpush.msra.mxu3 %v7358_v49  ;;  %v950_v32 = vadd.f32 %v8073_v44, %v8072_v2  ;;  %v8074_v38 = vld [vmem:[#allocation47_spill] sm:$0xff] }
 0x919   :  { %v1080_v22 = vadd.f32 %v8075_v24, %v8074_v38 }
 0x974   :  { %v2940_v40 = vpop.f32.mrf.mxu0  ;;  %v2960_v35 = vpop.f32.mrf.mxu1 }
 0x975   :  { %v3003_v28 = vadd.f32 %v2940_v40, %v885_v60  ;;  %v3004_v31 = vadd.f32 %v2960_v35, %v950_v32  ;;  %v8076_v35 = vld [vmem:[#allocation50_spill] sm:$0xff]  ;;  %v8077_v32 = vld [vmem:[#allocation35_spill] sm:$0xff] }
 0x977   :  { %v3891_v8 = vmul.f32 -1.442695, %v3003_v28  ;;  %v3892_v37 = vmul.f32 -1.442695, %v3004_v31  ;;  %v1015_v31 = vadd.f32 %v8077_v32, %v8076_v35 }
 0x979   :  { %4084 = vpow2.f32 %v3891_v8 }
 0x97a   :  { %4086 = vpow2.f32 %v3892_v37 }
 0x97b   :  { %v3000_v36 = vpop.f32.mrf.mxu3  ;;  %v2980_v44 = vpop.f32.mrf.mxu2 }
 0x97c   :  { %v3006_v9 = vadd.f32 %v3000_v36, %v1080_v22  ;;  %v3005_v60 = vadd.f32 %v2980_v44, %v1015_v31 }
 0x97e   :  { %v3893_v49 = vmul.f32 -1.442695, %v3006_v9 }
 0x97f   :  { %v4085_v51 = vpop.eup %4084 }
 0x980   :  { %v4087_v52 = vpop.eup %4086  ;;  %v3010_v26 = vadd.f32 1.0, %v4085_v51  ;;  %4088 = vpow2.f32 %v3893_v49 }
 0x981   :  { %v3029_v3 = vadd.f32 1.0, %v4087_v52 }
 0x982   :  { %4090 = vrcp.f32 %v3010_v26  ;;  %v3022_v38 = vand.u32 2147483648, %v3010_v26  ;;  %v3020_v49 = vand.u32 2147483647, %v3010_v26  ;;  %vm3016_vm8 = vweird.f32 %v3010_v26 }
 0x983   :  { %4092 = vrcp.f32 %v3029_v3  ;;  %v3041_v51 = vand.u32 2147483648, %v3029_v3  ;;  %v3039_v59 = vand.u32 2147483647, %v3029_v3  ;;  %vm3035_vm9 = vweird.f32 %v3029_v3 }
 0x984   :  { %v3023_v44 = vor.u32 1.1754944e-38, %v3022_v38  ;;  %vm3021_vm12 = vcmp.eq.f32.partialorder %v3020_v49, 8.507059e+37 }
 0x985   :  { %vm3040_vm13 = vcmp.eq.f32.partialorder %v3039_v59, 8.507059e+37 }
 0x986   :  { %v4089_v40 = vpop.eup %4088 }
 0x987   :  { %v3049_v8 = vadd.f32 1.0, %v4089_v40 }
 0x988   :  { %v4091_v28 = vpop.eup %4090 }
 0x989   :  { %v4093_v24 = vpop.eup %4092  ;;  %v3012_v37 = vmul.f32 %v4091_v28, %v3010_v26  ;;  %4094 = vrcp.f32 %v3049_v8  ;;  %vm3017_vm6 = vweird.f32 %v4091_v28  ;;  %v3061_v38 = vand.u32 2147483648, %v3049_v8 }
 0x98a   :  { %v3031_v36 = vmul.f32 %v4093_v24, %v3029_v3  ;;  %4096 = vtanh.f32 %v3005_v60  ;;  %vm3036_vm7 = vweird.f32 %v4093_v24  ;;  %vm3018_vm10 = vmor %vm3016_vm8, %vm3017_vm6  ;;  %vm3055_vm15 = vweird.f32 %v3049_v8 }
 0x98b   :  { %v3013_v9 = vsub.f32 1.0, %v3012_v37  ;;  %vm3037_vm11 = vmor %vm3035_vm9, %vm3036_vm7  ;;  %v3042_v37 = vor.u32 1.1754944e-38, %v3041_v51  ;;  %v3062_v51 = vor.u32 1.1754944e-38, %v3061_v38 }
 0x98c   :  { %v3032_v22 = vsub.f32 1.0, %v3031_v36 }
 0x98d   :  { %v3014_v52 = vmul.f32 %v4091_v28, %v3013_v9 }
 0x98e   :  { %v3033_v2 = vmul.f32 %v4093_v24, %v3032_v22 }
 0x98f   :  { %v4095_v27 = vpop.eup %4094  ;;  %v3015_v32 = vadd.f32 %v4091_v28, %v3014_v52 }
 0x990   :  { %v3034_v40 = vadd.f32 %v4093_v24, %v3033_v2  ;;  %v3051_v31 = vmul.f32 %v4095_v27, %v3049_v8  ;;  %v4097_v60 = vpop.eup %4096  ;;  %vm3056_vm14 = vweird.f32 %v4095_v27  ;;  %v3059_v2 = vand.u32 2147483647, %v3049_v8  ;;  %v8100_v8 = vld [vmem:[#allocation8_spill] sm:$0xff] }
 0x991   :  { %v3019_v36 = vsel %vm3018_vm10, %v4091_v28, %v3015_v32  ;;  %vm3057_vm0 = vmor %vm3055_vm15, %vm3056_vm14  ;;  %v8101_v32 = vld [vmem:[#allocation75_spill] sm:$0xff] }
 0x992   :  { %v3024_v35 = vsel %vm3021_vm12, %v3023_v44, %v3019_v36  ;;  %v3038_v9 = vsel %vm3037_vm11, %v4093_v24, %v3034_v40  ;;  %v3052_v47 = vsub.f32 1.0, %v3051_v31  ;;  %vm3060_vm1 = vcmp.eq.f32.partialorder %v3059_v2, 8.507059e+37  ;;  %v8102_v44 = vld [vmem:[#allocation65_spill] sm:$0xff]  ;;  %v8103_v40 = vld [vmem:[#allocation55_spill] sm:$0xff]  ;;  %v8104_v31 = vld [vmem:[#allocation44_spill] sm:$0xff] }
 0x993   :  { %v3043_v22 = vsel %vm3040_vm13, %v3042_v37, %v3038_v9  ;;  %v3066_v54 = vmul.f32 %v4097_v60, %v3024_v35  ;;  %v8099_v35 = vld [vmem:[#allocation7_spill] sm:$0xff]  ;;  %v8105_v37 = vld [vmem:[#allocation34_spill] sm:$0xff]  ;;  %v8107_v9 = vld [vmem:[#allocation36_spill] sm:$0xff] }
 0x994   :  { %v3065_v0 = vmul.f32 %v3043_v22, %v7159_v20  ;;  %v3053_v52 = vmul.f32 %v4095_v27, %v3052_v47  ;;  %v8096_v20 = vld [vmem:[#allocation54_spill] sm:$0xff]  ;;  %v8098_v47 = vld [vmem:[#allocation64_spill] sm:$0xff]  ;;  %v888_v36 = vadd.f32 %v8105_v37, %v8104_v31 }
 0x995   :  { %v8106_v60 = vld [vmem:[#allocation46_spill] sm:$0xff] }
 0x996   :  { %v7370_v26 = vadd.f32 %v3066_v54, %v3065_v0  ;;  %v3054_v3 = vadd.f32 %v4095_v27, %v3053_v52  ;;  %v8094_v0 = vld [vmem:[#allocation73_spill] sm:$0xff]  ;;  %v8097_v54 = vld [vmem:[#allocation74_spill] sm:$0xff]  ;;  %v953_v22 = vadd.f32 %v8107_v9, %v8106_v60 }
 0x998   :  { %4098 = vtanh.f32 %v7370_v26  ;;  %v3058_v28 = vsel %vm3057_vm0, %v4095_v27, %v3054_v3  ;;  %v8095_v27 = vld [vmem:[#allocation13_spill] sm:$0xff] }
 0x999   :  { %v3063_v24 = vsel %vm3060_vm1, %v3062_v51, %v3058_v28 }
 0x99e   :  { %v4099_v59 = vpop.eup %4098 }
 0x99f   :  { %v3069_v49 = vmul.f32 %v4099_v59, %v3063_v24  ;;  %v8108_v59 = vld [vmem:[#allocation47_spill] sm:$0xff]  ;;  %v8109_v24 = vld [vmem:[#allocation81_spill] sm:$0xff] }
 0x9a1   :  { %3093 = vmatmul.f32.vlgmr.msra.gmra.mxu0 %v3069_v49  ;;  %3113 = vmatmul.f32.vlgmr.msrb.gmra.mxu1 %v3069_v49 }
 0x9a2   :  { %3133 = vmatmul.f32.vlgmr.msrb.gmra.mxu2 %v3069_v49  ;;  %3153 = vmatmul.f32.vlgmr.msrb.gmra.mxu3 %v3069_v49  ;;  %v1083_v49 = vadd.f32 %v8109_v24, %v8108_v59 }
 0x9a3   :  { %3385 = vmatpush.msra.mxu0 %v7165_v25  ;;  %3405 = vmatpush.msrb.mxu1 %v6829_v16  ;;  %v8078_v16 = vld [vmem:[#allocation59_spill] sm:$0xff] }
 0x9a4   :  { %3425 = vmatpush.msrb.mxu2 %v6835_v62  ;;  %3445 = vmatpush.msrb.mxu3 %v6987_v10  ;;  %v8079_v62 = vld [vmem:[#allocation17_spill] sm:$0xff] }
 0x9a5   :  { %3386 = vmatpush.msra.mxu0 %v7174_v41  ;;  %3406 = vmatpush.msrb.mxu1 %v6843_v6  ;;  %v8080_v6 = vld [vmem:[#allocation18_spill] sm:$0xff] }
 0x9a6   :  { %3426 = vmatpush.msrb.mxu2 %v6849_v12  ;;  %3446 = vmatpush.msrb.mxu3 %v6996_v50  ;;  %v8081_v12 = vld [vmem:[#allocation60_spill] sm:$0xff] }
 0x9a7   :  { %3387 = vmatpush.msra.mxu0 %v7183_v19  ;;  %3407 = vmatpush.msrb.mxu1 %v6857_v17  ;;  %v8082_v17 = vld [vmem:[#allocation14_spill] sm:$0xff] }
 0x9a8   :  { %3427 = vmatpush.msrb.mxu2 %v6863_v43  ;;  %3447 = vmatpush.msrb.mxu3 %v7005_v34  ;;  %v8083_v43 = vld [vmem:[#allocation66_spill] sm:$0xff] }
 0x9a9   :  { %3388 = vmatpush.msra.mxu0 %v7192_v21  ;;  %3408 = vmatpush.msrb.mxu1 %v6871_v14  ;;  %v8084_v14 = vld [vmem:[#allocation19_spill] sm:$0xff] }
 0x9aa   :  { %3428 = vmatpush.msrb.mxu2 %v6877_v15  ;;  %3448 = vmatpush.msrb.mxu3 %v7014_v13  ;;  %v8085_v15 = vld [vmem:[#allocation15_spill] sm:$0xff] }
 0x9ab   :  { %3389 = vmatpush.msra.mxu0 %v7201_v55  ;;  %3409 = vmatpush.msrb.mxu1 %v6885_v46  ;;  %v8086_v46 = vld [vmem:[#allocation12_spill] sm:$0xff] }
 0x9ac   :  { %3429 = vmatpush.msrb.mxu2 %v6891_v42  ;;  %3449 = vmatpush.msrb.mxu3 %v7023_v57  ;;  %v8087_v42 = vld [vmem:[#allocation20_spill] sm:$0xff] }
 0x9ad   :  { %3390 = vmatpush.msra.mxu0 %v7210_v4  ;;  %3410 = vmatpush.msrb.mxu1 %v6899_v5  ;;  %v8088_v5 = vld [vmem:[#allocation21_spill] sm:$0xff] }
 0x9ae   :  { %3430 = vmatpush.msrb.mxu2 %v6905_v58  ;;  %3450 = vmatpush.msrb.mxu3 %v7032_v61  ;;  %v8089_v58 = vld [vmem:[#allocation16_spill] sm:$0xff] }
 0x9af   :  { %3391 = vmatpush.msra.mxu0 %v7219_v56  ;;  %3411 = vmatpush.msrb.mxu1 %v6913_v45  ;;  %v8090_v45 = vld [vmem:[#allocation71_spill] sm:$0xff] }
 0x9b0   :  { %3431 = vmatpush.msrb.mxu2 %v6919_v39  ;;  %3451 = vmatpush.msrb.mxu3 %v7041_v7  ;;  %v8091_v39 = vld [vmem:[#allocation76_spill] sm:$0xff] }
 0x9b1   :  { %3392 = vmatpush.msra.mxu0 %v7228_v18  ;;  %3412 = vmatpush.msrb.mxu1 %v6927_v23  ;;  %v8092_v23 = vld [vmem:[#allocation22_spill] sm:$0xff] }
 0x9b2   :  { %3432 = vmatpush.msrb.mxu2 %v7049_v63  ;;  %3452 = vmatpush.msrb.mxu3 %v7236_v11 }
 0x9b3   :  { %3393 = vmatpush.msra.mxu0 %v7242_v1  ;;  %3413 = vmatpush.msrb.mxu1 %v6936_v48  ;;  %v8093_v48 = vld [vmem:[#allocation72_spill] sm:$0xff] }
 0x9b4   :  { %3433 = vmatpush.msrb.mxu2 %v7058_v29  ;;  %3453 = vmatpush.msrb.mxu3 %v7250_v30 }
 0x9b5   :  { %3394 = vmatpush.msra.mxu0 %v7256_v53  ;;  %3414 = vmatpush.msrb.mxu1 %v7066_v33 }
 0x9b6   :  { %3434 = vmatpush.msrb.mxu2 %v8078_v16  ;;  %3454 = vmatpush.msrb.mxu3 %v8079_v62 }
 0x9b7   :  { %3395 = vmatpush.msra.mxu0 %v8080_v6  ;;  %3415 = vmatpush.msrb.mxu1 %v8081_v12 }
 0x9b8   :  { %3435 = vmatpush.msrb.mxu2 %v8082_v17  ;;  %3455 = vmatpush.msrb.mxu3 %v8083_v43 }
 0x9b9   :  { %3396 = vmatpush.msra.mxu0 %v8084_v14  ;;  %3416 = vmatpush.msrb.mxu1 %v8085_v15 }
 0x9ba   :  { %3436 = vmatpush.msrb.mxu2 %v8086_v46  ;;  %3456 = vmatpush.msrb.mxu3 %v8087_v42 }
 0x9bb   :  { %3397 = vmatpush.msra.mxu0 %v8088_v5  ;;  %3417 = vmatpush.msrb.mxu1 %v8089_v58 }
 0x9bc   :  { %3437 = vmatpush.msrb.mxu2 %v8090_v45  ;;  %3457 = vmatpush.msrb.mxu3 %v8091_v39 }
 0x9bd   :  { %3398 = vmatpush.msra.mxu0 %v8092_v23  ;;  %3418 = vmatpush.msrb.mxu1 %v8093_v48 }
 0x9be   :  { %3438 = vmatpush.msrb.mxu2 %v8094_v0  ;;  %3458 = vmatpush.msrb.mxu3 %v8095_v27 }
 0x9bf   :  { %3399 = vmatpush.msra.mxu0 %v8096_v20  ;;  %3419 = vmatpush.msrb.mxu1 %v8097_v54 }
 0x9c0   :  { %3439 = vmatpush.msrb.mxu2 %v8098_v47  ;;  %3459 = vmatpush.msrb.mxu3 %v8099_v35 }
 0x9c1   :  { %3400 = vmatpush.msra.mxu0 %v8100_v8  ;;  %3420 = vmatpush.msrb.mxu1 %v8101_v32 }
 0x9c2   :  { %3440 = vmatpush.msrb.mxu2 %v8102_v44  ;;  %3460 = vmatpush.msrb.mxu3 %v8103_v40 }
 0xa1e   :  { %v3094_v52 = vpop.f32.mrf.mxu0  ;;  %v3114_v3 = vpop.f32.mrf.mxu1 }
 0xa1f   :  { %v3157_v38 = vadd.f32 %v3094_v52, %v888_v36  ;;  %v3158_v2 = vadd.f32 %v3114_v3, %v953_v22  ;;  %v8110_v22 = vld [vmem:[#allocation50_spill] sm:$0xff]  ;;  %v8111_v52 = vld [vmem:[#allocation39_spill] sm:$0xff] }
 0xa20   :  { %v1018_v3 = vadd.f32 %v8111_v52, %v8110_v22 }
 0xa21   :  { %v3894_v28 = vmul.f32 -1.442695, %v3157_v38  ;;  %v3895_v51 = vmul.f32 -1.442695, %v3158_v2 }
 0xa23   :  { %4100 = vpow2.f32 %v3894_v28 }
 0xa24   :  { %4102 = vpow2.f32 %v3895_v51 }
 0xa25   :  { %v3154_v44 = vpop.f32.mrf.mxu3  ;;  %v3134_v9 = vpop.f32.mrf.mxu2 }
 0xa26   :  { %v3160_v32 = vadd.f32 %v3154_v44, %v1083_v49  ;;  %v3159_v28 = vadd.f32 %v3134_v9, %v1018_v3 }
 0xa28   :  { %v3896_v40 = vmul.f32 -1.442695, %v3160_v32 }
 0xa29   :  { %v4101_v8 = vpop.eup %4100 }
 0xa2a   :  { %v4103_v35 = vpop.eup %4102  ;;  %v3164_v37 = vadd.f32 1.0, %v4101_v8  ;;  %4104 = vpow2.f32 %v3896_v40 }
 0xa2b   :  { %v3183_v31 = vadd.f32 1.0, %v4103_v35 }
 0xa2c   :  { %4106 = vrcp.f32 %v3164_v37  ;;  %v3176_v59 = vand.u32 2147483648, %v3164_v37  ;;  %v3174_v40 = vand.u32 2147483647, %v3164_v37  ;;  %vm3170_vm4 = vweird.f32 %v3164_v37 }
 0xa2d   :  { %4108 = vrcp.f32 %v3183_v31  ;;  %v3195_v8 = vand.u32 2147483648, %v3183_v31  ;;  %v3193_v47 = vand.u32 2147483647, %v3183_v31  ;;  %vm3189_vm5 = vweird.f32 %v3183_v31 }
 0xa2e   :  { %v3177_v9 = vor.u32 1.1754944e-38, %v3176_v59  ;;  %vm3175_vm8 = vcmp.eq.f32.partialorder %v3174_v40, 8.507059e+37 }
 0xa2f   :  { %vm3194_vm9 = vcmp.eq.f32.partialorder %v3193_v47, 8.507059e+37 }
 0xa30   :  { %v4105_v36 = vpop.eup %4104 }
 0xa31   :  { %v3203_v38 = vadd.f32 1.0, %v4105_v36 }
 0xa32   :  { %v4107_v2 = vpop.eup %4106 }
 0xa33   :  { %v4109_v24 = vpop.eup %4108  ;;  %v3166_v51 = vmul.f32 %v4107_v2, %v3164_v37  ;;  %4110 = vrcp.f32 %v3203_v38  ;;  %vm3171_vm2 = vweird.f32 %v4107_v2  ;;  %vm3209_vm11 = vweird.f32 %v3203_v38 }
 0xa34   :  { %v3185_v44 = vmul.f32 %v4109_v24, %v3183_v31  ;;  %4112 = vtanh.f32 %v3159_v28  ;;  %vm3190_vm3 = vweird.f32 %v4109_v24  ;;  %vm3172_vm6 = vmor %vm3170_vm4, %vm3171_vm2  ;;  %v3213_v59 = vand.u32 2147483647, %v3203_v38 }
 0xa35   :  { %v3167_v32 = vsub.f32 1.0, %v3166_v51  ;;  %vm3191_vm7 = vmor %vm3189_vm5, %vm3190_vm3  ;;  %v3196_v51 = vor.u32 1.1754944e-38, %v3195_v8 }
 0xa36   :  { %v3186_v49 = vsub.f32 1.0, %v3185_v44  ;;  %vm3214_vm13 = vcmp.eq.f32.partialorder %v3213_v59, 8.507059e+37 }
 0xa37   :  { %v3168_v35 = vmul.f32 %v4107_v2, %v3167_v32 }
 0xa38   :  { %v3187_v60 = vmul.f32 %v4109_v24, %v3186_v49 }
 0xa39   :  { %v4111_v54 = vpop.eup %4110  ;;  %v3169_v52 = vadd.f32 %v4107_v2, %v3168_v35 }
 0xa3a   :  { %v3188_v36 = vadd.f32 %v4109_v24, %v3187_v60  ;;  %v3205_v3 = vmul.f32 %v4111_v54, %v3203_v38  ;;  %v4113_v28 = vpop.eup %4112  ;;  %vm3210_vm10 = vweird.f32 %v4111_v54  ;;  %v3215_v60 = vand.u32 2147483648, %v3203_v38 }
 0xa3b   :  { %v3173_v44 = vsel %vm3172_vm6, %v4107_v2, %v3169_v52  ;;  %vm3211_vm12 = vmor %vm3209_vm11, %vm3210_vm10 }
 0xa3c   :  { %v3178_v22 = vsel %vm3175_vm8, %v3177_v9, %v3173_v44  ;;  %v3192_v32 = vsel %vm3191_vm7, %v4109_v24, %v3188_v36  ;;  %v3206_v20 = vsub.f32 1.0, %v3205_v3  ;;  %v3216_v8 = vor.u32 1.1754944e-38, %v3215_v60  ;;  %v8128_v44 = vld [vmem:[#allocation50_spill] sm:$0xff] }
 0xa3d   :  { %v3197_v49 = vsel %vm3194_vm9, %v3196_v51, %v3192_v32  ;;  %v3220_v27 = vmul.f32 %v4113_v28, %v3178_v22  ;;  %v8129_v28 = vld [vmem:[#allocation43_spill] sm:$0xff] }
 0xa3e   :  { %v3219_v0 = vmul.f32 %v3197_v49, %v7370_v26  ;;  %v3207_v35 = vmul.f32 %v4111_v54, %v3206_v20  ;;  %v4356_v26 = vld [vmem:[%s7585_s4 + $0x1e8] sm:$0xff]  ;;  %v1021_v32 = vadd.f32 %v8129_v28, %v8128_v44 }
 0xa40   :  { %v7446_v37 = vadd.f32 %v3220_v27, %v3219_v0  ;;  %v3208_v31 = vadd.f32 %v4111_v54, %v3207_v35  ;;  %v4357_v0 = vld [vmem:[%s7585_s4 + $0x1f0] sm:$0xff]  ;;  %v4358_v27 = vld [vmem:[%s7585_s4 + $0x1c8] sm:$0xff] }
 0xa42   :  { %4114 = vtanh.f32 %v7446_v37  ;;  %v3212_v2 = vsel %vm3211_vm12, %v4111_v54, %v3208_v31 }
 0xa43   :  { %v3217_v24 = vsel %vm3214_vm13, %v3216_v8, %v3212_v2 }
 0xa48   :  { %v4115_v47 = vpop.eup %4114 }
 0xa49   :  { %v3223_v40 = vmul.f32 %v4115_v47, %v3217_v24 }
 0xa4b   :  { %3247 = vmatmul.f32.vlgmr.msrb.gmra.mxu0 %v3223_v40  ;;  %3267 = vmatmul.f32.vlgmr.msra.gmra.mxu1 %v3223_v40 }
 0xa4c   :  { %3287 = vmatmul.f32.vlgmr.msra.gmra.mxu2 %v3223_v40  ;;  %3307 = vmatmul.f32.vlgmr.msra.gmra.mxu3 %v3223_v40 }
 0xa4d   :  { %3539 = vmatpush.msrb.mxu0 %v7165_v25  ;;  %3559 = vmatpush.msra.mxu1 %v4356_v26  ;;  %v4359_v25 = vld [vmem:[%s7585_s4 + $0x1d0] sm:$0xff] }
 0xa4e   :  { %3579 = vmatpush.msra.mxu2 %v4357_v0  ;;  %3599 = vmatpush.msra.mxu3 %v6987_v10  ;;  %v4360_v10 = vld [vmem:[%s7585_s4 + $0x1a8] sm:$0xff] }
 0xa4f   :  { %3540 = vmatpush.msrb.mxu0 %v7174_v41  ;;  %3560 = vmatpush.msra.mxu1 %v4358_v27  ;;  %v4361_v41 = vld [vmem:[%s7585_s4 + $0x1b0] sm:$0xff] }
 0xa50   :  { %3580 = vmatpush.msra.mxu2 %v4359_v25  ;;  %3600 = vmatpush.msra.mxu3 %v6996_v50  ;;  %v4362_v50 = vld [vmem:[%s7585_s4 + $0x188] sm:$0xff] }
 0xa51   :  { %3541 = vmatpush.msrb.mxu0 %v7183_v19  ;;  %3561 = vmatpush.msra.mxu1 %v4360_v10  ;;  %v4363_v19 = vld [vmem:[%s7585_s4 + $0x190] sm:$0xff] }
 0xa52   :  { %3581 = vmatpush.msra.mxu2 %v4361_v41  ;;  %3601 = vmatpush.msra.mxu3 %v7005_v34  ;;  %v4364_v34 = vld [vmem:[%s7585_s4 + $0x168] sm:$0xff] }
 0xa53   :  { %3542 = vmatpush.msrb.mxu0 %v7192_v21  ;;  %3562 = vmatpush.msra.mxu1 %v4362_v50  ;;  %v4365_v21 = vld [vmem:[%s7585_s4 + $0x170] sm:$0xff] }
 0xa54   :  { %3582 = vmatpush.msra.mxu2 %v4363_v19  ;;  %3602 = vmatpush.msra.mxu3 %v7014_v13  ;;  %v4366_v13 = vld [vmem:[%s7585_s4 + $0x148] sm:$0xff] }
 0xa55   :  { %3543 = vmatpush.msrb.mxu0 %v7201_v55  ;;  %3563 = vmatpush.msra.mxu1 %v4364_v34  ;;  %v4367_v55 = vld [vmem:[%s7585_s4 + $0x150] sm:$0xff] }
 0xa56   :  { %3583 = vmatpush.msra.mxu2 %v4365_v21  ;;  %3603 = vmatpush.msra.mxu3 %v7023_v57  ;;  %v4368_v57 = vld [vmem:[%s7585_s4 + $0x128] sm:$0xff] }
 0xa57   :  { %3544 = vmatpush.msrb.mxu0 %v7210_v4  ;;  %3564 = vmatpush.msra.mxu1 %v4366_v13  ;;  %v4369_v4 = vld [vmem:[%s7585_s4 + $0x130] sm:$0xff] }
 0xa58   :  { %3584 = vmatpush.msra.mxu2 %v4367_v55  ;;  %3604 = vmatpush.msra.mxu3 %v7032_v61  ;;  %v4370_v61 = vld [vmem:[%s7585_s4 + $0x108] sm:$0xff] }
 0xa59   :  { %3545 = vmatpush.msrb.mxu0 %v7219_v56  ;;  %3565 = vmatpush.msra.mxu1 %v4368_v57  ;;  %v4371_v56 = vld [vmem:[%s7585_s4 + $0xe8] sm:$0xff] }
 0xa5a   :  { %3585 = vmatpush.msra.mxu2 %v4369_v4  ;;  %3605 = vmatpush.msra.mxu3 %v7041_v7  ;;  %v8112_v7 = vld [vmem:[#allocation73_spill] sm:$0xff] }
 0xa5b   :  { %3546 = vmatpush.msrb.mxu0 %v7228_v18  ;;  %3566 = vmatpush.msra.mxu1 %v4370_v61  ;;  %v8116_v18 = vld [vmem:[#allocation64_spill] sm:$0xff] }
 0xa5c   :  { %3586 = vmatpush.msra.mxu2 %v7049_v63  ;;  %3606 = vmatpush.msra.mxu3 %v7236_v11  ;;  %v8113_v63 = vld [vmem:[#allocation13_spill] sm:$0xff]  ;;  %v8117_v11 = vld [vmem:[#allocation7_spill] sm:$0xff] }
 0xa5d   :  { %3547 = vmatpush.msrb.mxu0 %v7242_v1  ;;  %3567 = vmatpush.msra.mxu1 %v4371_v56  ;;  %v8118_v1 = vld [vmem:[#allocation8_spill] sm:$0xff] }
 0xa5e   :  { %3587 = vmatpush.msra.mxu2 %v7058_v29  ;;  %3607 = vmatpush.msra.mxu3 %v7250_v30  ;;  %v8114_v29 = vld [vmem:[#allocation54_spill] sm:$0xff]  ;;  %v8119_v30 = vld [vmem:[#allocation75_spill] sm:$0xff] }
 0xa5f   :  { %3548 = vmatpush.msrb.mxu0 %v7256_v53  ;;  %3568 = vmatpush.msra.mxu1 %v7066_v33  ;;  %v8115_v33 = vld [vmem:[#allocation74_spill] sm:$0xff]  ;;  %v8120_v53 = vld [vmem:[#allocation65_spill] sm:$0xff] }
 0xa60   :  { %3588 = vmatpush.msra.mxu2 %v8078_v16  ;;  %3608 = vmatpush.msra.mxu3 %v8079_v62  ;;  %v8121_v16 = vld [vmem:[#allocation55_spill] sm:$0xff]  ;;  %v8122_v62 = vld [vmem:[#allocation44_spill] sm:$0xff] }
 0xa61   :  { %3549 = vmatpush.msrb.mxu0 %v8080_v6  ;;  %3569 = vmatpush.msra.mxu1 %v8081_v12  ;;  %v8123_v6 = vld [vmem:[#allocation37_spill] sm:$0xff] }
 0xa62   :  { %3589 = vmatpush.msra.mxu2 %v8082_v17  ;;  %3609 = vmatpush.msra.mxu3 %v8083_v43  ;;  %v891_v12 = vadd.f32 %v8123_v6, %v8122_v62  ;;  %v8124_v17 = vld [vmem:[#allocation46_spill] sm:$0xff] }
 0xa63   :  { %3550 = vmatpush.msrb.mxu0 %v8084_v14  ;;  %3570 = vmatpush.msra.mxu1 %v8085_v15  ;;  %v8125_v43 = vld [vmem:[#allocation38_spill] sm:$0xff] }
 0xa64   :  { %3590 = vmatpush.msra.mxu2 %v8086_v46  ;;  %3610 = vmatpush.msra.mxu3 %v8087_v42  ;;  %v956_v14 = vadd.f32 %v8125_v43, %v8124_v17 }
 0xa65   :  { %3551 = vmatpush.msrb.mxu0 %v8088_v5  ;;  %3571 = vmatpush.msra.mxu1 %v8089_v58 }
 0xa66   :  { %3591 = vmatpush.msra.mxu2 %v8090_v45  ;;  %3611 = vmatpush.msra.mxu3 %v8091_v39  ;;  %v8126_v39 = vld [vmem:[#allocation47_spill] sm:$0xff] }
 0xa67   :  { %3552 = vmatpush.msrb.mxu0 %v8092_v23  ;;  %3572 = vmatpush.msra.mxu1 %v8093_v48  ;;  %v8127_v23 = vld [vmem:[#allocation82_spill] sm:$0xff] }
 0xa68   :  { %3592 = vmatpush.msra.mxu2 %v8112_v7  ;;  %3612 = vmatpush.msra.mxu3 %v8113_v63  ;;  %v1086_v48 = vadd.f32 %v8127_v23, %v8126_v39 }
 0xa69   :  { %3553 = vmatpush.msrb.mxu0 %v8114_v29  ;;  %3573 = vmatpush.msra.mxu1 %v8115_v33 }
 0xa6a   :  { %3593 = vmatpush.msra.mxu2 %v8116_v18  ;;  %3613 = vmatpush.msra.mxu3 %v8117_v11 }
 0xa6b   :  { %3554 = vmatpush.msrb.mxu0 %v8118_v1  ;;  %3574 = vmatpush.msra.mxu1 %v8119_v30 }
 0xa6c   :  { %3594 = vmatpush.msra.mxu2 %v8120_v53  ;;  %3614 = vmatpush.msra.mxu3 %v8121_v16 }
 0xac8   :  { %v3248_v15 = vpop.f32.mrf.mxu0  ;;  %v3268_v46 = vpop.f32.mrf.mxu1 }
 0xac9   :  { %v3311_v42 = vadd.f32 %v3248_v15, %v891_v12  ;;  %v3312_v5 = vadd.f32 %v3268_v46, %v956_v14  ;;  %v8131_v14 = vld [vmem:[#allocation41_spill] sm:$0xff] }
 0xaca   :  { %v959_v15 = vadd.f32 %v8131_v14, %v8124_v17 }
 0xacb   :  { %v3897_v58 = vmul.f32 -1.442695, %v3311_v42  ;;  %v3898_v45 = vmul.f32 -1.442695, %v3312_v5 }
 0xacd   :  { %4116 = vpow2.f32 %v3897_v58 }
 0xace   :  { %4118 = vpow2.f32 %v3898_v45 }
 0xacf   :  { %v3308_v20 = vpop.f32.mrf.mxu3  ;;  %v3288_v3 = vpop.f32.mrf.mxu2 }
 0xad0   :  { %v3314_v54 = vadd.f32 %v3308_v20, %v1086_v48  ;;  %v3313_v31 = vadd.f32 %v3288_v3, %v1021_v32  ;;  %v8132_v48 = vld [vmem:[#allocation83_spill] sm:$0xff]  ;;  %v8133_v32 = vld [vmem:[#allocation48_spill] sm:$0xff] }
 0xad1   :  { %v1089_v20 = vadd.f32 %v8132_v48, %v8126_v39 }
 0xad2   :  { %v3899_v22 = vmul.f32 -1.442695, %v3314_v54 }
 0xad3   :  { %v4117_v38 = vpop.eup %4116 }
 0xad4   :  { %v4119_v52 = vpop.eup %4118  ;;  %v3318_v9 = vadd.f32 1.0, %v4117_v38  ;;  %4120 = vpow2.f32 %v3899_v22 }
 0xad5   :  { %v3337_v36 = vadd.f32 1.0, %v4119_v52 }
 0xad6   :  { %4122 = vrcp.f32 %v3318_v9  ;;  %v3330_v24 = vand.u32 2147483648, %v3318_v9  ;;  %v3328_v0 = vand.u32 2147483647, %v3318_v9  ;;  %vm3324_vm0 = vweird.f32 %v3318_v9 }
 0xad7   :  { %4124 = vrcp.f32 %v3337_v36  ;;  %v3349_v40 = vand.u32 2147483648, %v3337_v36  ;;  %v3347_v25 = vand.u32 2147483647, %v3337_v36  ;;  %vm3343_vm1 = vweird.f32 %v3337_v36 }
 0xad8   :  { %v3331_v50 = vor.u32 1.1754944e-38, %v3330_v24  ;;  %vm3329_vm4 = vcmp.eq.f32.partialorder %v3328_v0, 8.507059e+37 }
 0xad9   :  { %v3350_v21 = vor.u32 1.1754944e-38, %v3349_v40  ;;  %vm3348_vm5 = vcmp.eq.f32.partialorder %v3347_v25, 8.507059e+37 }
 0xada   :  { %v4121_v51 = vpop.eup %4120 }
 0xadb   :  { %v3357_v49 = vadd.f32 1.0, %v4121_v51 }
 0xadc   :  { %v4123_v35 = vpop.eup %4122 }
 0xadd   :  { %v4125_v60 = vpop.eup %4124  ;;  %v3320_v59 = vmul.f32 %v4123_v35, %v3318_v9  ;;  %4126 = vrcp.f32 %v3357_v49  ;;  %vm3325_vm14 = vweird.f32 %v4123_v35  ;;  %v3369_v11 = vand.u32 2147483648, %v3357_v49 }
 0xade   :  { %v3339_v2 = vmul.f32 %v4125_v60, %v3337_v36  ;;  %4128 = vtanh.f32 %v3313_v31  ;;  %vm3344_vm15 = vweird.f32 %v4125_v60  ;;  %vm3326_vm2 = vmor %vm3324_vm0, %vm3325_vm14  ;;  %vm3363_vm7 = vweird.f32 %v3357_v49 }
 0xadf   :  { %v3321_v8 = vsub.f32 1.0, %v3320_v59  ;;  %vm3345_vm3 = vmor %vm3343_vm1, %vm3344_vm15  ;;  %v3367_v1 = vand.u32 2147483647, %v3357_v49  ;;  %v3370_v53 = vor.u32 1.1754944e-38, %v3369_v11 }
 0xae0   :  { %v3340_v47 = vsub.f32 1.0, %v3339_v2 }
 0xae1   :  { %v3322_v26 = vmul.f32 %v4123_v35, %v3321_v8  ;;  %vm3368_vm9 = vcmp.eq.f32.partialorder %v3367_v1, 8.507059e+37 }
 0xae2   :  { %v3341_v27 = vmul.f32 %v4125_v60, %v3340_v47 }
 0xae3   :  { %v4127_v10 = vpop.eup %4126  ;;  %v3323_v41 = vadd.f32 %v4123_v35, %v3322_v26 }
 0xae4   :  { %v3342_v19 = vadd.f32 %v4125_v60, %v3341_v27  ;;  %v3359_v34 = vmul.f32 %v4127_v10, %v3357_v49  ;;  %v4129_v55 = vpop.eup %4128  ;;  %vm3364_vm6 = vweird.f32 %v4127_v10  ;;  %v1024_v49 = vadd.f32 %v8133_v32, %v8128_v44 }
 0xae5   :  { %v3327_v13 = vsel %vm3326_vm2, %v4123_v35, %v3323_v41  ;;  %vm3365_vm8 = vmor %vm3363_vm7, %vm3364_vm6 }
 0xae6   :  { %v3332_v57 = vsel %vm3329_vm4, %v3331_v50, %v3327_v13  ;;  %v3346_v4 = vsel %vm3345_vm3, %v4125_v60, %v3342_v19  ;;  %v3360_v61 = vsub.f32 1.0, %v3359_v34 }
 0xae7   :  { %v3351_v56 = vsel %vm3348_vm5, %v3350_v21, %v3346_v4  ;;  %v3374_v7 = vmul.f32 %v4129_v55, %v3332_v57 }
 0xae8   :  { %v3373_v63 = vmul.f32 %v3351_v56, %v7446_v37  ;;  %v3361_v29 = vmul.f32 %v4127_v10, %v3360_v61  ;;  %v8130_v37 = vld [vmem:[#allocation40_spill] sm:$0xff] }
 0xae9   :  { %v894_v43 = vadd.f32 %v8130_v37, %v8122_v62 }
 0xaea   :  { %v7554_v33 = vadd.f32 %v3374_v7, %v3373_v63  ;;  %v3362_v18 = vadd.f32 %v4127_v10, %v3361_v29 }
 0xaec   :  { %4130 = vtanh.f32 %v7554_v33  ;;  %v3366_v30 = vsel %vm3365_vm8, %v4127_v10, %v3362_v18 }
 0xaed   :  { %v3371_v6 = vsel %vm3368_vm9, %v3370_v53, %v3366_v30 }
 0xaf2   :  { %v4131_v16 = vpop.eup %4130 }
 0xaf3   :  { %v3377_v12 = vmul.f32 %v4131_v16, %v3371_v6 }
 0xaf5   :  { %3401 = vmatmul.f32.vlgmr.msra.gmra.mxu0 %v3377_v12  ;;  %3421 = vmatmul.f32.vlgmr.msrb.gmra.mxu1 %v3377_v12 }
 0xaf6   :  { %3441 = vmatmul.f32.vlgmr.msrb.gmra.mxu2 %v3377_v12  ;;  %3461 = vmatmul.f32.vlgmr.msrb.gmra.mxu3 %v3377_v12 }
 0xb72   :  { %v3402_v46 = vpop.f32.mrf.mxu0  ;;  %v3422_v42 = vpop.f32.mrf.mxu1 }
 0xb73   :  { %v3465_v5 = vadd.f32 %v3402_v46, %v894_v43  ;;  %v3466_v58 = vadd.f32 %v3422_v42, %v959_v15  ;;  %v8135_v15 = vld [vmem:[#allocation45_spill] sm:$0xff] }
 0xb74   :  { %v962_v46 = vadd.f32 %v8135_v15, %v8124_v17 }
 0xb75   :  { %v3900_v45 = vmul.f32 -1.442695, %v3465_v5  ;;  %v3901_v23 = vmul.f32 -1.442695, %v3466_v58 }
 0xb77   :  { %4132 = vpow2.f32 %v3900_v45 }
 0xb78   :  { %4134 = vpow2.f32 %v3901_v23 }
 0xb79   :  { %v3462_v54 = vpop.f32.mrf.mxu3  ;;  %v3442_v51 = vpop.f32.mrf.mxu2 }
 0xb7a   :  { %v3468_v22 = vadd.f32 %v3462_v54, %v1089_v20  ;;  %v3467_v60 = vadd.f32 %v3442_v51, %v1024_v49  ;;  %v8136_v20 = vld [vmem:[#allocation84_spill] sm:$0xff] }
 0xb7b   :  { %v1092_v54 = vadd.f32 %v8136_v20, %v8126_v39 }
 0xb7c   :  { %v3902_v38 = vmul.f32 -1.442695, %v3468_v22 }
 0xb7d   :  { %v4133_v52 = vpop.eup %4132 }
 0xb7e   :  { %v4135_v9 = vpop.eup %4134  ;;  %v3472_v36 = vadd.f32 1.0, %v4133_v52  ;;  %4136 = vpow2.f32 %v3902_v38 }
 0xb7f   :  { %v3491_v3 = vadd.f32 1.0, %v4135_v9 }
 0xb80   :  { %4138 = vrcp.f32 %v3472_v36  ;;  %v3484_v40 = vand.u32 2147483648, %v3472_v36  ;;  %v3482_v27 = vand.u32 2147483647, %v3472_v36  ;;  %vm3478_vm12 = vweird.f32 %v3472_v36 }
 0xb81   :  { %4140 = vrcp.f32 %v3491_v3  ;;  %v3503_v26 = vand.u32 2147483648, %v3491_v3  ;;  %v3501_v10 = vand.u32 2147483647, %v3491_v3  ;;  %vm3497_vm13 = vweird.f32 %v3491_v3 }
 0xb82   :  { %v3485_v19 = vor.u32 1.1754944e-38, %v3484_v40  ;;  %vm3483_vm0 = vcmp.eq.f32.partialorder %v3482_v27, 8.507059e+37 }
 0xb83   :  { %v3504_v13 = vor.u32 1.1754944e-38, %v3503_v26  ;;  %vm3502_vm1 = vcmp.eq.f32.partialorder %v3501_v10, 8.507059e+37 }
 0xb84   :  { %v4137_v28 = vpop.eup %4136 }
 0xb85   :  { %v3511_v35 = vadd.f32 1.0, %v4137_v28  ;;  %v8137_v28 = vld [vmem:[#allocation49_spill] sm:$0xff] }
 0xb86   :  { %v4139_v31 = vpop.eup %4138  ;;  %v1027_v32 = vadd.f32 %v8137_v28, %v8128_v44 }
 0xb87   :  { %v4141_v59 = vpop.eup %4140  ;;  %v3474_v2 = vmul.f32 %v4139_v31, %v3472_v36  ;;  %4142 = vrcp.f32 %v3511_v35  ;;  %vm3479_vm10 = vweird.f32 %v4139_v31  ;;  %v3523_v30 = vand.u32 2147483648, %v3511_v35 }
 0xb88   :  { %v3493_v8 = vmul.f32 %v4141_v59, %v3491_v3  ;;  %4144 = vtanh.f32 %v3467_v60  ;;  %vm3498_vm11 = vweird.f32 %v4141_v59  ;;  %vm3480_vm14 = vmor %vm3478_vm12, %vm3479_vm10  ;;  %vm3517_vm3 = vweird.f32 %v3511_v35 }
 0xb89   :  { %v3475_v47 = vsub.f32 1.0, %v3474_v2  ;;  %vm3499_vm15 = vmor %vm3497_vm13, %vm3498_vm11  ;;  %v3521_v53 = vand.u32 2147483647, %v3511_v35  ;;  %v3524_v6 = vor.u32 1.1754944e-38, %v3523_v30 }
 0xb8a   :  { %v3494_v24 = vsub.f32 1.0, %v3493_v8 }
 0xb8b   :  { %v3476_v0 = vmul.f32 %v4139_v31, %v3475_v47  ;;  %vm3522_vm5 = vcmp.eq.f32.partialorder %v3521_v53, 8.507059e+37 }
 0xb8c   :  { %v3495_v25 = vmul.f32 %v4141_v59, %v3494_v24 }
 0xb8d   :  { %v4143_v41 = vpop.eup %4142  ;;  %v3477_v50 = vadd.f32 %v4139_v31, %v3476_v0 }
 0xb8e   :  { %v3496_v34 = vadd.f32 %v4141_v59, %v3495_v25  ;;  %v3513_v21 = vmul.f32 %v4143_v41, %v3511_v35  ;;  %v4145_v57 = vpop.eup %4144  ;;  %vm3518_vm2 = vweird.f32 %v4143_v41 }
 0xb8f   :  { %v3481_v55 = vsel %vm3480_vm14, %v4139_v31, %v3477_v50  ;;  %vm3519_vm4 = vmor %vm3517_vm3, %vm3518_vm2 }
 0xb90   :  { %v3486_v4 = vsel %vm3483_vm0, %v3485_v19, %v3481_v55  ;;  %v3500_v61 = vsel %vm3499_vm15, %v4141_v59, %v3496_v34  ;;  %v3514_v56 = vsub.f32 1.0, %v3513_v21 }
 0xb91   :  { %v3505_v7 = vsel %vm3502_vm1, %v3504_v13, %v3500_v61  ;;  %v3528_v63 = vmul.f32 %v4145_v57, %v3486_v4 }
 0xb92   :  { %v3527_v29 = vmul.f32 %v3505_v7, %v7554_v33  ;;  %v3515_v18 = vmul.f32 %v4143_v41, %v3514_v56  ;;  %v8134_v33 = vld [vmem:[#allocation42_spill] sm:$0xff] }
 0xb93   :  { %v897_v14 = vadd.f32 %v8134_v33, %v8122_v62 }
 0xb94   :  { %v7566_v11 = vadd.f32 %v3528_v63, %v3527_v29  ;;  %v3516_v1 = vadd.f32 %v4143_v41, %v3515_v18 }
 0xb96   :  { %4146 = vtanh.f32 %v7566_v11  ;;  %v3520_v16 = vsel %vm3519_vm4, %v4143_v41, %v3516_v1 }
 0xb97   :  { %v3525_v37 = vsel %vm3522_vm5, %v3524_v6, %v3520_v16 }
 0xb9c   :  { %v4147_v12 = vpop.eup %4146 }
 0xb9d   :  { %v3531_v43 = vmul.f32 %v4147_v12, %v3525_v37 }
 0xb9f   :  { %3555 = vmatmul.f32.vlgmr.msrb.gmra.mxu0 %v3531_v43  ;;  %3575 = vmatmul.f32.vlgmr.msra.gmra.mxu1 %v3531_v43 }
 0xba0   :  { %3595 = vmatmul.f32.vlgmr.msra.gmra.mxu2 %v3531_v43  ;;  %3615 = vmatmul.f32.vlgmr.msra.gmra.mxu3 %v3531_v43 }
 0xc1c   :  { %v3556_v42 = vpop.f32.mrf.mxu0  ;;  %v3576_v5 = vpop.f32.mrf.mxu1 }
 0xc1d   :  { %v3619_v58 = vadd.f32 %v3556_v42, %v897_v14  ;;  %v3620_v45 = vadd.f32 %v3576_v5, %v962_v46 }
 0xc1f   :  { %v3903_v23 = vmul.f32 -1.442695, %v3619_v58  ;;  %v3904_v48 = vmul.f32 -1.442695, %v3620_v45 }
 0xc21   :  { %4148 = vpow2.f32 %v3903_v23 }
 0xc22   :  { %4150 = vpow2.f32 %v3904_v48 }
 0xc23   :  { %v3616_v22 = vpop.f32.mrf.mxu3  ;;  %v3596_v17 = vpop.f32.mrf.mxu2 }
 0xc24   :  { %v3622_v38 = vadd.f32 %v3616_v22, %v1092_v54  ;;  %v3621_v31 = vadd.f32 %v3596_v17, %v1027_v32 }
 0xc26   :  { %v3905_v52 = vmul.f32 -1.442695, %v3622_v38 }
 0xc27   :  { %v4149_v9 = vpop.eup %4148 }
 0xc28   :  { %v4151_v36 = vpop.eup %4150  ;;  %v3626_v62 = vadd.f32 1.0, %v4149_v9  ;;  %4152 = vpow2.f32 %v3905_v52 }
 0xc29   :  { %v3645_v3 = vadd.f32 1.0, %v4151_v36 }
 0xc2a   :  { %4154 = vrcp.f32 %v3626_v62  ;;  %v3638_v47 = vand.u32 2147483648, %v3626_v62  ;;  %v3636_v26 = vand.u32 2147483647, %v3626_v62  ;;  %vm3632_vm8 = vweird.f32 %v3626_v62 }
 0xc2b   :  { %4156 = vrcp.f32 %v3645_v3  ;;  %v3657_v24 = vand.u32 2147483648, %v3645_v3  ;;  %v3655_v27 = vand.u32 2147483647, %v3645_v3  ;;  %vm3651_vm9 = vweird.f32 %v3645_v3 }
 0xc2c   :  { %v3639_v10 = vor.u32 1.1754944e-38, %v3638_v47  ;;  %vm3637_vm12 = vcmp.eq.f32.partialorder %v3636_v26, 8.507059e+37 }
 0xc2d   :  { %v3658_v19 = vor.u32 1.1754944e-38, %v3657_v24  ;;  %vm3656_vm13 = vcmp.eq.f32.partialorder %v3655_v27, 8.507059e+37 }
 0xc2e   :  { %v4153_v51 = vpop.eup %4152 }
 0xc2f   :  { %v3665_v49 = vadd.f32 1.0, %v4153_v51 }
 0xc30   :  { %v4155_v35 = vpop.eup %4154 }
 0xc31   :  { %v4157_v39 = vpop.eup %4156  ;;  %v3628_v60 = vmul.f32 %v4155_v35, %v3626_v62  ;;  %4158 = vrcp.f32 %v3665_v49  ;;  %vm3633_vm6 = vweird.f32 %v4155_v35  ;;  %v3677_v18 = vand.u32 2147483648, %v3665_v49 }
 0xc32   :  { %v3647_v59 = vmul.f32 %v4157_v39, %v3645_v3  ;;  %4160 = vtanh.f32 %v3621_v31  ;;  %vm3652_vm7 = vweird.f32 %v4157_v39  ;;  %vm3634_vm10 = vmor %vm3632_vm8, %vm3633_vm6  ;;  %vm3671_vm15 = vweird.f32 %v3665_v49 }
 0xc33   :  { %v3629_v2 = vsub.f32 1.0, %v3628_v60  ;;  %vm3653_vm11 = vmor %vm3651_vm9, %vm3652_vm7  ;;  %v3675_v1 = vand.u32 2147483647, %v3665_v49  ;;  %v3678_v53 = vor.u32 1.1754944e-38, %v3677_v18 }
 0xc34   :  { %v3648_v8 = vsub.f32 1.0, %v3647_v59 }
 0xc35   :  { %v3630_v40 = vmul.f32 %v4155_v35, %v3629_v2  ;;  %vm3676_vm1 = vcmp.eq.f32.partialorder %v3675_v1, 8.507059e+37 }
 0xc36   :  { %v3649_v0 = vmul.f32 %v4157_v39, %v3648_v8 }
 0xc37   :  { %v4159_v25 = vpop.eup %4158  ;;  %v3631_v44 = vadd.f32 %v4155_v35, %v3630_v40 }
 0xc38   :  { %v3650_v41 = vadd.f32 %v4157_v39, %v3649_v0  ;;  %v3667_v50 = vmul.f32 %v4159_v25, %v3665_v49  ;;  %v4161_v21 = vpop.eup %4160  ;;  %vm3672_vm14 = vweird.f32 %v4159_v25 }
 0xc39   :  { %v3635_v34 = vsel %vm3634_vm10, %v4155_v35, %v3631_v44  ;;  %vm3673_vm0 = vmor %vm3671_vm15, %vm3672_vm14 }
 0xc3a   :  { %v3640_v13 = vsel %vm3637_vm12, %v3639_v10, %v3635_v34  ;;  %v3654_v55 = vsel %vm3653_vm11, %v4157_v39, %v3650_v41  ;;  %v3668_v57 = vsub.f32 1.0, %v3667_v50 }
 0xc3b   :  { %v3659_v4 = vsel %vm3656_vm13, %v3658_v19, %v3654_v55  ;;  %v3682_v61 = vmul.f32 %v4161_v21, %v3640_v13 }
 0xc3c   :  { %v3681_v56 = vmul.f32 %v3659_v4, %v7566_v11  ;;  %v3669_v7 = vmul.f32 %v4159_v25, %v3668_v57 }
 0xc3e   :  { %v3683_v63 = vadd.f32 %v3682_v61, %v3681_v56  ;;  %v3670_v29 = vadd.f32 %v4159_v25, %v3669_v7 }
 0xc40   :  { %4162 = vtanh.f32 %v3683_v63  ;;  %v3674_v30 = vsel %vm3673_vm0, %v4159_v25, %v3670_v29 }
 0xc41   :  { %v3679_v6 = vsel %vm3676_vm1, %v3678_v53, %v3674_v30 }
 0xc46   :  { %v4163_v16 = vpop.eup %4162 }
 0xc47   :  { %v3685_v12 = vmul.f32 %v4163_v16, %v3679_v6 }
 0xc49   :  { %3686 = vst [vmem:[%s7587_s6] sm:$0xff] %v3685_v12 }

</bundles_post_ra>
